<compile_context>
chip_gen: v6e
topology: v6e:2x2x1
jax: 0.10.0
libtpu: 0.0.40
codegen_flags: <defaults>
</compile_context>

<pallas_src>
import jax
import jax.numpy as jnp
from jax.experimental import pallas as pl
from jax.experimental.pallas import tpu as pltpu

# Module constants (real defaults from the PyTorch file: input_size=112,
# hidden_size=256, num_layers=2, dim_feedforward=4*hidden).
INPUT_SIZE = 112
HIDDEN = 256
NUM_LAYERS = 2
FF = 4 * HIDDEN           # 1024
OUT = HIDDEN // 2         # 128  -> lane-dense output, unmasked vst
LN_EPS = 1e-5             # nn.LayerNorm default
L2_EPS = 1e-12            # F.normalize default

# packed 256-wide vector slab row layout (per-layer rows are [layer0, layer1])
#   row 0      : b_in
#   rows 1..2  : b_vo   (fused attention bias)
#   rows 3..4  : ln1_g
#   rows 5..6  : ln1_b
#   rows 7..8  : b_f2
#   rows 9..10 : ln2_g
#   rows 11..12: ln2_b
#   rows 13..15: zero padding (sublane-align to 16)
VEC_H_ROWS = 16
# packed 128-wide vector slab: row 0 b_out, row 1 lnf_g, row 2 lnf_b, rest pad
VEC_O_ROWS = 8

KPARAM_ORDER = ["w_in", "w_vo", "w_f1", "w_f2", "w_out", "b_f1", "vec_h", "vec_o"]


def _layernorm(x, gamma, beta, out_dtype=jnp.float32):
    """LayerNorm with f32 statistics; input may be bf16, output dtype selectable."""
    xf = x.astype(jnp.float32)
    mean = jnp.mean(xf, axis=-1, keepdims=True)
    c = xf - mean
    var = jnp.mean(c * c, axis=-1, keepdims=True)
    inv = jax.lax.rsqrt(var + LN_EPS)              # EUP rsqrt
    return (c * inv * gamma + beta).astype(out_dtype)


def encoder_kernel(x_ref,          # (TM, 112)     bf16
                   w_in_ref,       # (112, H)      bf16
                   w_vo_ref,       # (L, H, H)     bf16 (fused V->O)
                   w_f1_ref,       # (L, H, FF)    bf16
                   w_f2_ref,       # (L, FF, H)    bf16
                   w_out_ref,      # (H, OUT)      bf16
                   b_f1_ref,       # (L, 1, FF)    bf16
                   vec_h_ref,      # (16, H)       f32  (packed biases / LN params)
                   vec_o_ref,      # (8, OUT)      f32  (b_out, lnf_g, lnf_b)
                   o_ref):         # (TM, OUT)     bf16
    bf16 = jnp.bfloat16
    x = x_ref[...]                                             # (TM, 112) bf16

    # input_proj: K=112 contraction (Mosaic zero-pads K internally; exact).
    b_in = vec_h_ref[0:1, :]
    h = (jnp.dot(x, w_in_ref[...], preferred_element_type=jnp.float32)
         + b_in).astype(bf16)                                  # (TM, H) bf16

    # 2x TransformerEncoderLayer (post-norm, ReLU FFN, dropout inactive in eval)
    for l in range(NUM_LAYERS):
        b_vo = vec_h_ref[1 + l:2 + l, :]
        ln1_g = vec_h_ref[3 + l:4 + l, :]
        ln1_b = vec_h_ref[5 + l:6 + l, :]
        b_f2 = vec_h_ref[7 + l:8 + l, :]
        ln2_g = vec_h_ref[9 + l:10 + l, :]
        ln2_b = vec_h_ref[11 + l:12 + l, :]

        # seq_len == 1  =>  attention block == affine map (V->O fused on host)
        attn = jnp.dot(h, w_vo_ref[l], preferred_element_type=jnp.float32)
        attn = (attn + b_vo).astype(bf16)
        h = _layernorm(h + attn, ln1_g, ln1_b, out_dtype=bf16)  # bf16 residual add

        ff = jnp.dot(h, w_f1_ref[l], preferred_element_type=jnp.float32)
        ff = jnp.maximum(ff.astype(bf16) + b_f1_ref[l], 0)      # bf16 bias + ReLU
        ff2 = jnp.dot(ff, w_f2_ref[l], preferred_element_type=jnp.float32)
        ff2 = (ff2 + b_f2).astype(bf16)
        h = _layernorm(h + ff2, ln2_g, ln2_b, out_dtype=bf16)

    # output_proj -> LayerNorm(128) -> L2 normalize (all 128 features are real)
    b_out = vec_o_ref[0:1, :]
    lnf_g = vec_o_ref[1:2, :]
    lnf_b = vec_o_ref[2:3, :]

    y = jnp.dot(h, w_out_ref[...], preferred_element_type=jnp.float32) + b_out
    y = _layernorm(y, lnf_g, lnf_b)                             # f32
    sumsq = jnp.sum(y * y, axis=-1, keepdims=True)
    # 1 / max(||y||, eps)  ==  rsqrt(max(sumsq, eps^2))  -> EUP, no VPU divide
    y = y * jax.lax.rsqrt(jnp.maximum(sumsq, L2_EPS * L2_EPS))

    o_ref[...] = y.astype(o_ref.dtype)                          # lane-dense bf16 store


def prepare_params(p):
    """Host-side: fuse V->O, pack small vectors into slabs, cast weights to bf16."""
    # exact algebraic fusion of the seq_len==1 attention block
    w_vo = jnp.einsum("lij,ljk->lik", p["w_v"], p["w_o"])              # (L, H, H)
    b_vo = jnp.einsum("lij,ljk->lik", p["b_v"], p["w_o"]) + p["b_o"]   # (L, 1, H)

    vec_h = jnp.zeros((VEC_H_ROWS, HIDDEN), jnp.float32)
    vec_h = vec_h.at[0].set(p["b_in"][0])
    vec_h = vec_h.at[1:3].set(b_vo[:, 0, :])
    vec_h = vec_h.at[3:5].set(p["ln1_g"][:, 0, :])
    vec_h = vec_h.at[5:7].set(p["ln1_b"][:, 0, :])
    vec_h = vec_h.at[7:9].set(p["b_f2"][:, 0, :])
    vec_h = vec_h.at[9:11].set(p["ln2_g"][:, 0, :])
    vec_h = vec_h.at[11:13].set(p["ln2_b"][:, 0, :])

    vec_o = jnp.zeros((VEC_O_ROWS, OUT), jnp.float32)
    vec_o = vec_o.at[0].set(p["b_out"][0])
    vec_o = vec_o.at[1].set(p["lnf_g"][0])
    vec_o = vec_o.at[2].set(p["lnf_b"][0])

    bf16 = jnp.bfloat16
    return {
        "w_in": p["w_in"].astype(bf16),   # (112, H)
        "w_vo": w_vo.astype(bf16),        # (L, H, H)
        "w_f1": p["w_f1"].astype(bf16),   # (L, H, FF)
        "w_f2": p["w_f2"].astype(bf16),   # (L, FF, H)
        "w_out": p["w_out"].astype(bf16), # (H, OUT)
        "b_f1": p["b_f1"].astype(bf16),   # (L, 1, FF)  (used on the bf16 FFN path)
        "vec_h": vec_h,                   # (16, H)     f32
        "vec_o": vec_o,                   # (8, OUT)    f32
    }


def siamese_forward(anchor, positive, negative, kparams, *, row_tile=1024):
    """Returns (anchor_out, positive_out, negative_out), each (B, HIDDEN//2) bf16.

    row_tile: rows per grid step.  Keep <= ~1024-2048 so the per-step footprint
    (weights double-buffered ~5 MB + (TM,1024) f32 FFN intermediate) stays under
    the 32 MiB scoped VMEM default (safe on v7x's 64 MiB part); at production
    batch sizes this yields >=2 blocks so the parallel axis uses both v7x TCs.
    """
    B, D = anchor.shape
    assert D == INPUT_SIZE
    M = 3 * B

    # Stack + cast only (single fused XLA producer).  No host-side lane padding:
    # the kernel reads (TM, 112) blocks directly.
    x = jnp.concatenate([anchor, positive, negative], axis=0).astype(jnp.bfloat16)

    # Row tile: multiple of 16 (bf16 sublane packing); pad rows to a multiple.
    if M >= 16:
        tm = max(16, (min(row_tile, M) // 16) * 16)
    else:
        tm = M
    m_pad = pl.cdiv(M, tm) * tm
    if m_pad != M:
        x = jnp.pad(x, ((0, m_pad - M), (0, 0)))

    weights = [kparams[k] for k in KPARAM_ORDER]

    def _full_spec(arr):
        n = arr.ndim
        return pl.BlockSpec(arr.shape, lambda i, _n=n: (0,) * _n)   # grid-invariant

    in_specs = [pl.BlockSpec((tm, INPUT_SIZE), lambda i: (i, 0))] + \
               [_full_spec(w) for w in weights]

    out = pl.pallas_call(
        encoder_kernel,
        out_shape=jax.ShapeDtypeStruct((m_pad, OUT), jnp.bfloat16),
        grid_spec=pltpu.PrefetchScalarGridSpec(
            num_scalar_prefetch=0,
            grid=(m_pad // tm,),
            in_specs=in_specs,
            out_specs=pl.BlockSpec((tm, OUT), lambda i: (i, 0)),
        ),
        compiler_params=pltpu.CompilerParams(
            dimension_semantics=("parallel",),   # row tiles are independent
            vmem_limit_bytes=32 << 20,
        ),
    )(x, *weights)

    emb = out[:M]
    return emb[:B], emb[B:2 * B], emb[2 * B:]


def init_params(key):
    keys = jax.random.split(key, 16)
    it = iter(keys)

    def rnd(shape, scale=0.05):
        return jax.random.normal(next(it), shape, jnp.float32) * scale

    return {
        "w_in": rnd((INPUT_SIZE, HIDDEN)),
        "b_in": rnd((1, HIDDEN)),
        "w_v": rnd((NUM_LAYERS, HIDDEN, HIDDEN)),
        "b_v": rnd((NUM_LAYERS, 1, HIDDEN)),
        "w_o": rnd((NUM_LAYERS, HIDDEN, HIDDEN)),
        "b_o": rnd((NUM_LAYERS, 1, HIDDEN)),
        "ln1_g": jnp.ones((NUM_LAYERS, 1, HIDDEN), jnp.float32),
        "ln1_b": jnp.zeros((NUM_LAYERS, 1, HIDDEN), jnp.float32),
        "w_f1": rnd((NUM_LAYERS, HIDDEN, FF)),
        "b_f1": rnd((NUM_LAYERS, 1, FF)),
        "w_f2": rnd((NUM_LAYERS, FF, HIDDEN)),
        "b_f2": rnd((NUM_LAYERS, 1, HIDDEN)),
        "ln2_g": jnp.ones((NUM_LAYERS, 1, HIDDEN), jnp.float32),
        "ln2_b": jnp.zeros((NUM_LAYERS, 1, HIDDEN), jnp.float32),
        "w_out": rnd((HIDDEN, OUT)),
        "b_out": rnd((1, OUT)),
        "lnf_g": jnp.ones((1, OUT), jnp.float32),
        "lnf_b": jnp.zeros((1, OUT), jnp.float32),
    }


def encoder_ref(x, p):
    """Pure-JAX f32 reference of the same math (for a sanity check)."""
    h = x @ p["w_in"] + p["b_in"]
    for l in range(NUM_LAYERS):
        v = h @ p["w_v"][l] + p["b_v"][l]
        attn = v @ p["w_o"][l] + p["b_o"][l]
        h = _layernorm(h + attn, p["ln1_g"][l], p["ln1_b"][l])
        ff = jnp.maximum(h @ p["w_f1"][l] + p["b_f1"][l], 0.0) @ p["w_f2"][l] + p["b_f2"][l]
        h = _layernorm(h + ff, p["ln2_g"][l], p["ln2_b"][l])
    y = _layernorm(h @ p["w_out"] + p["b_out"], p["lnf_g"], p["lnf_b"])
    return y / jnp.maximum(jnp.sqrt(jnp.sum(y * y, axis=-1, keepdims=True)), L2_EPS)


if __name__ == "__main__":
    key = jax.random.PRNGKey(0)
    kp, ka, kpos, kn = jax.random.split(key, 4)

    params = init_params(kp)
    kparams = prepare_params(params)

    B = 32
    anchor = jax.random.normal(ka, (B, INPUT_SIZE), jnp.float32)
    positive = jax.random.normal(kpos, (B, INPUT_SIZE), jnp.float32)
    negative = jax.random.normal(kn, (B, INPUT_SIZE), jnp.float32)

    # small row_tile here only to exercise the multi-step row-tiled grid
    # (3 blocks of 32 rows); use the default row_tile=1024 at production sizes.
    a_out, p_out, n_out = siamese_forward(anchor, positive, negative, kparams,
                                          row_tile=32)
    jax.block_until_ready((a_out, p_out, n_out))

    # sanity check against the pure-JAX f32 reference (kernel uses bf16 MXU
    # operands, bf16 residuals and a bf16 output stream)
    ref = (encoder_ref(anchor, params),
           encoder_ref(positive, params),
           encoder_ref(negative, params))
    for got, want in zip((a_out, p_out, n_out), ref):
        assert got.shape == (B, OUT)
        assert jnp.allclose(got.astype(jnp.float32), want, atol=3e-2, rtol=3e-2)

    print("KERNEL_OK")
</pallas_src>

<mosaic_0001>
module attributes {stable_mosaic.version = 11 : i64} {
  func.func @encoder_kernel(%arg0: i32, %arg1: memref<32x112xbf16, #tpu.memory_space<vmem>>, %arg2: memref<112x256xbf16, #tpu.memory_space<vmem>>, %arg3: memref<2x256x256xbf16, #tpu.memory_space<vmem>>, %arg4: memref<2x256x1024xbf16, #tpu.memory_space<vmem>>, %arg5: memref<2x1024x256xbf16, #tpu.memory_space<vmem>>, %arg6: memref<256x128xbf16, #tpu.memory_space<vmem>>, %arg7: memref<2x1x1024xbf16, #tpu.memory_space<vmem>>, %arg8: memref<16x256xf32, #tpu.memory_space<vmem>>, %arg9: memref<8x128xf32, #tpu.memory_space<vmem>>, %arg10: memref<32x128xbf16, #tpu.memory_space<vmem>>) attributes {dimension_semantics = [#tpu.dimension_semantics<parallel>], iteration_bounds = array<i64: 3>, scalar_prefetch = 0 : i64, scratch_operands = 0 : i64, tpu.core_type = #tpu.core_type<tc>, window_params = [{transform_indices = @transform_0, window_bounds = array<i64: 32, 112>}, {pipeline_mode = #tpu.pipeline_mode<synchronous>, transform_indices = @transform_1, window_bounds = array<i64: 112, 256>}, {pipeline_mode = #tpu.pipeline_mode<synchronous>, transform_indices = @transform_2, window_bounds = array<i64: 2, 256, 256>}, {pipeline_mode = #tpu.pipeline_mode<synchronous>, transform_indices = @transform_3, window_bounds = array<i64: 2, 256, 1024>}, {pipeline_mode = #tpu.pipeline_mode<synchronous>, transform_indices = @transform_4, window_bounds = array<i64: 2, 1024, 256>}, {pipeline_mode = #tpu.pipeline_mode<synchronous>, transform_indices = @transform_5, window_bounds = array<i64: 256, 128>}, {pipeline_mode = #tpu.pipeline_mode<synchronous>, transform_indices = @transform_6, window_bounds = array<i64: 2, 1, 1024>}, {pipeline_mode = #tpu.pipeline_mode<synchronous>, transform_indices = @transform_7, window_bounds = array<i64: 16, 256>}, {pipeline_mode = #tpu.pipeline_mode<synchronous>, transform_indices = @transform_8, window_bounds = array<i64: 8, 128>}, {transform_indices = @transform_9, window_bounds = array<i64: 32, 128>}]} {
    %c0 = arith.constant 0 : index
    %c0_0 = arith.constant 0 : index
    %0 = vector.load %arg1[%c0, %c0_0] : memref<32x112xbf16, #tpu.memory_space<vmem>>, vector<32x112xbf16>
    %c0_1 = arith.constant 0 : index
    %c0_2 = arith.constant 0 : index
    %1 = vector.load %arg8[%c0_1, %c0_2] : memref<16x256xf32, #tpu.memory_space<vmem>>, vector<1x256xf32>
    %c0_3 = arith.constant 0 : index
    %c0_4 = arith.constant 0 : index
    %2 = vector.load %arg2[%c0_3, %c0_4] : memref<112x256xbf16, #tpu.memory_space<vmem>>, vector<112x256xbf16>
    %cst = arith.constant dense<0.000000e+00> : vector<32x256xf32>
    %3 = tpu.matmul %0, %2, %cst {dimension_numbers = #tpu.dot_dimension_numbers<[1], [0], [0], [1], [0, 0, 1, 1], [], []>} : vector<32x112xbf16>, vector<112x256xbf16>, vector<32x256xf32> -> vector<32x256xf32>
    %4 = vector.broadcast %1 : vector<1x256xf32> to vector<32x256xf32>
    %5 = arith.addf %3, %4 : vector<32x256xf32>
    %6 = arith.truncf %5 : vector<32x256xf32> to vector<32x256xbf16>
    %c1 = arith.constant 1 : index
    %c0_5 = arith.constant 0 : index
    %7 = vector.load %arg8[%c1, %c0_5] : memref<16x256xf32, #tpu.memory_space<vmem>>, vector<1x256xf32>
    %c3 = arith.constant 3 : index
    %c0_6 = arith.constant 0 : index
    %8 = vector.load %arg8[%c3, %c0_6] : memref<16x256xf32, #tpu.memory_space<vmem>>, vector<1x256xf32>
    %c5 = arith.constant 5 : index
    %c0_7 = arith.constant 0 : index
    %9 = vector.load %arg8[%c5, %c0_7] : memref<16x256xf32, #tpu.memory_space<vmem>>, vector<1x256xf32>
    %c7 = arith.constant 7 : index
    %c0_8 = arith.constant 0 : index
    %10 = vector.load %arg8[%c7, %c0_8] : memref<16x256xf32, #tpu.memory_space<vmem>>, vector<1x256xf32>
    %c9 = arith.constant 9 : index
    %c0_9 = arith.constant 0 : index
    %11 = vector.load %arg8[%c9, %c0_9] : memref<16x256xf32, #tpu.memory_space<vmem>>, vector<1x256xf32>
    %c11 = arith.constant 11 : index
    %c0_10 = arith.constant 0 : index
    %12 = vector.load %arg8[%c11, %c0_10] : memref<16x256xf32, #tpu.memory_space<vmem>>, vector<1x256xf32>
    %c0_11 = arith.constant 0 : index
    %c0_12 = arith.constant 0 : index
    %c0_13 = arith.constant 0 : index
    %13 = vector.load %arg3[%c0_11, %c0_12, %c0_13] : memref<2x256x256xbf16, #tpu.memory_space<vmem>>, vector<1x256x256xbf16>
    %14 = vector.shape_cast %13 : vector<1x256x256xbf16> to vector<256x256xbf16>
    %cst_14 = arith.constant dense<0.000000e+00> : vector<32x256xf32>
    %15 = tpu.matmul %6, %14, %cst_14 {dimension_numbers = #tpu.dot_dimension_numbers<[1], [0], [0], [1], [0, 0, 1, 1], [], []>} : vector<32x256xbf16>, vector<256x256xbf16>, vector<32x256xf32> -> vector<32x256xf32>
    %16 = vector.broadcast %7 : vector<1x256xf32> to vector<32x256xf32>
    %17 = arith.addf %15, %16 : vector<32x256xf32>
    %18 = arith.truncf %17 : vector<32x256xf32> to vector<32x256xbf16>
    %19 = arith.addf %6, %18 : vector<32x256xbf16>
    %20 = arith.extf %19 : vector<32x256xbf16> to vector<32x256xf32>
    %cst_15 = arith.constant dense<0.000000e+00> : vector<32xf32>
    %21 = vector.multi_reduction <add>, %20, %cst_15 [1] : vector<32x256xf32> to vector<32xf32>
    %22 = vector.shape_cast %21 : vector<32xf32> to vector<32x1xf32>
    %cst_16 = arith.constant 2.560000e+02 : f32
    %23 = vector.broadcast %cst_16 : f32 to vector<32x1xf32>
    %24 = arith.divf %22, %23 : vector<32x1xf32>
    %25 = vector.broadcast %24 : vector<32x1xf32> to vector<32x256xf32>
    %26 = arith.subf %20, %25 : vector<32x256xf32>
    %27 = arith.mulf %26, %26 : vector<32x256xf32>
    %cst_17 = arith.constant dense<0.000000e+00> : vector<32xf32>
    %28 = vector.multi_reduction <add>, %27, %cst_17 [1] : vector<32x256xf32> to vector<32xf32>
    %29 = vector.shape_cast %28 : vector<32xf32> to vector<32x1xf32>
    %cst_18 = arith.constant 2.560000e+02 : f32
    %30 = vector.broadcast %cst_18 : f32 to vector<32x1xf32>
    %31 = arith.divf %29, %30 : vector<32x1xf32>
    %cst_19 = arith.constant 9.99999974E-6 : f32
    %32 = vector.broadcast %cst_19 : f32 to vector<32x1xf32>
    %33 = arith.addf %31, %32 : vector<32x1xf32>
    %34 = math.rsqrt %33 : vector<32x1xf32>
    %35 = vector.broadcast %34 : vector<32x1xf32> to vector<32x256xf32>
    %36 = arith.mulf %26, %35 : vector<32x256xf32>
    %37 = vector.broadcast %8 : vector<1x256xf32> to vector<32x256xf32>
    %38 = arith.mulf %36, %37 : vector<32x256xf32>
    %39 = vector.broadcast %9 : vector<1x256xf32> to vector<32x256xf32>
    %40 = arith.addf %38, %39 : vector<32x256xf32>
    %41 = arith.truncf %40 : vector<32x256xf32> to vector<32x256xbf16>
    %c0_20 = arith.constant 0 : index
    %c0_21 = arith.constant 0 : index
    %c0_22 = arith.constant 0 : index
    %42 = vector.load %arg4[%c0_20, %c0_21, %c0_22] : memref<2x256x1024xbf16, #tpu.memory_space<vmem>>, vector<1x256x1024xbf16>
    %43 = vector.shape_cast %42 : vector<1x256x1024xbf16> to vector<256x1024xbf16>
    %cst_23 = arith.constant dense<0.000000e+00> : vector<32x1024xf32>
    %44 = tpu.matmul %41, %43, %cst_23 {dimension_numbers = #tpu.dot_dimension_numbers<[1], [0], [0], [1], [0, 0, 1, 1], [], []>} : vector<32x256xbf16>, vector<256x1024xbf16>, vector<32x1024xf32> -> vector<32x1024xf32>
    %45 = arith.truncf %44 : vector<32x1024xf32> to vector<32x1024xbf16>
    %c0_24 = arith.constant 0 : index
    %c0_25 = arith.constant 0 : index
    %c0_26 = arith.constant 0 : index
    %46 = vector.load %arg7[%c0_24, %c0_25, %c0_26] : memref<2x1x1024xbf16, #tpu.memory_space<vmem>>, vector<1x1x1024xbf16>
    %47 = vector.shape_cast %46 : vector<1x1x1024xbf16> to vector<1x1024xbf16>
    %48 = vector.broadcast %47 : vector<1x1024xbf16> to vector<32x1024xbf16>
    %49 = arith.addf %45, %48 : vector<32x1024xbf16>
    %cst_27 = arith.constant 0.000000e+00 : bf16
    %50 = vector.broadcast %cst_27 : bf16 to vector<32x1024xbf16>
    %51 = arith.maximumf %49, %50 : vector<32x1024xbf16>
    %c0_28 = arith.constant 0 : index
    %c0_29 = arith.constant 0 : index
    %c0_30 = arith.constant 0 : index
    %52 = vector.load %arg5[%c0_28, %c0_29, %c0_30] : memref<2x1024x256xbf16, #tpu.memory_space<vmem>>, vector<1x1024x256xbf16>
    %53 = vector.shape_cast %52 : vector<1x1024x256xbf16> to vector<1024x256xbf16>
    %cst_31 = arith.constant dense<0.000000e+00> : vector<32x256xf32>
    %54 = tpu.matmul %51, %53, %cst_31 {dimension_numbers = #tpu.dot_dimension_numbers<[1], [0], [0], [1], [0, 0, 1, 1], [], []>} : vector<32x1024xbf16>, vector<1024x256xbf16>, vector<32x256xf32> -> vector<32x256xf32>
    %55 = vector.broadcast %10 : vector<1x256xf32> to vector<32x256xf32>
    %56 = arith.addf %54, %55 : vector<32x256xf32>
    %57 = arith.truncf %56 : vector<32x256xf32> to vector<32x256xbf16>
    %58 = arith.addf %41, %57 : vector<32x256xbf16>
    %59 = arith.extf %58 : vector<32x256xbf16> to vector<32x256xf32>
    %cst_32 = arith.constant dense<0.000000e+00> : vector<32xf32>
    %60 = vector.multi_reduction <add>, %59, %cst_32 [1] : vector<32x256xf32> to vector<32xf32>
    %61 = vector.shape_cast %60 : vector<32xf32> to vector<32x1xf32>
    %cst_33 = arith.constant 2.560000e+02 : f32
    %62 = vector.broadcast %cst_33 : f32 to vector<32x1xf32>
    %63 = arith.divf %61, %62 : vector<32x1xf32>
    %64 = vector.broadcast %63 : vector<32x1xf32> to vector<32x256xf32>
    %65 = arith.subf %59, %64 : vector<32x256xf32>
    %66 = arith.mulf %65, %65 : vector<32x256xf32>
    %cst_34 = arith.constant dense<0.000000e+00> : vector<32xf32>
    %67 = vector.multi_reduction <add>, %66, %cst_34 [1] : vector<32x256xf32> to vector<32xf32>
    %68 = vector.shape_cast %67 : vector<32xf32> to vector<32x1xf32>
    %cst_35 = arith.constant 2.560000e+02 : f32
    %69 = vector.broadcast %cst_35 : f32 to vector<32x1xf32>
    %70 = arith.divf %68, %69 : vector<32x1xf32>
    %cst_36 = arith.constant 9.99999974E-6 : f32
    %71 = vector.broadcast %cst_36 : f32 to vector<32x1xf32>
    %72 = arith.addf %70, %71 : vector<32x1xf32>
    %73 = math.rsqrt %72 : vector<32x1xf32>
    %74 = vector.broadcast %73 : vector<32x1xf32> to vector<32x256xf32>
    %75 = arith.mulf %65, %74 : vector<32x256xf32>
    %76 = vector.broadcast %11 : vector<1x256xf32> to vector<32x256xf32>
    %77 = arith.mulf %75, %76 : vector<32x256xf32>
    %78 = vector.broadcast %12 : vector<1x256xf32> to vector<32x256xf32>
    %79 = arith.addf %77, %78 : vector<32x256xf32>
    %80 = arith.truncf %79 : vector<32x256xf32> to vector<32x256xbf16>
    %c2 = arith.constant 2 : index
    %c0_37 = arith.constant 0 : index
    %81 = vector.load %arg8[%c2, %c0_37] : memref<16x256xf32, #tpu.memory_space<vmem>>, vector<1x256xf32>
    %c4 = arith.constant 4 : index
    %c0_38 = arith.constant 0 : index
    %82 = vector.load %arg8[%c4, %c0_38] : memref<16x256xf32, #tpu.memory_space<vmem>>, vector<1x256xf32>
    %c6 = arith.constant 6 : index
    %c0_39 = arith.constant 0 : index
    %83 = vector.load %arg8[%c6, %c0_39] : memref<16x256xf32, #tpu.memory_space<vmem>>, vector<1x256xf32>
    %c8 = arith.constant 8 : index
    %c0_40 = arith.constant 0 : index
    %84 = vector.load %arg8[%c8, %c0_40] : memref<16x256xf32, #tpu.memory_space<vmem>>, vector<1x256xf32>
    %c10 = arith.constant 10 : index
    %c0_41 = arith.constant 0 : index
    %85 = vector.load %arg8[%c10, %c0_41] : memref<16x256xf32, #tpu.memory_space<vmem>>, vector<1x256xf32>
    %c12 = arith.constant 12 : index
    %c0_42 = arith.constant 0 : index
    %86 = vector.load %arg8[%c12, %c0_42] : memref<16x256xf32, #tpu.memory_space<vmem>>, vector<1x256xf32>
    %c1_43 = arith.constant 1 : index
    %c0_44 = arith.constant 0 : index
    %c0_45 = arith.constant 0 : index
    %87 = vector.load %arg3[%c1_43, %c0_44, %c0_45] : memref<2x256x256xbf16, #tpu.memory_space<vmem>>, vector<1x256x256xbf16>
    %88 = vector.shape_cast %87 : vector<1x256x256xbf16> to vector<256x256xbf16>
    %cst_46 = arith.constant dense<0.000000e+00> : vector<32x256xf32>
    %89 = tpu.matmul %80, %88, %cst_46 {dimension_numbers = #tpu.dot_dimension_numbers<[1], [0], [0], [1], [0, 0, 1, 1], [], []>} : vector<32x256xbf16>, vector<256x256xbf16>, vector<32x256xf32> -> vector<32x256xf32>
    %90 = vector.broadcast %81 : vector<1x256xf32> to vector<32x256xf32>
    %91 = arith.addf %89, %90 : vector<32x256xf32>
    %92 = arith.truncf %91 : vector<32x256xf32> to vector<32x256xbf16>
    %93 = arith.addf %80, %92 : vector<32x256xbf16>
    %94 = arith.extf %93 : vector<32x256xbf16> to vector<32x256xf32>
    %cst_47 = arith.constant dense<0.000000e+00> : vector<32xf32>
    %95 = vector.multi_reduction <add>, %94, %cst_47 [1] : vector<32x256xf32> to vector<32xf32>
    %96 = vector.shape_cast %95 : vector<32xf32> to vector<32x1xf32>
    %cst_48 = arith.constant 2.560000e+02 : f32
    %97 = vector.broadcast %cst_48 : f32 to vector<32x1xf32>
    %98 = arith.divf %96, %97 : vector<32x1xf32>
    %99 = vector.broadcast %98 : vector<32x1xf32> to vector<32x256xf32>
    %100 = arith.subf %94, %99 : vector<32x256xf32>
    %101 = arith.mulf %100, %100 : vector<32x256xf32>
    %cst_49 = arith.constant dense<0.000000e+00> : vector<32xf32>
    %102 = vector.multi_reduction <add>, %101, %cst_49 [1] : vector<32x256xf32> to vector<32xf32>
    %103 = vector.shape_cast %102 : vector<32xf32> to vector<32x1xf32>
    %cst_50 = arith.constant 2.560000e+02 : f32
    %104 = vector.broadcast %cst_50 : f32 to vector<32x1xf32>
    %105 = arith.divf %103, %104 : vector<32x1xf32>
    %cst_51 = arith.constant 9.99999974E-6 : f32
    %106 = vector.broadcast %cst_51 : f32 to vector<32x1xf32>
    %107 = arith.addf %105, %106 : vector<32x1xf32>
    %108 = math.rsqrt %107 : vector<32x1xf32>
    %109 = vector.broadcast %108 : vector<32x1xf32> to vector<32x256xf32>
    %110 = arith.mulf %100, %109 : vector<32x256xf32>
    %111 = vector.broadcast %82 : vector<1x256xf32> to vector<32x256xf32>
    %112 = arith.mulf %110, %111 : vector<32x256xf32>
    %113 = vector.broadcast %83 : vector<1x256xf32> to vector<32x256xf32>
    %114 = arith.addf %112, %113 : vector<32x256xf32>
    %115 = arith.truncf %114 : vector<32x256xf32> to vector<32x256xbf16>
    %c1_52 = arith.constant 1 : index
    %c0_53 = arith.constant 0 : index
    %c0_54 = arith.constant 0 : index
    %116 = vector.load %arg4[%c1_52, %c0_53, %c0_54] : memref<2x256x1024xbf16, #tpu.memory_space<vmem>>, vector<1x256x1024xbf16>
    %117 = vector.shape_cast %116 : vector<1x256x1024xbf16> to vector<256x1024xbf16>
    %cst_55 = arith.constant dense<0.000000e+00> : vector<32x1024xf32>
    %118 = tpu.matmul %115, %117, %cst_55 {dimension_numbers = #tpu.dot_dimension_numbers<[1], [0], [0], [1], [0, 0, 1, 1], [], []>} : vector<32x256xbf16>, vector<256x1024xbf16>, vector<32x1024xf32> -> vector<32x1024xf32>
    %119 = arith.truncf %118 : vector<32x1024xf32> to vector<32x1024xbf16>
    %c1_56 = arith.constant 1 : index
    %c0_57 = arith.constant 0 : index
    %c0_58 = arith.constant 0 : index
    %120 = vector.load %arg7[%c1_56, %c0_57, %c0_58] : memref<2x1x1024xbf16, #tpu.memory_space<vmem>>, vector<1x1x1024xbf16>
    %121 = vector.shape_cast %120 : vector<1x1x1024xbf16> to vector<1x1024xbf16>
    %122 = vector.broadcast %121 : vector<1x1024xbf16> to vector<32x1024xbf16>
    %123 = arith.addf %119, %122 : vector<32x1024xbf16>
    %cst_59 = arith.constant 0.000000e+00 : bf16
    %124 = vector.broadcast %cst_59 : bf16 to vector<32x1024xbf16>
    %125 = arith.maximumf %123, %124 : vector<32x1024xbf16>
    %c1_60 = arith.constant 1 : index
    %c0_61 = arith.constant 0 : index
    %c0_62 = arith.constant 0 : index
    %126 = vector.load %arg5[%c1_60, %c0_61, %c0_62] : memref<2x1024x256xbf16, #tpu.memory_space<vmem>>, vector<1x1024x256xbf16>
    %127 = vector.shape_cast %126 : vector<1x1024x256xbf16> to vector<1024x256xbf16>
    %cst_63 = arith.constant dense<0.000000e+00> : vector<32x256xf32>
    %128 = tpu.matmul %125, %127, %cst_63 {dimension_numbers = #tpu.dot_dimension_numbers<[1], [0], [0], [1], [0, 0, 1, 1], [], []>} : vector<32x1024xbf16>, vector<1024x256xbf16>, vector<32x256xf32> -> vector<32x256xf32>
    %129 = vector.broadcast %84 : vector<1x256xf32> to vector<32x256xf32>
    %130 = arith.addf %128, %129 : vector<32x256xf32>
    %131 = arith.truncf %130 : vector<32x256xf32> to vector<32x256xbf16>
    %132 = arith.addf %115, %131 : vector<32x256xbf16>
    %133 = arith.extf %132 : vector<32x256xbf16> to vector<32x256xf32>
    %cst_64 = arith.constant dense<0.000000e+00> : vector<32xf32>
    %134 = vector.multi_reduction <add>, %133, %cst_64 [1] : vector<32x256xf32> to vector<32xf32>
    %135 = vector.shape_cast %134 : vector<32xf32> to vector<32x1xf32>
    %cst_65 = arith.constant 2.560000e+02 : f32
    %136 = vector.broadcast %cst_65 : f32 to vector<32x1xf32>
    %137 = arith.divf %135, %136 : vector<32x1xf32>
    %138 = vector.broadcast %137 : vector<32x1xf32> to vector<32x256xf32>
    %139 = arith.subf %133, %138 : vector<32x256xf32>
    %140 = arith.mulf %139, %139 : vector<32x256xf32>
    %cst_66 = arith.constant dense<0.000000e+00> : vector<32xf32>
    %141 = vector.multi_reduction <add>, %140, %cst_66 [1] : vector<32x256xf32> to vector<32xf32>
    %142 = vector.shape_cast %141 : vector<32xf32> to vector<32x1xf32>
    %cst_67 = arith.constant 2.560000e+02 : f32
    %143 = vector.broadcast %cst_67 : f32 to vector<32x1xf32>
    %144 = arith.divf %142, %143 : vector<32x1xf32>
    %cst_68 = arith.constant 9.99999974E-6 : f32
    %145 = vector.broadcast %cst_68 : f32 to vector<32x1xf32>
    %146 = arith.addf %144, %145 : vector<32x1xf32>
    %147 = math.rsqrt %146 : vector<32x1xf32>
    %148 = vector.broadcast %147 : vector<32x1xf32> to vector<32x256xf32>
    %149 = arith.mulf %139, %148 : vector<32x256xf32>
    %150 = vector.broadcast %85 : vector<1x256xf32> to vector<32x256xf32>
    %151 = arith.mulf %149, %150 : vector<32x256xf32>
    %152 = vector.broadcast %86 : vector<1x256xf32> to vector<32x256xf32>
    %153 = arith.addf %151, %152 : vector<32x256xf32>
    %154 = arith.truncf %153 : vector<32x256xf32> to vector<32x256xbf16>
    %c0_69 = arith.constant 0 : index
    %c0_70 = arith.constant 0 : index
    %155 = vector.load %arg9[%c0_69, %c0_70] : memref<8x128xf32, #tpu.memory_space<vmem>>, vector<1x128xf32>
    %c1_71 = arith.constant 1 : index
    %c0_72 = arith.constant 0 : index
    %156 = vector.load %arg9[%c1_71, %c0_72] : memref<8x128xf32, #tpu.memory_space<vmem>>, vector<1x128xf32>
    %c2_73 = arith.constant 2 : index
    %c0_74 = arith.constant 0 : index
    %157 = vector.load %arg9[%c2_73, %c0_74] : memref<8x128xf32, #tpu.memory_space<vmem>>, vector<1x128xf32>
    %c0_75 = arith.constant 0 : index
    %c0_76 = arith.constant 0 : index
    %158 = vector.load %arg6[%c0_75, %c0_76] : memref<256x128xbf16, #tpu.memory_space<vmem>>, vector<256x128xbf16>
    %cst_77 = arith.constant dense<0.000000e+00> : vector<32x128xf32>
    %159 = tpu.matmul %154, %158, %cst_77 {dimension_numbers = #tpu.dot_dimension_numbers<[1], [0], [0], [1], [0, 0, 1, 1], [], []>} : vector<32x256xbf16>, vector<256x128xbf16>, vector<32x128xf32> -> vector<32x128xf32>
    %160 = vector.broadcast %155 : vector<1x128xf32> to vector<32x128xf32>
    %161 = arith.addf %159, %160 : vector<32x128xf32>
    %cst_78 = arith.constant dense<0.000000e+00> : vector<32xf32>
    %162 = vector.multi_reduction <add>, %161, %cst_78 [1] : vector<32x128xf32> to vector<32xf32>
    %163 = vector.shape_cast %162 : vector<32xf32> to vector<32x1xf32>
    %cst_79 = arith.constant 1.280000e+02 : f32
    %164 = vector.broadcast %cst_79 : f32 to vector<32x1xf32>
    %165 = arith.divf %163, %164 : vector<32x1xf32>
    %166 = vector.broadcast %165 : vector<32x1xf32> to vector<32x128xf32>
    %167 = arith.subf %161, %166 : vector<32x128xf32>
    %168 = arith.mulf %167, %167 : vector<32x128xf32>
    %cst_80 = arith.constant dense<0.000000e+00> : vector<32xf32>
    %169 = vector.multi_reduction <add>, %168, %cst_80 [1] : vector<32x128xf32> to vector<32xf32>
    %170 = vector.shape_cast %169 : vector<32xf32> to vector<32x1xf32>
    %cst_81 = arith.constant 1.280000e+02 : f32
    %171 = vector.broadcast %cst_81 : f32 to vector<32x1xf32>
    %172 = arith.divf %170, %171 : vector<32x1xf32>
    %cst_82 = arith.constant 9.99999974E-6 : f32
    %173 = vector.broadcast %cst_82 : f32 to vector<32x1xf32>
    %174 = arith.addf %172, %173 : vector<32x1xf32>
    %175 = math.rsqrt %174 : vector<32x1xf32>
    %176 = vector.broadcast %175 : vector<32x1xf32> to vector<32x128xf32>
    %177 = arith.mulf %167, %176 : vector<32x128xf32>
    %178 = vector.broadcast %156 : vector<1x128xf32> to vector<32x128xf32>
    %179 = arith.mulf %177, %178 : vector<32x128xf32>
    %180 = vector.broadcast %157 : vector<1x128xf32> to vector<32x128xf32>
    %181 = arith.addf %179, %180 : vector<32x128xf32>
    %182 = arith.mulf %181, %181 : vector<32x128xf32>
    %cst_83 = arith.constant dense<0.000000e+00> : vector<32xf32>
    %183 = vector.multi_reduction <add>, %182, %cst_83 [1] : vector<32x128xf32> to vector<32xf32>
    %184 = vector.shape_cast %183 : vector<32xf32> to vector<32x1xf32>
    %cst_84 = arith.constant 1.000000e-24 : f32
    %185 = vector.broadcast %cst_84 : f32 to vector<32x1xf32>
    %186 = arith.maximumf %184, %185 : vector<32x1xf32>
    %187 = math.rsqrt %186 : vector<32x1xf32>
    %188 = vector.broadcast %187 : vector<32x1xf32> to vector<32x128xf32>
    %189 = arith.mulf %181, %188 : vector<32x128xf32>
    %190 = arith.truncf %189 : vector<32x128xf32> to vector<32x128xbf16>
    %c0_85 = arith.constant 0 : index
    %c0_86 = arith.constant 0 : index
    %191 = vector.load %arg10[%c0_85, %c0_86] : memref<32x128xbf16, #tpu.memory_space<vmem>>, vector<32x128xbf16>
    tpu.vector_store %arg10[%c0_85, %c0_86], %190 {strides = array<i32>} : memref<32x128xbf16, #tpu.memory_space<vmem>>, vector<32x128xbf16>,
    return
  }
  func.func @transform_0(%arg0: i32) -> (i32, i32) {
    %c0_i32 = arith.constant 0 : i32
    %c0_i32_0 = arith.constant 0 : i32
    return %arg0, %c0_i32 : i32, i32
  }
  func.func @transform_1(%arg0: i32) -> (i32, i32) {
    %c0_i32 = arith.constant 0 : i32
    %c0_i32_0 = arith.constant 0 : i32
    %c0_i32_1 = arith.constant 0 : i32
    return %c0_i32, %c0_i32_0 : i32, i32
  }
  func.func @transform_2(%arg0: i32) -> (i32, i32, i32) {
    %c0_i32 = arith.constant 0 : i32
    %c0_i32_0 = arith.constant 0 : i32
    %c0_i32_1 = arith.constant 0 : i32
    %c0_i32_2 = arith.constant 0 : i32
    return %c0_i32, %c0_i32_0, %c0_i32_1 : i32, i32, i32
  }
  func.func @transform_3(%arg0: i32) -> (i32, i32, i32) {
    %c0_i32 = arith.constant 0 : i32
    %c0_i32_0 = arith.constant 0 : i32
    %c0_i32_1 = arith.constant 0 : i32
    %c0_i32_2 = arith.constant 0 : i32
    return %c0_i32, %c0_i32_0, %c0_i32_1 : i32, i32, i32
  }
  func.func @transform_4(%arg0: i32) -> (i32, i32, i32) {
    %c0_i32 = arith.constant 0 : i32
    %c0_i32_0 = arith.constant 0 : i32
    %c0_i32_1 = arith.constant 0 : i32
    %c0_i32_2 = arith.constant 0 : i32
    return %c0_i32, %c0_i32_0, %c0_i32_1 : i32, i32, i32
  }
  func.func @transform_5(%arg0: i32) -> (i32, i32) {
    %c0_i32 = arith.constant 0 : i32
    %c0_i32_0 = arith.constant 0 : i32
    %c0_i32_1 = arith.constant 0 : i32
    return %c0_i32, %c0_i32_0 : i32, i32
  }
  func.func @transform_6(%arg0: i32) -> (i32, i32, i32) {
    %c0_i32 = arith.constant 0 : i32
    %c0_i32_0 = arith.constant 0 : i32
    %c0_i32_1 = arith.constant 0 : i32
    %c0_i32_2 = arith.constant 0 : i32
    return %c0_i32, %c0_i32_0, %c0_i32_1 : i32, i32, i32
  }
  func.func @transform_7(%arg0: i32) -> (i32, i32) {
    %c0_i32 = arith.constant 0 : i32
    %c0_i32_0 = arith.constant 0 : i32
    %c0_i32_1 = arith.constant 0 : i32
    return %c0_i32, %c0_i32_0 : i32, i32
  }
  func.func @transform_8(%arg0: i32) -> (i32, i32) {
    %c0_i32 = arith.constant 0 : i32
    %c0_i32_0 = arith.constant 0 : i32
    %c0_i32_1 = arith.constant 0 : i32
    return %c0_i32, %c0_i32_0 : i32, i32
  }
  func.func @transform_9(%arg0: i32) -> (i32, i32) {
    %c0_i32 = arith.constant 0 : i32
    %c0_i32_0 = arith.constant 0 : i32
    return %arg0, %c0_i32 : i32, i32
  }
}

</mosaic_0001>

<bundles_post_ra>
// kernel: tpu_custom_call.1
= control target key start
LH: loop header
LB: loop body
LE: loop exit
PB: predicated region body
PF: predicated region fallthrough
CT: control target
= control target key end

     0   :  { %s8865_s0 = inlined_call_operand.hbm [shape: bf16[96,112], index: 0, kind: input, shape index: {}]   ;;  %s8866_s1 = inlined_call_operand.hbm [shape: bf16[112,256], index: 1, kind: input, shape index: {}]   ;;  %s8867_s2 = inlined_call_operand.hbm [shape: bf16[2,256,256], index: 2, kind: input, shape index: {}]   ;;  %s8868_s3 = inlined_call_operand.hbm [shape: bf16[2,256,1024], index: 3, kind: input, shape index: {}]   ;;  %s8869_s4 = inlined_call_operand.hbm [shape: bf16[2,1024,256], index: 4, kind: input, shape index: {}]   ;;  %s8870_s5 = inlined_call_operand.hbm [shape: bf16[256,128], index: 5, kind: input, shape index: {}]   ;;  %s8871_s6 = inlined_call_operand.vmem [shape: bf16[2,1,1024], index: 6, kind: input, shape index: {}]   ;;  %s8872_s7 = inlined_call_operand.vmem [shape: f32[16,256], index: 7, kind: input, shape index: {}]   ;;  %s8873_s8 = inlined_call_operand.hbm [shape: f32[8,128], index: 8, kind: input, shape index: {}]   ;;  %s8874_s9 = inlined_call_operand.hbm [shape: bf16[96,128], index: 9, kind: output, shape index: {}]  }
   0x1   :  { %8881 = sst [smem:[#allocation20_spill]] %s8866_s1 }
   0x2   :  { %8882 = sst [smem:[#allocation21_spill]] %s8867_s2 }
   0x3   :  { %8883 = sst [smem:[#allocation22_spill]] %s8868_s3 }
   0x4   :  { %14 = vsyncpa [#allocation3], 0 }
   0x5   :  { %16 = vsyncpa [#allocation3 + $0x1], 0 }
   0x6   :  { %17 = vsyncpa [#allocation6], 0 }
   0x7   :  { %18 = vsyncpa [#allocation9], 0 }
   0x8   :  { %19 = vsyncpa [#allocation12], 0 }
   0x9   :  { %20 = vsyncpa [#allocation4], 0 }
   0xa   :  { %22 = vsyncpa [#allocation4 + $0x1], 0  ;;  %s8044_s30 = smov 0   ;;  %s8046_s10 = smov 0  }
   0xb   :  { %s8048_s11 = smov 0   ;;  %s8050_s12 = smov 0  }
   0xc LB: > { %s7976_s13 = smov [#allocation5]   ;;  %s8065_s15 = sadd.s32 4294967295, %s7974_s12   ;;  %s7974_s12 = sphi %s8050_s12, %s8910_s12   ;;  %s7970_s11 = sphi %s8048_s11, %s8909_s11   ;;  %s7966_s10 = sphi %s8046_s10, %s8908_s10   ;;  %s7962_s30 = sphi %s8044_s30, %s8907_s30  }
   0xd   : > { %s265_s14 = sshll.u32 %s7976_s13, 4  ;;  %p6328_p0 = scmp.ge.s32.totalorder %s7974_s12, 1  ;;  %s266_s14 = int_to_ptr.vmem [resolvable:$true] %s265_s14 }
   0xe   : > { %p8877_p1 = scmp.eq.s32.totalorder %s8065_s15, 0  ;;  %p253_p2 = scmp.lt.s32.totalorder %s7974_s12, 4 }
   0xf   : > { %s7977_s17 = smov [#allocation8]   ;;  %s7978_s20 = smov [#allocation11]  }
  0x10   : > { %p8070_p3 = pnand %p6328_p0, %p253_p2  ;;  %s291_s18 = sshll.u32 %s7977_s17, 4  ;;  %s8082_s18 = int_to_ptr.vmem [resolvable:$true] %s291_s18 }
  0x11   : > { %s8084_s21 = sshll.u32 %s7978_s20, 4  ;;  %s7725_s23 = scalar_lea.vmem %s266_s14, 1792  ;;  %s318_s21 = int_to_ptr.vmem [resolvable:$true] %s8084_s21 }
  0x12   : > { %s8884_s16 = scalar_select %p8070_p3, 1, 0 }
  0x13   : > { %p7056_p4 = pneg %p8070_p3  ;;  %p7726_p7 = scmp.ne.s32.totalorder %s266_s14, %s7725_s23 }
  0x14   : > { %p7733_p10 = scmp.lt.s32.totalorder %s266_s14, %s266_s14  ;;  %p7734_p11 = scmp.lt.s32.totalorder %s7725_s23, %s7725_s23 }
  0x15   : > { %p8078_p5 = pnand %p7056_p4, %p8877_p1 }
  0x16   : > { %p7735_p12 = por %p7734_p11, %p7733_p10 }
  0x17   : > { %p8088_p6 = pneg %p8078_p5 }
  0x19   : > { %p7728_p8 = pnand %p7726_p7, %p8088_p6 }
  0x1b   : > { %p7729_p9 = pneg %p7728_p8 }
  0x1d   : > { %p7736_p13 = pnand %p7735_p12, %p7729_p9 }
  0x1f   : > { %7739 = shalt.err (!%p7736_p13)
}
  0x20   : > { %s7979_s24 = smov 128   ;;  %s7980_s25 = smov 8  }
  0x21   : > { %s8887_s1 = sld [smem:[#allocation20_spill]]  ;;  %s7751_s28 = scalar_lea.vmem %s8082_s18, 32768 }
  0x22   : > { %p7752_p0 = scmp.ne.s32.totalorder %s8082_s18, %s7751_s28  ;;  %p7759_p7 = scmp.lt.s32.totalorder %s8082_s18, %s8082_s18 }
  0x23   : > { %p7760_p8 = scmp.lt.s32.totalorder %s7751_s28, %s7751_s28 }
  0x24   : > { %p7754_p2 = pnand %p7752_p0, %p8088_p6 }
  0x25   : > { %p7761_p9 = por %p7760_p8, %p7759_p7 }
  0x26   : > { %p7755_p4 = pneg %p7754_p2 }
  0x27   : > { %7059 = dma.hbm_to_vmem [thread:$0]  (!%p8078_p5), %s8887_s1, 1792, %s266_s14, [#allocation6], %s7979_s24, %s7979_s24, %s7980_s25  }
  0x28   : > { %p7762_p10 = pnand %p7761_p9, %p7755_p4 }
  0x2a   : > { %7765 = shalt.err (!%p7762_p10)
}
  0x2b   : > { %s7981_s29 = smov 512   ;;  %s7982_s13 = smov 32  }
  0x2c   : > { %s8888_s3 = sld [smem:[#allocation22_spill]]  ;;  %s7777_s20 = scalar_lea.vmem %s318_s21, 2048 }
  0x2d   : > { %p7778_p11 = scmp.ne.s32.totalorder %s318_s21, %s7777_s20  ;;  %p7785_p0 = scmp.lt.s32.totalorder %s318_s21, %s318_s21 }
  0x2e   : > { %p7786_p2 = scmp.lt.s32.totalorder %s7777_s20, %s7777_s20 }
  0x2f   : > { %p7780_p12 = pnand %p7778_p11, %p8088_p6 }
  0x30   : > { %p7787_p4 = por %p7786_p2, %p7785_p0 }
  0x31   : > { %p7781_p13 = pneg %p7780_p12 }
  0x32   : > { %7065 = dma.hbm_to_vmem [thread:$0]  (!%p8078_p5), %s8888_s3, 32768, %s8082_s18, [#allocation9], %s7981_s29, %s7981_s29, %s7982_s13  }
  0x33   : > { %p7788_p7 = pnand %p7787_p4, %p7781_p13 }
  0x35   : > { %7791 = shalt.err (!%p7788_p7)
}
  0x36   : > { %s8875_s23 = smov 64   ;;  %s8876_s26 = smov 4  }
  0x37   : > { %7071 = dma.hbm_to_vmem [thread:$0]  (!%p8078_p5), %s8870_s5, 2048, %s318_s21, [#allocation12], %s8875_s23, %s8875_s23, %s8876_s26  }
  0x38   : > { %s7985_s28 = smov [#allocation7]   ;;  %s7986_s13 = smov [#allocation10]  }
  0x39   : > { %s278_s29 = sshll.u32 %s7985_s28, 4  ;;  %s304_s17 = sshll.u32 %s7986_s13, 4  ;;  %s279_s29 = int_to_ptr.vmem [resolvable:$true] %s278_s29  ;;  %s305_s17 = int_to_ptr.vmem [resolvable:$true] %s304_s17 }
  0x3a   : > { %s7803_s14 = scalar_lea.vmem %s279_s29, 8192  ;;  %p7811_p11 = scmp.lt.s32.totalorder %s279_s29, %s279_s29 }
  0x3b   : > { %p7804_p8 = scmp.ne.s32.totalorder %s279_s29, %s7803_s14  ;;  %p7812_p12 = scmp.lt.s32.totalorder %s7803_s14, %s7803_s14 }
  0x3d   : > { %p7806_p9 = pnand %p7804_p8, %p8088_p6  ;;  %p7813_p13 = por %p7812_p12, %p7811_p11 }
  0x3f   : > { %p7807_p10 = pneg %p7806_p9 }
  0x41   : > { %p7814_p0 = pnand %p7813_p13, %p7807_p10 }
  0x43   : > { %7817 = shalt.err (!%p7814_p0)
}
  0x44   : > { %s8889_s2 = sld [smem:[#allocation21_spill]]  ;;  %s7829_s18 = scalar_lea.vmem %s305_s17, 32768 }
  0x45   : > { %p7830_p2 = scmp.ne.s32.totalorder %s305_s17, %s7829_s18  ;;  %p7837_p8 = scmp.lt.s32.totalorder %s305_s17, %s305_s17 }
  0x46   : > { %p7838_p9 = scmp.lt.s32.totalorder %s7829_s18, %s7829_s18 }
  0x47   : > { %p7832_p4 = pnand %p7830_p2, %p8088_p6 }
  0x48   : > { %p7839_p10 = por %p7838_p9, %p7837_p8 }
  0x49   : > { %p7833_p7 = pneg %p7832_p4 }
  0x4a   : > { %7062 = dma.hbm_to_vmem [thread:$0]  (!%p8078_p5), %s8889_s2, 8192, %s279_s29, [#allocation6], %s7979_s24, %s7979_s24, %s7980_s25  }
  0x4b   : > { %p7840_p11 = pnand %p7839_p10, %p7833_p7 }
  0x4d   : > { %7843 = shalt.err (!%p7840_p11)
}
  0x4e   : > { %7068 = dma.hbm_to_vmem [thread:$0]  (!%p8078_p5), %s8869_s4, 32768, %s305_s17, [#allocation9], %s7979_s24, %s7979_s24, %s7980_s25  }
  0x4f   : > { %s7987_s29 = smov [#allocation13]  }
  0x50   : > { %s337_s13 = sshll.u32 %s7987_s29, 4  ;;  %s338_s13 = int_to_ptr.vmem [resolvable:$true] %s337_s13 }
  0x51   : > { %s7855_s14 = scalar_lea.vmem %s338_s13, 128  ;;  %p7863_p2 = scmp.lt.s32.totalorder %s338_s13, %s338_s13 }
  0x52   : > { %p7856_p12 = scmp.ne.s32.totalorder %s338_s13, %s7855_s14  ;;  %p7864_p4 = scmp.lt.s32.totalorder %s7855_s14, %s7855_s14 }
  0x54   : > { %p7858_p13 = pnand %p7856_p12, %p8088_p6  ;;  %p7865_p7 = por %p7864_p4, %p7863_p2 }
  0x56   : > { %p7859_p0 = pneg %p7858_p13 }
  0x58   : > { %p7866_p8 = pnand %p7865_p7, %p7859_p0 }
  0x5a   : > { %7869 = shalt.err (!%p7866_p8)
}
  0x5b   : > { %7074 = dma.hbm_to_vmem [thread:$0]  (!%p8078_p5), %s8873_s8, 128, %s338_s13, [#allocation12]  }
  0x5c   : > { %s6327_s22 = sadd.s32 4294967294, %s7974_s12   ;;  %s8154_s19 = sadd.s32 1, %s7974_s12  }
  0x5d   : > { %s32_s24 = ssub.s32 %s7974_s12, %s8154_s19  ;;  %s35_s25 = sadd.s32 1, %s7970_s11 }
  0x5e   : > { %p33_p6 = scmp.eq.s32.totalorder %s32_s24, 0  ;;  %p42_p9 = scmp.ne.s32.totalorder %s7970_s11, %s7966_s10 }
  0x5f   : > { %p43_p10 = scmp.eq.s32.totalorder %s7974_s12, 0  ;;  %p48_p11 = scmp.ne.s32.totalorder %s7966_s10, %s7962_s30 }
  0x60   : > { %s8165_s17 = scalar_select %p33_p6, %s7970_s11, %s35_s25  }
  0x61   : > { %p8167_p12 = por %p43_p10, %p42_p9  ;;  %p8173_p5 = por %p8877_p1, %p48_p11 }
  0x62   : > { %p240_p13 = scmp.eq.s32.totalorder %s8065_s15, 2  ;;  %p246_p0 = scmp.eq.s32.totalorder %s6327_s22, 2 }
  0x63   : > { %s8891_s27 = scalar_select %p8173_p5, 1, 0 }
  0x64   : > { %p7089_p2 = scmp.lt.s32.totalorder %s7974_s12, 3  ;;  %s348_s28 = sand.u32 1, %s7970_s11  }
  0x65   : > { %p8180_p4 = por %p240_p13, %p42_p9  ;;  %p8184_p7 = por %p246_p0, %p48_p11 }
  0x66   : > { %s6336_s14 = sshll.u32 %s348_s28, 4  ;;  %s6983_s21 = sshll.u32 %s7974_s12, 8 }
  0x67   : > { %s8892_s29 = scalar_select %p8180_p4, 1, 0 }
  0x68   : > { %s8893_s13 = scalar_select %p8184_p7, 1, 0 }
  0x69   : > { %s8192_s25 = scalar_lea.hbm %s8865_s0, %s6983_s21  ;;  %s352_s22 = scalar_lea.vmem [#allocation2], %s6336_s14 }
  0x6a   : > { %s359_s23 = sshll.u32 %s352_s22, 4  ;;  %p8198_p8 = pnand %p7089_p2, %p8167_p12  ;;  %s8194_s23 = int_to_ptr.vmem [resolvable:$true] %s359_s23 }
  0x6b   : > { %s8202_s1 = scalar_lea.sflag [#allocation3], %s348_s28  ;;  %s7870_s2 = scalar_lea.hbm %s8192_s25, 256 }
  0x6c   : > { %p7871_p6 = scmp.ne.s32.totalorder %s8192_s25, %s7870_s2  ;;  %p7872_p9 = pneg %p8198_p8 }
  0x6d   : > { %s7875_s14 = scalar_lea.hbm %s8865_s0, 768  ;;  %p7876_p12 = scmp.lt.s32.totalorder %s8192_s25, %s8865_s0 }
  0x6e   : > { %p7873_p10 = pnand %p7872_p9, %p7871_p6  ;;  %p7877_p13 = scmp.lt.s32.totalorder %s7875_s14, %s7870_s2 }
  0x70   : > { %p7874_p11 = pneg %p7873_p10  ;;  %p7878_p0 = por %p7877_p13, %p7876_p12 }
  0x72   : > { %p7879_p2 = pnand %p7878_p0, %p7874_p11 }
  0x74   : > { %7882 = shalt.err (!%p7879_p2)
}
  0x75   : > { %s7883_s18 = scalar_lea.vmem %s8194_s23, 256  ;;  %s7988_s28 = smov [#allocation2]  }
  0x76   : > { %p7884_p1 = scmp.ne.s32.totalorder %s8194_s23, %s7883_s18  ;;  %s7888_s3 = sshll.u32 %s7988_s28, 4  ;;  %s7889_s3 = int_to_ptr.vmem [resolvable:$false] %s7888_s3 }
  0x77   : > { %s7890_s21 = scalar_lea.vmem %s7889_s3, 512  ;;  %p7891_p10 = scmp.lt.s32.totalorder %s8194_s23, %s7889_s3 }
  0x78   : > { %p7886_p7 = pnand %p7884_p1, %p7872_p9  ;;  %p7892_p4 = scmp.lt.s32.totalorder %s7890_s21, %s7883_s18 }
  0x7a   : > { %p7887_p6 = pneg %p7886_p7  ;;  %p7893_p5 = por %p7892_p4, %p7891_p10 }
  0x7c   : > { %p7894_p3 = pnand %p7893_p5, %p7887_p6 }
  0x7e   : > { %7897 = shalt.err (!%p7894_p3)
}
  0x7f   : > { %s8895_s2 = smov 4   ;;  %s8896_s20 = smov 64  }
  0x80   : > { %7078 = dma.hbm_to_vmem [thread:$0]  (!%p8198_p8), %s8192_s25, 256, %s8194_s23, %s8202_s1, %s8896_s20, %s8896_s20, %s8895_s2  }
  0x81   : > { %p8897_p1 = scmp.ne.s32.totalorder %s8884_s16, 0 }
  0x82   : > { %s8229_s14 = sand.u32 (!%p8897_p1), 1, %s7966_s10   ;;  %p8898_p3 = scmp.ne.s32.totalorder (!%p8897_p1), %s8891_s27, 0 }
  0x83   : > { %371 = sbr.rel (%p8897_p1) target bundleno = 3702 (0xe76), region = 56  ;;  %s6340_s3 = sshll.u32 (!%p8897_p1), %s8229_s14, 4 }
  0x84   : > { %s374_s24 = scalar_lea.sflag (!%p8897_p1), [#allocation3], %s8229_s14  ;;  %s8235_s26 = scalar_lea.vmem (!%p8897_p1), [#allocation2], %s6340_s3 }
  0x88   : > { %7941 = dma.done.wait (%p8898_p3), %s374_s24, 256  }
  0x89   : > { %7943 = vsyncadd (%p8898_p3), %s374_s24, 4294967040  ;;  %p8899_p5 = scmp.eq.s32.totalorder %s8065_s15, 0 }
  0x8b   : > { %7945 = dma.done.wait (%p8899_p5), [#allocation6], 9984   ;;  %p8900_p4 = pmov %p8899_p5 }
  0x8d   : > { %7947 = vsyncadd (%p8900_p4), [#allocation6], 4294957312  ;;  %p8901_p7 = pmov %p8900_p4 }
  0x8e   : > { %p8902_p8 = pmov %p8900_p4 }
  0x8f   : > { %7949 = dma.done.wait (%p8901_p7), [#allocation9], 65536  }
  0x90   : > { %7951 = vsyncadd (%p8902_p8), [#allocation9], 4294901760  ;;  %p8903_p9 = pmov %p8900_p4 }
  0x91   : > { %p8904_p11 = pmov %p8900_p4 }
  0x92   : > { %7953 = dma.done.wait (%p8903_p9), [#allocation12], 2176  }
  0x93   : > { %7955 = vsyncadd (%p8904_p11), [#allocation12], 4294965120  ;;  %v7989_v0 = vmov 0   ;;  %v7145_v1 = vld [vmem:[#allocation5 + $0x64] ss:$8 sps:$4 sm:$0xff]   ;;  %vm549_vm0 = vcmask 916480   ;;  %v459_v49 = vlaneseq }
  0x94   : > { %588 = vmatprep.mubr.bf16.mxu0 %v7989_v0  ;;  %v7147_v2 = vld [vmem:[#allocation5 + $0x60] ss:$8 sps:$4 sm:$0xff]   ;;  %558 = vmatprep.subr.bf16.mxu0 %v7145_v1  ;;  %v7148_v3 = vld [vmem:[#allocation5 + $0x54] ss:$8 sps:$4 sm:$0xff]   ;;  %v7150_v4 = vld [vmem:[#allocation5 + $0x50] ss:$8 sps:$4 sm:$0xff]  }
  0x95   : > { %559 = vmatpush1.bf16.msra.mxu0 %v7147_v2  ;;  %v7151_v5 = vld [vmem:[#allocation5 + $0x44] ss:$8 sps:$4 sm:$0xff]   ;;  %v7153_v6 = vld [vmem:[#allocation5 + $0x40] ss:$8 sps:$4 sm:$0xff]   ;;  %v7154_v7 = vld [vmem:[#allocation5 + $0x34] ss:$8 sps:$4 sm:$0xff]  }
  0x96   : > { %560 = vmatprep.subr.bf16.mxu0 %v7148_v3  ;;  %v7156_v8 = vld [vmem:[#allocation5 + $0x30] ss:$8 sps:$4 sm:$0xff]   ;;  %v7157_v9 = vld [vmem:[#allocation5 + $0x24] ss:$8 sps:$4 sm:$0xff]   ;;  %v7170_v11 = vld [vmem:[#allocation7 + $0x70] ss:$8 sps:$4 sm:$0xff]  }
  0x97   : > { %v7168_v10 = vld [vmem:[#allocation7 + $0x74] ss:$8 sps:$4 sm:$0xff]   ;;  %v7171_v12 = vld [vmem:[#allocation7 + $0x64] ss:$8 sps:$4 sm:$0xff]   ;;  %v7159_v13 = vld [vmem:[#allocation5 + $0x20] ss:$8 sps:$4 sm:$0xff]  }
  0x98   : > { %828 = vmatprep.subr.bf16.mxu1 %v7168_v10  ;;  %v7173_v14 = vld [vmem:[#allocation7 + $0x60] ss:$8 sps:$4 sm:$0xff]   ;;  %v7160_v15 = vld [vmem:[#allocation5 + $0x14] ss:$8 sps:$4 sm:$0xff]   ;;  %v7174_v16 = vld [vmem:[#allocation7 + $0x54] ss:$8 sps:$4 sm:$0xff]  }
  0x99   : > { %561 = vmatpush1.bf16.msra.mxu0 %v7150_v4  ;;  %829 = vmatpush1.bf16.msra.mxu1 %v7170_v11  ;;  %v7162_v17 = vld [vmem:[#allocation5 + $0x10] ss:$8 sps:$4 sm:$0xff]   ;;  %v7176_v18 = vld [vmem:[#allocation7 + $0x50] ss:$8 sps:$4 sm:$0xff]   ;;  %v7163_v19 = vld [vmem:[#allocation5 + $0x4] ss:$8 sps:$4 sm:$0xff]  }
  0x9a   : > { %562 = vmatprep.subr.bf16.mxu0 %v7151_v5  ;;  %830 = vmatprep.subr.bf16.mxu1 %v7171_v12  ;;  %v7177_v20 = vld [vmem:[#allocation7 + $0x44] ss:$8 sps:$4 sm:$0xff]   ;;  %v7165_v21 = vld [vmem:[#allocation5] ss:$8 sps:$4 sm:$0xff]   ;;  %v7179_v22 = vld [vmem:[#allocation7 + $0x40] ss:$8 sps:$4 sm:$0xff]  }
  0x9b   : > { %v7180_v23 = vld [vmem:[#allocation7 + $0x34] ss:$8 sps:$4 sm:$0xff]   ;;  %v7182_v25 = vld [vmem:[#allocation7 + $0x30] ss:$8 sps:$4 sm:$0xff]   ;;  %v7183_v26 = vld [vmem:[#allocation7 + $0x24] ss:$8 sps:$4 sm:$0xff]  }
  0x9c   : > { %v7166_v24 = vld [vmem:[%s8235_s26] sm:$0xff]   ;;  %v7167_v29 = vld [vmem:[%s8235_s26 + $0x8] sm:$0xff]   ;;  %v8259_v50 = vshrl.u32 %v459_v49, 7  ;;  %s435_s25 = scalar_lea.vmem [#allocation14], %s6340_s3  ;;  %s6988_s22 = sshll.u32 %s8065_s15, 8 }
  0x9d   : > { %563 = vmatpush1.bf16.msra.mxu0 %v7153_v6  ;;  %831 = vmatpush1.bf16.msra.mxu1 %v7173_v14  ;;  %v7185_v27 = vld [vmem:[#allocation7 + $0x20] ss:$8 sps:$4 sm:$0xff]   ;;  %v7186_v28 = vld [vmem:[#allocation7 + $0x14] ss:$8 sps:$4 sm:$0xff]   ;;  %v7188_v30 = vld [vmem:[#allocation7 + $0x10] ss:$8 sps:$4 sm:$0xff]   ;;  %s8821_s2 = scalar_lea.hbm %s8874_s9, %s6988_s22 }
  0x9e   : > { %564 = vmatprep.subr.bf16.mxu0 %v7154_v7  ;;  %832 = vmatprep.subr.bf16.mxu1 %v7174_v16  ;;  %v7189_v31 = vld [vmem:[#allocation7 + $0x4] ss:$8 sps:$4 sm:$0xff]   ;;  %v7191_v32 = vld [vmem:[#allocation7] ss:$8 sps:$4 sm:$0xff]   ;;  %v7192_v33 = vld [vmem:[#allocation7 + $0xf4] ss:$8 sps:$4 sm:$0xff]  }
  0x9f   : > { %v7194_v34 = vld [vmem:[#allocation7 + $0xf0] ss:$8 sps:$4 sm:$0xff]   ;;  %v7195_v35 = vld [vmem:[#allocation7 + $0xe4] ss:$8 sps:$4 sm:$0xff]   ;;  %v7197_v36 = vld [vmem:[#allocation7 + $0xe0] ss:$8 sps:$4 sm:$0xff]  }
  0xa0   : > { %v7198_v37 = vld [vmem:[#allocation7 + $0xd4] ss:$8 sps:$4 sm:$0xff]   ;;  %v7200_v38 = vld [vmem:[#allocation7 + $0xd0] ss:$8 sps:$4 sm:$0xff]   ;;  %v7201_v39 = vld [vmem:[#allocation7 + $0xc4] ss:$8 sps:$4 sm:$0xff]  }
  0xa1   : > { %565 = vmatpush1.bf16.msra.mxu0 %v7156_v8  ;;  %833 = vmatpush1.bf16.msra.mxu1 %v7176_v18  ;;  %v7203_v40 = vld [vmem:[#allocation7 + $0xc0] ss:$8 sps:$4 sm:$0xff]   ;;  %v7204_v41 = vld [vmem:[#allocation7 + $0xb4] ss:$8 sps:$4 sm:$0xff]   ;;  %v7206_v42 = vld [vmem:[#allocation7 + $0xb0] ss:$8 sps:$4 sm:$0xff]  }
  0xa2   : > { %566 = vmatprep.subr.bf16.mxu0 %v7157_v9  ;;  %834 = vmatprep.subr.bf16.mxu1 %v7177_v20  ;;  %v7207_v43 = vld [vmem:[#allocation7 + $0xa4] ss:$8 sps:$4 sm:$0xff]   ;;  %v7209_v44 = vld [vmem:[#allocation7 + $0xa0] ss:$8 sps:$4 sm:$0xff]   ;;  %v7210_v45 = vld [vmem:[#allocation7 + $0x94] ss:$8 sps:$4 sm:$0xff]  }
  0xa3   : > { %v7212_v46 = vld [vmem:[#allocation7 + $0x90] ss:$8 sps:$4 sm:$0xff]   ;;  %v7213_v47 = vld [vmem:[#allocation7 + $0x84] ss:$8 sps:$4 sm:$0xff]   ;;  %v7215_v48 = vld [vmem:[#allocation7 + $0x80] ss:$8 sps:$4 sm:$0xff]  }
  0xa4   : > { %v8262_v51 = vsub.s32 1, %v8259_v50  ;;  %v8265_v52 = vsub.s32 0, %v8259_v50  ;;  %v443_v54 = vld [vmem:[%s8872_s7] ss:$8 sm:$0x3]  ;;  %s6197_s18 = sshll.u32 %s435_s25, 4  ;;  %s8823_s18 = int_to_ptr.vmem [resolvable:$true] %s6197_s18 }
  0xa5   : > { %567 = vmatpush1.bf16.msra.mxu0 %v7159_v13  ;;  %835 = vmatpush1.bf16.msra.mxu1 %v7179_v22  ;;  %v6366_v13 = vld [vmem:[%s8872_s7 + $0x1] ss:$8 sm:$0x3]  ;;  %s6184_s3 = scalar_lea.sflag [#allocation4], %s8229_s14  ;;  %s7898_s20 = scalar_lea.vmem %s8823_s18, 256 }
  0xa6   : > { %568 = vmatprep.subr.bf16.mxu0 %v7160_v15  ;;  %836 = vmatprep.subr.bf16.mxu1 %v7180_v23  ;;  %v466_v56 = vrot.slane %v443_v54, %v8262_v51  ;;  %v462_v57 = vrot.slane %v443_v54, %v8265_v52  ;;  %v661_v15 = vrot.slane %v6366_v13, %v8265_v52  ;;  %p7899_p12 = scmp.ne.s32.totalorder %s8823_s18, %s7898_s20  ;;  %p8905_p13 = scmp.ne.s32.totalorder %s8892_s29, 0 }
  0xa7   : > { %s7991_s15 = smov [#allocation14]  }
  0xa8   : > { %p7900_p0 = pnand %p7899_p12, %p8905_p13  ;;  %s7902_s24 = sshll.u32 %s7991_s15, 4  ;;  %s7903_s24 = int_to_ptr.vmem [resolvable:$false] %s7902_s24 }
  0xa9   : > { %569 = vmatpush1.bf16.msra.mxu0 %v7162_v17  ;;  %837 = vmatpush1.bf16.msra.mxu1 %v7182_v25  ;;  %v665_v17 = vrot.slane %v6366_v13, %v8262_v51  ;;  %s7904_s26 = scalar_lea.vmem %s7903_s24, 512  ;;  %p7905_p6 = scmp.lt.s32.totalorder %s8823_s18, %s7903_s24 }
  0xaa   : > { %570 = vmatprep.subr.bf16.mxu0 %v7163_v19  ;;  %838 = vmatprep.subr.bf16.mxu1 %v7183_v26  ;;  %p7901_p2 = pneg %p7900_p0  ;;  %p7906_p10 = scmp.lt.s32.totalorder %s7904_s26, %s7898_s20 }
  0xac   : > { %p7907_p1 = por %p7906_p10, %p7905_p6 }
  0xad   : > { %571 = vmatpush1.bf16.msra.mxu0 %v7165_v21  ;;  %839 = vmatpush1.bf16.msra.mxu1 %v7185_v27 }
  0xae   : > { %840 = vmatprep.subr.bf16.mxu1 %v7186_v28  ;;  %p7908_p3 = pnand %p7907_p1, %p7901_p2 }
  0xb0   : > { %6364 = vmatmul.mubr.msk.bf16.vlgmr.msra.gmra.mxu0 %vm549_vm0, %v7166_v24 }
  0xb1   : > { %598 = vmatprep.mubr.bf16.mxu0 %v7989_v0  ;;  %841 = vmatpush1.bf16.msra.mxu1 %v7188_v30 }
  0xb2   : > { %842 = vmatprep.subr.bf16.mxu1 %v7189_v31 }
  0xb5   : > { %843 = vmatpush1.bf16.msra.mxu1 %v7191_v32 }
  0xb6   : > { %844 = vmatprep.subr.bf16.mxu1 %v7192_v33 }
  0xb8   : > { %6365 = vmatmul.mubr.msk.bf16.gmra.mxu0 %vm549_vm0, %v7167_v29 }
  0xb9   : > { %845 = vmatpush2.bf16.msra.mxu1 %v7194_v34 }
  0xba   : > { %846 = vmatprep.subr.bf16.mxu1 %v7195_v35 }
  0xbd   : > { %847 = vmatpush2.bf16.msra.mxu1 %v7197_v36 }
  0xbe   : > { %848 = vmatprep.subr.bf16.mxu1 %v7198_v37 }
  0xc1   : > { %849 = vmatpush2.bf16.msra.mxu1 %v7200_v38 }
  0xc2   : > { %850 = vmatprep.subr.bf16.mxu1 %v7201_v39 }
  0xc5   : > { %851 = vmatpush2.bf16.msra.mxu1 %v7203_v40 }
  0xc6   : > { %852 = vmatprep.subr.bf16.mxu1 %v7204_v41 }
  0xc9   : > { %853 = vmatpush2.bf16.msra.mxu1 %v7206_v42 }
  0xca   : > { %854 = vmatprep.subr.bf16.mxu1 %v7207_v43 }
  0xcd   : > { %855 = vmatpush2.bf16.msra.mxu1 %v7209_v44 }
  0xce   : > { %856 = vmatprep.subr.bf16.mxu1 %v7210_v45 }
  0xd1   : > { %857 = vmatpush2.bf16.msra.mxu1 %v7212_v46 }
  0xd2   : > { %858 = vmatprep.subr.bf16.mxu1 %v7213_v47 }
  0xd5   : > { %859 = vmatpush2.bf16.msra.mxu1 %v7215_v48 }
 0x170   : > { %v590_v53 = vpop.f32.mrf.mxu0 }
 0x171   : > { %v591_v63 = vadd.f32 %v590_v53, %v462_v57 }
 0x172   : > { %v592_v55 = vpop.f32.mrf.mxu0 }
 0x173   : > { %v593_v61 = vadd.f32 %v592_v55, %v466_v56  ;;  %v1060_v55 = vld [vmem:[#allocation8 + $0x1c0] sm:$0xff] }
 0x174   : > { %v594_v58 = vpop.f32.mrf.mxu0 }
 0x175   : > { %v595_v59 = vadd.f32 %v594_v58, %v462_v57 }
 0x176   : > { %v596_v60 = vpop.f32.mrf.mxu0 }
 0x177   : > { %v597_v62 = vadd.f32 %v596_v60, %v466_v56  ;;  %v609_v3 = vpack.c.bf16 %v595_v59, %v591_v63  ;;  %v1065_v60 = vld [vmem:[#allocation8 + $0x1e8] sm:$0xff] }
 0x178   : > { %v600_v1 = vpop.f32.mrf.mxu0 }
 0x179   : > { %v610_v2 = vpack.c.bf16 %v597_v62, %v593_v61  ;;  %v601_v5 = vadd.f32 %v600_v1, %v462_v57  ;;  %v1052_v61 = vld [vmem:[#allocation8 + $0x180] sm:$0xff] }
 0x17a   : > { %v602_v4 = vpop.f32.mrf.mxu0  ;;  %v1056_v62 = vld [vmem:[#allocation8 + $0x1a0] sm:$0xff] }
 0x17b   : > { %860 = vmatprep.mubr.bf16.mxu1 %v610_v2  ;;  %v603_v7 = vadd.f32 %v602_v4, %v466_v56  ;;  %v1057_v4 = vld [vmem:[#allocation8 + $0x1a8] sm:$0xff] }
 0x17c   : > { %v604_v6 = vpop.f32.mrf.mxu0  ;;  %861 = vmatmul.mubr.bf16.vlgmr.msra.gmra.mxu1 %v609_v3 }
 0x17d   : > { %v605_v8 = vadd.f32 %v604_v6, %v462_v57  ;;  %v1061_v57 = vld [vmem:[#allocation8 + $0x1c8] sm:$0xff] }
 0x17e   : > { %v606_v9 = vpop.f32.mrf.mxu0  ;;  %v6462_v63 = vcombine.low %v1061_v57, %v1065_v60  ;;  %v6463_v1 = vcombine.high %v1061_v57, %v1065_v60 }
 0x17f   : > { %v607_v10 = vadd.f32 %v606_v9, %v466_v56  ;;  %v611_v11 = vpack.c.bf16 %v605_v8, %v601_v5  ;;  %v1064_v56 = vld [vmem:[#allocation8 + $0x1e0] sm:$0xff]  ;;  %v1045_v8 = vld [vmem:[#allocation8 + $0x148] sm:$0xff] }
 0x180   : > { %v6460_v58 = vcombine.low %v1060_v55, %v1064_v56  ;;  %v6461_v59 = vcombine.high %v1060_v55, %v1064_v56  ;;  %v1044_v5 = vld [vmem:[#allocation8 + $0x140] sm:$0xff]  ;;  %v1049_v9 = vld [vmem:[#allocation8 + $0x168] sm:$0xff]  ;;  %1825 = vmatprep.subr.bf16.mxu1 %v6463_v1 }
 0x181   : > { %v612_v12 = vpack.c.bf16 %v607_v10, %v603_v7  ;;  %v1048_v7 = vld [vmem:[#allocation8 + $0x160] sm:$0xff]  ;;  %v6452_v10 = vcombine.low %v1052_v61, %v1056_v62  ;;  %1826 = vmatpush1.bf16.msra.mxu1 %v6462_v63  ;;  %v6447_v13 = vcombine.high %v1045_v8, %v1049_v9  ;;  %v1013_v55 = vld [vmem:[#allocation8 + $0x48] sm:$0xff] }
 0x182   : > { %1772 = vmatprep.subr.bf16.mxu0 %v6461_v59  ;;  %v1017_v56 = vld [vmem:[#allocation8 + $0x68] sm:$0xff] }
 0x183   : > { %870 = vmatprep.mubr.bf16.mxu1 %v612_v12  ;;  %1773 = vmatpush1.bf16.msra.mxu0 %v6460_v58  ;;  %v6415_v60 = vcombine.high %v1013_v55, %v1017_v56  ;;  %v1005_v63 = vld [vmem:[#allocation8 + $0x8] sm:$0xff] }
 0x184   : > { %871 = vmatmul.mubr.bf16.gmra.mxu1 %v611_v11  ;;  %v1009_v1 = vld [vmem:[#allocation8 + $0x28] sm:$0xff] }
 0x23c   : > { %v862_v14 = vpop.f32.mrf.mxu1 }
 0x23d   : > { %v863_v19 = vadd.f32 %v862_v14, %v661_v15  ;;  %v1036_v14 = vld [vmem:[#allocation8 + $0x100] sm:$0xff] }
 0x23e   : > { %v864_v16 = vpop.f32.mrf.mxu1 }
 0x23f   : > { %v865_v22 = vadd.f32 %v864_v16, %v665_v17  ;;  %v1037_v16 = vld [vmem:[#allocation8 + $0x108] sm:$0xff] }
 0x240   : > { %v866_v18 = vpop.f32.mrf.mxu1 }
 0x241   : > { %v867_v20 = vadd.f32 %v866_v18, %v661_v15  ;;  %v6444_v18 = vcombine.low %v1044_v5, %v1048_v7 }
 0x242   : > { %v868_v21 = vpop.f32.mrf.mxu1 }
 0x243   : > { %v881_v23 = vpack.c.bf16 %v867_v20, %v863_v19  ;;  %v869_v24 = vadd.f32 %v868_v21, %v665_v17  ;;  %v6446_v19 = vcombine.low %v1045_v8, %v1049_v9  ;;  %v1125_v8 = vld [vmem:[#allocation8 + $0x3c8] sm:$0xff] }
 0x244   : > { %v872_v25 = vpop.f32.mrf.mxu1  ;;  %v1129_v9 = vld [vmem:[#allocation8 + $0x3e8] sm:$0xff] }
 0x245   : > { %v882_v26 = vpack.c.bf16 %v869_v24, %v865_v22  ;;  %v8277_v27 = vadd.bf16 %v881_v23, %v609_v3  ;;  %v873_v29 = vadd.f32 %v872_v25, %v661_v15  ;;  %v1053_v3 = vld [vmem:[#allocation8 + $0x188] sm:$0xff]  ;;  %v1028_v22 = vld [vmem:[#allocation8 + $0xc0] sm:$0xff] }
 0x246   : > { %v874_v28 = vpop.f32.mrf.mxu1  ;;  %v6455_v6 = vcombine.high %v1053_v3, %v1057_v4  ;;  %v1032_v23 = vld [vmem:[#allocation8 + $0xe0] sm:$0xff]  ;;  %v1029_v24 = vld [vmem:[#allocation8 + $0xc8] sm:$0xff] }
 0x247   : > { %v8279_v30 = vadd.bf16 %v882_v26, %v610_v2  ;;  %v875_v32 = vadd.f32 %v874_v28, %v665_v17  ;;  %v889_v34 = vunpack.c.l.bf16 %v8277_v27  ;;  %v891_v42 = vunpack.c.h.bf16 %v8277_v27  ;;  %v1033_v25 = vld [vmem:[#allocation8 + $0xe8] sm:$0xff] }
 0x248   : > { %v876_v31 = vpop.f32.mrf.mxu1  ;;  %v6453_v2 = vcombine.high %v1052_v61, %v1056_v62  ;;  %1827 = vmatprep.subr.bf16.mxu1 %v6455_v6  ;;  %v1004_v61 = vld [vmem:[#allocation8] sm:$0xff] }
 0x249   : > { %v877_v33 = vadd.f32 %v876_v31, %v661_v15  ;;  %v890_v35 = vunpack.c.l.bf16 %v8279_v30  ;;  %v892_v40 = vunpack.c.h.bf16 %v8279_v30  ;;  %v1040_v15 = vld [vmem:[#allocation8 + $0x120] sm:$0xff]  ;;  %v6431_v31 = vcombine.high %v1029_v24, %v1033_v25 }
 0x24a   : > { %v878_v36 = vpop.f32.mrf.mxu1  ;;  %1774 = vmatprep.subr.bf16.mxu0 %v6453_v2  ;;  %v6437_v20 = vcombine.high %v1036_v14, %v1040_v15  ;;  %v6436_v26 = vcombine.low %v1036_v14, %v1040_v15  ;;  %v1008_v62 = vld [vmem:[#allocation8 + $0x20] sm:$0xff]  ;;  %v6526_v15 = vcombine.low %v1125_v8, %v1129_v9 }
 0x24b   : > { %v883_v37 = vpack.c.bf16 %v877_v33, %v873_v29  ;;  %v879_v38 = vadd.f32 %v878_v36, %v665_v17  ;;  %v897_v39 = vadd.f32 %v890_v35, %v889_v34  ;;  %v900_v44 = vadd.f32 %v892_v40, %v891_v42  ;;  %v1041_v17 = vld [vmem:[#allocation8 + $0x128] sm:$0xff]  ;;  %1775 = vmatpush1.bf16.msra.mxu0 %v6452_v10  ;;  %v1024_v33 = vld [vmem:[#allocation8 + $0xa0] sm:$0xff] }
 0x24c   : > { %v6439_v21 = vcombine.high %v1037_v16, %v1041_v17  ;;  %v6438_v28 = vcombine.low %v1037_v16, %v1041_v17  ;;  %v6429_v29 = vcombine.high %v1028_v22, %v1032_v23  ;;  %v1021_v36 = vld [vmem:[#allocation8 + $0x88] sm:$0xff]  ;;  %v1124_v6 = vld [vmem:[#allocation8 + $0x3c0] sm:$0xff]  ;;  %v6404_v10 = vcombine.low %v1004_v61, %v1008_v62 }
 0x24d   : > { %v884_v41 = vpack.c.bf16 %v879_v38, %v875_v32  ;;  %898 = vadd.xlane.f32.xlu0 %v897_v39  ;;  %v8289_v43 = vadd.bf16 %v883_v37, %v611_v11  ;;  %v6454_v11 = vcombine.low %v1053_v3, %v1057_v4  ;;  %v1020_v32 = vld [vmem:[#allocation8 + $0x80] sm:$0xff]  ;;  %v1025_v37 = vld [vmem:[#allocation8 + $0xa8] sm:$0xff]  ;;  %v6428_v38 = vcombine.low %v1028_v22, %v1032_v23 }
 0x24e   : > { %v6430_v39 = vcombine.low %v1029_v24, %v1033_v25  ;;  %v6420_v57 = vcombine.low %v1020_v32, %v1024_v33  ;;  %v6422_v58 = vcombine.low %v1021_v36, %v1025_v37  ;;  %v6414_v3 = vcombine.low %v1013_v55, %v1017_v56 }
 0x24f   : > { %v8295_v45 = vadd.bf16 %v884_v41, %v612_v12  ;;  %v893_v46 = vunpack.c.l.bf16 %v8289_v43  ;;  %v895_v53 = vunpack.c.h.bf16 %v8289_v43  ;;  %v6445_v12 = vcombine.high %v1044_v5, %v1048_v7  ;;  %1828 = vmatpush1.bf16.msra.mxu1 %v6454_v11  ;;  %v1128_v7 = vld [vmem:[#allocation8 + $0x3e0] sm:$0xff]  ;;  %v1121_v43 = vld [vmem:[#allocation8 + $0x3a8] sm:$0xff] }
 0x250   : > { %1829 = vmatprep.subr.bf16.mxu1 %v6447_v13  ;;  %v6421_v41 = vcombine.high %v1020_v32, %v1024_v33  ;;  %v6405_v4 = vcombine.high %v1004_v61, %v1008_v62  ;;  %v6407_v5 = vcombine.high %v1005_v63, %v1009_v1  ;;  %v6406_v11 = vcombine.low %v1005_v63, %v1009_v1  ;;  %v1100_v63 = vld [vmem:[#allocation8 + $0x300] sm:$0xff] }
 0x251   : > { %901 = vadd.xlane.f32.xlu0 %v900_v44  ;;  %v894_v47 = vunpack.c.l.bf16 %v8295_v45  ;;  %v896_v49 = vunpack.c.h.bf16 %v8295_v45  ;;  %1776 = vmatprep.subr.bf16.mxu0 %v6445_v12  ;;  %v6423_v44 = vcombine.high %v1021_v36, %v1025_v37  ;;  %v6525_v12 = vcombine.high %v1124_v6, %v1128_v7  ;;  %v1108_v45 = vld [vmem:[#allocation8 + $0x340] sm:$0xff] }
 0x252   : > { %1777 = vmatpush1.bf16.msra.mxu0 %v6444_v18  ;;  %v6527_v13 = vcombine.high %v1125_v8, %v1129_v9  ;;  %v6524_v14 = vcombine.low %v1124_v6, %v1128_v7  ;;  %v1104_v1 = vld [vmem:[#allocation8 + $0x320] sm:$0xff] }
 0x253   : > { %v903_v48 = vadd.f32 %v894_v47, %v893_v46  ;;  %v906_v54 = vadd.f32 %v896_v49, %v895_v53  ;;  %1830 = vmatpush1.bf16.msra.mxu1 %v6446_v19  ;;  %1778 = vmatprep.subr.bf16.mxu0 %v6437_v20  ;;  %v1092_v8 = vld [vmem:[#allocation8 + $0x2c0] sm:$0xff] }
 0x254   : > { %1831 = vmatprep.subr.bf16.mxu1 %v6439_v21  ;;  %v1096_v9 = vld [vmem:[#allocation8 + $0x2e0] sm:$0xff] }
 0x255   : > { %904 = vadd.xlane.f32.xlu1 %v903_v48  ;;  %v1012_v48 = vld [vmem:[#allocation8 + $0x40] sm:$0xff] }
 0x256   : > { %1779 = vmatpush1.bf16.msra.mxu0 %v6436_v26 }
 0x257   : > { %1832 = vmatpush1.bf16.msra.mxu1 %v6438_v28  ;;  %1780 = vmatprep.subr.bf16.mxu0 %v6429_v29 }
 0x258   : > { %1833 = vmatprep.subr.bf16.mxu1 %v6431_v31 }
 0x259   : > { %907 = vadd.xlane.f32.xlu1 %v906_v54  ;;  %v1016_v54 = vld [vmem:[#allocation8 + $0x60] sm:$0xff] }
 0x25a   : > { %1781 = vmatpush1.bf16.msra.mxu0 %v6428_v38  ;;  %v6413_v59 = vcombine.high %v1012_v48, %v1016_v54  ;;  %v6412_v2 = vcombine.low %v1012_v48, %v1016_v54 }
 0x25b   : > { %1834 = vmatpush1.bf16.msra.mxu1 %v6430_v39  ;;  %1782 = vmatprep.subr.bf16.mxu0 %v6421_v41  ;;  %v1116_v39 = vld [vmem:[#allocation8 + $0x380] sm:$0xff] }
 0x25c   : > { %1835 = vmatprep.subr.bf16.mxu1 %v6423_v44  ;;  %v1120_v41 = vld [vmem:[#allocation8 + $0x3a0] sm:$0xff]  ;;  %v1117_v44 = vld [vmem:[#allocation8 + $0x388] sm:$0xff] }
 0x25d   : > { %v6517_v54 = vcombine.high %v1116_v39, %v1120_v41  ;;  %v6518_v55 = vcombine.low %v1117_v44, %v1121_v43  ;;  %v6519_v56 = vcombine.high %v1117_v44, %v1121_v43  ;;  %v8357_v43 = vld [vmem:[#allocation8 + $0x1d0] sm:$0xff] }
 0x25e   : > { %1783 = vmatpush1.bf16.msra.mxu0 %v6420_v57  ;;  %v1109_v57 = vld [vmem:[#allocation8 + $0x348] sm:$0xff] }
 0x25f   : > { %1836 = vmatpush1.bf16.msra.mxu1 %v6422_v58  ;;  %1784 = vmatprep.subr.bf16.mxu0 %v6413_v59  ;;  %v1113_v59 = vld [vmem:[#allocation8 + $0x368] sm:$0xff] }
 0x260   : > { %1837 = vmatprep.subr.bf16.mxu1 %v6415_v60  ;;  %v6510_v61 = vcombine.low %v1109_v57, %v1113_v59  ;;  %v6511_v62 = vcombine.high %v1109_v57, %v1113_v59 }
 0x262   : > { %1785 = vmatpush1.bf16.msra.mxu0 %v6412_v2  ;;  %v1101_v2 = vld [vmem:[#allocation8 + $0x308] sm:$0xff] }
 0x263   : > { %1838 = vmatpush1.bf16.msra.mxu1 %v6414_v3  ;;  %1786 = vmatprep.subr.bf16.mxu0 %v6405_v4  ;;  %v6501_v3 = vcombine.high %v1100_v63, %v1104_v1  ;;  %v1105_v4 = vld [vmem:[#allocation8 + $0x328] sm:$0xff] }
 0x264   : > { %1839 = vmatprep.subr.bf16.mxu1 %v6407_v5  ;;  %v6500_v5 = vcombine.low %v1100_v63, %v1104_v1  ;;  %v6502_v6 = vcombine.low %v1101_v2, %v1105_v4  ;;  %v6503_v7 = vcombine.high %v1101_v2, %v1105_v4 }
 0x266   : > { %1787 = vmatpush1.bf16.msra.mxu0 %v6404_v10  ;;  %v1093_v10 = vld [vmem:[#allocation8 + $0x2c8] sm:$0xff] }
 0x267   : > { %1840 = vmatpush1.bf16.msra.mxu1 %v6406_v11  ;;  %1788 = vmatprep.subr.bf16.mxu0 %v6525_v12  ;;  %v6493_v11 = vcombine.high %v1092_v8, %v1096_v9  ;;  %v1097_v12 = vld [vmem:[#allocation8 + $0x2e8] sm:$0xff] }
 0x268   : > { %1841 = vmatprep.subr.bf16.mxu1 %v6527_v13  ;;  %v6492_v13 = vcombine.low %v1092_v8, %v1096_v9  ;;  %v6367_v8 = vld [vmem:[%s8872_s7 + $0x3] ss:$8 sm:$0x3] }
 0x26a   : > { %1789 = vmatpush2.bf16.msra.mxu0 %v6524_v14  ;;  %v6494_v14 = vcombine.low %v1093_v10, %v1097_v12 }
 0x26b   : > { %1842 = vmatpush2.bf16.msra.mxu1 %v6526_v15  ;;  %1790 = vmatprep.subr.bf16.mxu0 %v6517_v54  ;;  %v6495_v15 = vcombine.high %v1093_v10, %v1097_v12  ;;  %v970_v10 = vrot.slane %v6367_v8, %v8262_v51 }
 0x26c   : > { %1843 = vmatprep.subr.bf16.mxu1 %v6519_v56 }
 0x26f   : > { %1844 = vmatpush2.bf16.msra.mxu1 %v6518_v55  ;;  %v8361_v55 = vld [vmem:[#allocation8 + $0x1d8] sm:$0xff] }
 0x270   : > { %1845 = vmatprep.subr.bf16.mxu1 %v6511_v62 }
 0x273   : > { %1846 = vmatpush2.bf16.msra.mxu1 %v6510_v61 }
 0x274   : > { %1847 = vmatprep.subr.bf16.mxu1 %v6503_v7 }
 0x277   : > { %1848 = vmatpush2.bf16.msra.mxu1 %v6502_v6 }
 0x278   : > { %1849 = vmatprep.subr.bf16.mxu1 %v6495_v15 }
 0x27b   : > { %1850 = vmatpush2.bf16.msra.mxu1 %v6494_v14  ;;  %v6368_v14 = vld [vmem:[%s8872_s7 + $0x5] ss:$8 sm:$0x3] }
 0x2d6   : > { %v899_v16 = vpop.xlane.xlu0 %898 }
 0x2d7   : > { %v910_v17 = vmul.f32 0.00390625, %v899_v16  ;;  %v1084_v16 = vld [vmem:[#allocation8 + $0x280] sm:$0xff] }
 0x2d9   : > { %v8311_v18 = vsub.f32 %v889_v34, %v910_v17  ;;  %v8315_v19 = vsub.f32 %v890_v35, %v910_v17  ;;  %v1088_v17 = vld [vmem:[#allocation8 + $0x2a0] sm:$0xff] }
 0x2da   : > { %v902_v20 = vpop.xlane.xlu0 %901 }
 0x2db   : > { %v911_v21 = vmul.f32 0.00390625, %v902_v20  ;;  %v922_v22 = vmul.f32 %v8311_v18, %v8311_v18  ;;  %v923_v23 = vmul.f32 %v8315_v19, %v8315_v19  ;;  %v1085_v20 = vld [vmem:[#allocation8 + $0x288] sm:$0xff] }
 0x2dd   : > { %v8323_v24 = vsub.f32 %v891_v42, %v911_v21  ;;  %v8327_v34 = vsub.f32 %v892_v40, %v911_v21  ;;  %v930_v25 = vadd.f32 %v923_v23, %v922_v22  ;;  %v6485_v21 = vcombine.high %v1084_v16, %v1088_v17  ;;  %v1089_v22 = vld [vmem:[#allocation8 + $0x2a8] sm:$0xff] }
 0x2de   : > { %v905_v26 = vpop.xlane.xlu1 %904  ;;  %v6484_v23 = vcombine.low %v1084_v16, %v1088_v17  ;;  %v989_v17 = vrot.slane %v6368_v14, %v8262_v51 }
 0x2df   : > { %v912_v35 = vmul.f32 0.00390625, %v905_v26  ;;  %931 = vadd.xlane.f32.xlu0 %v930_v25  ;;  %v924_v28 = vmul.f32 %v8323_v24, %v8323_v24  ;;  %v925_v29 = vmul.f32 %v8327_v34, %v8327_v34  ;;  %v6486_v25 = vcombine.low %v1085_v20, %v1089_v22 }
 0x2e0   : > { %v6487_v26 = vcombine.high %v1085_v20, %v1089_v22 }
 0x2e1   : > { %v8335_v31 = vsub.f32 %v893_v46, %v912_v35  ;;  %v8339_v27 = vsub.f32 %v894_v47, %v912_v35  ;;  %v933_v30 = vadd.f32 %v925_v29, %v924_v28  ;;  %v1076_v35 = vld [vmem:[#allocation8 + $0x240] sm:$0xff]  ;;  %v1077_v29 = vld [vmem:[#allocation8 + $0x248] sm:$0xff] }
 0x2e2   : > { %v908_v40 = vpop.xlane.xlu1 %907  ;;  %1851 = vmatprep.subr.bf16.mxu1 %v6487_v26  ;;  %v1080_v28 = vld [vmem:[#allocation8 + $0x260] sm:$0xff] }
 0x2e3   : > { %v913_v42 = vmul.f32 0.00390625, %v908_v40  ;;  %934 = vadd.xlane.f32.xlu1 %v933_v30  ;;  %v926_v32 = vmul.f32 %v8335_v31, %v8335_v31  ;;  %v927_v33 = vmul.f32 %v8339_v27, %v8339_v27  ;;  %1852 = vmatpush2.bf16.msra.mxu1 %v6486_v25  ;;  %v6477_v30 = vcombine.high %v1076_v35, %v1080_v28  ;;  %v1081_v40 = vld [vmem:[#allocation8 + $0x268] sm:$0xff] }
 0x2e5   : > { %v8347_v36 = vsub.f32 %v895_v53, %v913_v42  ;;  %v8351_v46 = vsub.f32 %v896_v49, %v913_v42  ;;  %v936_v47 = vadd.f32 %v927_v33, %v926_v32  ;;  %v6516_v53 = vcombine.low %v1116_v39, %v1120_v41  ;;  %v1112_v49 = vld [vmem:[#allocation8 + $0x360] sm:$0xff]  ;;  %v1073_v41 = vld [vmem:[#allocation8 + $0x228] sm:$0xff] }
 0x2e6   : > { %v6509_v58 = vcombine.high %v1108_v45, %v1112_v49  ;;  %v6508_v60 = vcombine.low %v1108_v45, %v1112_v49  ;;  %v6476_v42 = vcombine.low %v1076_v35, %v1080_v28  ;;  %v6478_v32 = vcombine.low %v1077_v29, %v1081_v40  ;;  %v8365_v45 = vld [vmem:[#allocation8 + $0x1f8] sm:$0xff]  ;;  %v1054_v28 = vld [vmem:[#allocation8 + $0x190] sm:$0xff] }
 0x2e7   : > { %937 = vadd.xlane.f32.xlu0 %v936_v47  ;;  %v928_v37 = vmul.f32 %v8347_v36, %v8347_v36  ;;  %v929_v38 = vmul.f32 %v8351_v46, %v8351_v46  ;;  %1791 = vmatpush2.bf16.msra.mxu0 %v6516_v53  ;;  %v6479_v33 = vcombine.high %v1077_v29, %v1081_v40  ;;  %v1068_v47 = vld [vmem:[#allocation8 + $0x200] sm:$0xff]  ;;  %v8359_v53 = vld [vmem:[#allocation8 + $0x1f0] sm:$0xff] }
 0x2e8   : > { %1792 = vmatprep.subr.bf16.mxu0 %v6509_v58  ;;  %v6465_v56 = vcombine.high %v8357_v43, %v8359_v53  ;;  %v6464_v49 = vcombine.low %v8357_v43, %v8359_v53  ;;  %v6466_v57 = vcombine.low %v8361_v55, %v8365_v45  ;;  %v6467_v58 = vcombine.high %v8361_v55, %v8365_v45  ;;  %v1039_v43 = vld [vmem:[#allocation8 + $0x118] sm:$0xff] }
 0x2e9   : > { %v939_v48 = vadd.f32 %v929_v38, %v928_v37  ;;  %1853 = vmatprep.subr.bf16.mxu1 %v6479_v33  ;;  %v1072_v37 = vld [vmem:[#allocation8 + $0x220] sm:$0xff]  ;;  %v1069_v38 = vld [vmem:[#allocation8 + $0x208] sm:$0xff]  ;;  %v1055_v33 = vld [vmem:[#allocation8 + $0x198] sm:$0xff] }
 0x2ea   : > { %1854 = vmatpush2.bf16.msra.mxu1 %v6478_v32  ;;  %v6469_v39 = vcombine.high %v1068_v47, %v1072_v37  ;;  %v6468_v44 = vcombine.low %v1068_v47, %v1072_v37  ;;  %v6471_v54 = vcombine.high %v1069_v38, %v1073_v41  ;;  %v1058_v32 = vld [vmem:[#allocation8 + $0x1b0] sm:$0xff]  ;;  %v1059_v47 = vld [vmem:[#allocation8 + $0x1b8] sm:$0xff] }
 0x2eb   : > { %940 = vadd.xlane.f32.xlu1 %v939_v48  ;;  %1793 = vmatpush2.bf16.msra.mxu0 %v6508_v60  ;;  %v6470_v48 = vcombine.low %v1069_v38, %v1073_v41  ;;  %v6457_v38 = vcombine.high %v1054_v28, %v1058_v32  ;;  %v1043_v53 = vld [vmem:[#allocation8 + $0x138] sm:$0xff] }
 0x2ec   : > { %1794 = vmatprep.subr.bf16.mxu0 %v6501_v3  ;;  %1855 = vmatprep.subr.bf16.mxu1 %v6471_v54  ;;  %v1047_v54 = vld [vmem:[#allocation8 + $0x158] sm:$0xff] }
 0x2ee   : > { %1856 = vmatpush2.bf16.msra.mxu1 %v6470_v48 }
 0x2ef   : > { %1795 = vmatpush2.bf16.msra.mxu0 %v6500_v5  ;;  %1931 = vmatprep.subr.bf16.mxu1 %v6467_v58 }
 0x2f0   : > { %1796 = vmatprep.subr.bf16.mxu0 %v6493_v11  ;;  %v966_v11 = vrot.slane %v6367_v8, %v8265_v52  ;;  %v6443_v8 = vcombine.high %v1039_v43, %v1043_v53 }
 0x2f3   : > { %1797 = vmatpush2.bf16.msra.mxu0 %v6492_v13 }
 0x2f4   : > { %1798 = vmatprep.subr.bf16.mxu0 %v6485_v21  ;;  %v985_v21 = vrot.slane %v6368_v14, %v8265_v52 }
 0x2f7   : > { %1799 = vmatpush2.bf16.msra.mxu0 %v6484_v23 }
 0x2f8   : > { %1800 = vmatprep.subr.bf16.mxu0 %v6477_v30 }
 0x2fb   : > { %1801 = vmatpush2.bf16.msra.mxu0 %v6476_v42 }
 0x2fc   : > { %1802 = vmatprep.subr.bf16.mxu0 %v6469_v39  ;;  %v6459_v39 = vcombine.high %v1055_v33, %v1059_v47 }
 0x2ff   : > { %1803 = vmatpush2.bf16.msra.mxu0 %v6468_v44  ;;  %v1046_v44 = vld [vmem:[#allocation8 + $0x150] sm:$0xff] }
 0x300   : > { %1878 = vmatprep.subr.bf16.mxu0 %v6465_v56  ;;  %v1051_v56 = vld [vmem:[#allocation8 + $0x178] sm:$0xff] }
 0x301   : > { %v6450_v45 = vcombine.low %v1047_v54, %v1051_v56 }
 0x368   : > { %v932_v59 = vpop.xlane.xlu0 %931 }
 0x369   : > { %v942_v60 = vmul.f32 0.00390625, %v932_v59  ;;  %v6456_v59 = vcombine.low %v1054_v28, %v1058_v32  ;;  %v1019_v28 = vld [vmem:[#allocation8 + $0x78] sm:$0xff]  ;;  %v1006_v32 = vld [vmem:[#allocation8 + $0x10] sm:$0xff] }
 0x36b   : > { %v946_v61 = vadd.f32 1e-05, %v942_v60 }
 0x36c   : > { %v935_v62 = vpop.xlane.xlu1 %934 }
 0x36d   : > { %7666 = vrsqrt.f32 %v946_v61  ;;  %v943_v63 = vmul.f32 0.00390625, %v935_v62  ;;  %v6451_v62 = vcombine.high %v1047_v54, %v1051_v56  ;;  %v1131_v54 = vld [vmem:[#allocation8 + $0x3f8] sm:$0xff] }
 0x36f   : > { %v947_v1 = vadd.f32 1e-05, %v943_v63 }
 0x370   : > { %v938_v2 = vpop.xlane.xlu0 %937 }
 0x371   : > { %7668 = vrsqrt.f32 %v947_v1  ;;  %v944_v3 = vmul.f32 0.00390625, %v938_v2 }
 0x373   : > { %v948_v4 = vadd.f32 1e-05, %v944_v3 }
 0x374   : > { %v941_v5 = vpop.xlane.xlu1 %940 }
 0x375   : > { %7670 = vrsqrt.f32 %v948_v4  ;;  %v945_v6 = vmul.f32 0.00390625, %v941_v5  ;;  %v1038_v4 = vld [vmem:[#allocation8 + $0x110] sm:$0xff] }
 0x377   : > { %v949_v7 = vadd.f32 1e-05, %v945_v6  ;;  %v1042_v6 = vld [vmem:[#allocation8 + $0x130] sm:$0xff] }
 0x379   : > { %7672 = vrsqrt.f32 %v949_v7  ;;  %v6441_v7 = vcombine.high %v1038_v4, %v1042_v6 }
 0x37a   : > { %v7667_v9 = vpop.eup %7666 }
 0x37b   : > { %v954_v12 = vmul.f32 %v7667_v9, %v8311_v18  ;;  %v955_v13 = vmul.f32 %v7667_v9, %v8315_v19  ;;  %v1034_v9 = vld [vmem:[#allocation8 + $0xf0] sm:$0xff] }
 0x37d   : > { %v974_v16 = vmul.f32 %v970_v10, %v955_v13  ;;  %v973_v20 = vmul.f32 %v966_v11, %v954_v12  ;;  %v6440_v12 = vcombine.low %v1038_v4, %v1042_v6  ;;  %v6442_v13 = vcombine.low %v1039_v43, %v1043_v53  ;;  %v1110_v4 = vld [vmem:[#allocation8 + $0x350] sm:$0xff]  ;;  %v1111_v6 = vld [vmem:[#allocation8 + $0x358] sm:$0xff] }
 0x37e   : > { %v7669_v15 = vpop.eup %7668  ;;  %v1115_v43 = vld [vmem:[#allocation8 + $0x378] sm:$0xff] }
 0x37f   : > { %v956_v22 = vmul.f32 %v7669_v15, %v8323_v24  ;;  %v957_v23 = vmul.f32 %v7669_v15, %v8327_v34  ;;  %v993_v35 = vadd.f32 %v989_v17, %v974_v16  ;;  %v992_v19 = vadd.f32 %v985_v21, %v973_v20  ;;  %v1022_v16 = vld [vmem:[#allocation8 + $0x90] sm:$0xff]  ;;  %v1023_v20 = vld [vmem:[#allocation8 + $0x98] sm:$0xff] }
 0x381   : > { %v976_v25 = vmul.f32 %v970_v10, %v957_v23  ;;  %v975_v26 = vmul.f32 %v966_v11, %v956_v22 }
 0x382   : > { %v7671_v18 = vpop.eup %7670 }
 0x383   : > { %v958_v29 = vmul.f32 %v7671_v18, %v8335_v31  ;;  %v959_v30 = vmul.f32 %v7671_v18, %v8339_v27  ;;  %v995_v40 = vadd.f32 %v989_v17, %v976_v25  ;;  %v994_v42 = vadd.f32 %v985_v21, %v975_v26  ;;  %v1050_v27 = vld [vmem:[#allocation8 + $0x170] sm:$0xff] }
 0x384   : > { %v6449_v61 = vcombine.high %v1046_v44, %v1050_v27  ;;  %v6448_v5 = vcombine.low %v1046_v44, %v1050_v27  ;;  %v1014_v18 = vld [vmem:[#allocation8 + $0x50] sm:$0xff]  ;;  %v1127_v27 = vld [vmem:[#allocation8 + $0x3d8] sm:$0xff] }
 0x385   : > { %v8389_v37 = vpack.c.bf16 %v995_v40, %v993_v35  ;;  %v8391_v24 = vpack.c.bf16 %v994_v42, %v992_v19  ;;  %v978_v41 = vmul.f32 %v970_v10, %v959_v30  ;;  %v977_v58 = vmul.f32 %v966_v11, %v958_v29  ;;  %v1018_v35 = vld [vmem:[#allocation8 + $0x70] sm:$0xff]  ;;  %v1015_v19 = vld [vmem:[#allocation8 + $0x58] sm:$0xff] }
 0x386   : > { %v7673_v34 = vpop.eup %7672  ;;  %v6417_v40 = vcombine.high %v1014_v18, %v1018_v35  ;;  %v6419_v42 = vcombine.high %v1015_v19, %v1019_v28 }
 0x387   : > { %v960_v48 = vmul.f32 %v7673_v34, %v8347_v36  ;;  %v961_v31 = vmul.f32 %v7673_v34, %v8351_v46  ;;  %1804 = vmatprep.mubr.bf16.mxu0 %v8389_v37  ;;  %1857 = vmatprep.mubr.bf16.mxu1 %v8389_v37  ;;  %v6458_v36 = vcombine.low %v1055_v33, %v1059_v47  ;;  %v1010_v33 = vld [vmem:[#allocation8 + $0x30] sm:$0xff]  ;;  %v1007_v47 = vld [vmem:[#allocation8 + $0x18] sm:$0xff] }
 0x388   : > { %1805 = vmatmul.mubr.bf16.vlgmr.msra.gmra.mxu0 %v8391_v24  ;;  %1858 = vmatmul.mubr.bf16.vlgmr.msra.gmra.mxu1 %v8391_v24  ;;  %v997_v63 = vadd.f32 %v989_v17, %v978_v41  ;;  %v996_v2 = vadd.f32 %v985_v21, %v977_v58  ;;  %v1011_v34 = vld [vmem:[#allocation8 + $0x38] sm:$0xff]  ;;  %v6409_v41 = vcombine.high %v1006_v32, %v1010_v33 }
 0x389   : > { %1879 = vmatpush1.bf16.msra.mxu0 %v6464_v49  ;;  %1932 = vmatpush1.bf16.msra.mxu1 %v6466_v57  ;;  %v980_v46 = vmul.f32 %v970_v10, %v961_v31  ;;  %v979_v60 = vmul.f32 %v966_v11, %v960_v48  ;;  %v1030_v57 = vld [vmem:[#allocation8 + $0xd0] sm:$0xff]  ;;  %v1031_v10 = vld [vmem:[#allocation8 + $0xd8] sm:$0xff]  ;;  %v6411_v44 = vcombine.high %v1007_v47, %v1011_v34 }
 0x38a   : > { %1880 = vmatprep.subr.bf16.mxu0 %v6457_v38  ;;  %1933 = vmatprep.subr.bf16.mxu1 %v6459_v39  ;;  %v1035_v11 = vld [vmem:[#allocation8 + $0xf8] sm:$0xff]  ;;  %v6433_v14 = vcombine.high %v1030_v57, %v1034_v9  ;;  %v6432_v22 = vcombine.low %v1030_v57, %v1034_v9  ;;  %v6416_v38 = vcombine.low %v1014_v18, %v1018_v35  ;;  %v1126_v48 = vld [vmem:[#allocation8 + $0x3d0] sm:$0xff] }
 0x38b   : > { %v999_v1 = vadd.f32 %v989_v17, %v980_v46  ;;  %v998_v3 = vadd.f32 %v985_v21, %v979_v60  ;;  %v6435_v15 = vcombine.high %v1031_v10, %v1035_v11  ;;  %v1026_v17 = vld [vmem:[#allocation8 + $0xb0] sm:$0xff]  ;;  %v1027_v21 = vld [vmem:[#allocation8 + $0xb8] sm:$0xff]  ;;  %v6434_v23 = vcombine.low %v1031_v10, %v1035_v11 }
 0x38c   : > { %v6425_v25 = vcombine.high %v1022_v16, %v1026_v17  ;;  %v6427_v26 = vcombine.high %v1023_v20, %v1027_v21  ;;  %v6424_v29 = vcombine.low %v1022_v16, %v1026_v17  ;;  %v6426_v30 = vcombine.low %v1023_v20, %v1027_v21  ;;  %v1130_v31 = vld [vmem:[#allocation8 + $0x3f0] sm:$0xff]  ;;  %v1103_v10 = vld [vmem:[#allocation8 + $0x318] sm:$0xff] }
 0x38d   : > { %1881 = vmatpush1.bf16.msra.mxu0 %v6456_v59  ;;  %1934 = vmatpush1.bf16.msra.mxu1 %v6458_v36  ;;  %v8405_v55 = vpack.c.bf16 %v999_v1, %v997_v63  ;;  %v8407_v49 = vpack.c.bf16 %v998_v3, %v996_v2  ;;  %v6418_v39 = vcombine.low %v1015_v19, %v1019_v28  ;;  %v1118_v46 = vld [vmem:[#allocation8 + $0x390] sm:$0xff]  ;;  %v1107_v11 = vld [vmem:[#allocation8 + $0x338] sm:$0xff] }
 0x38e   : > { %1882 = vmatprep.subr.bf16.mxu0 %v6449_v61  ;;  %1935 = vmatprep.subr.bf16.mxu1 %v6451_v62  ;;  %v6408_v56 = vcombine.low %v1006_v32, %v1010_v33  ;;  %v6410_v58 = vcombine.low %v1007_v47, %v1011_v34  ;;  %v6529_v59 = vcombine.high %v1126_v48, %v1130_v31  ;;  %v1122_v60 = vld [vmem:[#allocation8 + $0x3b0] sm:$0xff]  ;;  %v1119_v61 = vld [vmem:[#allocation8 + $0x398] sm:$0xff] }
 0x38f   : > { %1814 = vmatprep.mubr.bf16.mxu0 %v8405_v55  ;;  %1867 = vmatprep.mubr.bf16.mxu1 %v8405_v55  ;;  %v6531_v36 = vcombine.high %v1127_v27, %v1131_v54  ;;  %v1123_v62 = vld [vmem:[#allocation8 + $0x3b8] sm:$0xff]  ;;  %v6528_v63 = vcombine.low %v1126_v48, %v1130_v31  ;;  %v6530_v1 = vcombine.low %v1127_v27, %v1131_v54  ;;  %v1106_v9 = vld [vmem:[#allocation8 + $0x330] sm:$0xff] }
 0x390   : > { %1815 = vmatmul.mubr.bf16.gmra.mxu0 %v8407_v49  ;;  %1868 = vmatmul.mubr.bf16.gmra.mxu1 %v8407_v49  ;;  %v6521_v2 = vcombine.high %v1118_v46, %v1122_v60  ;;  %v6523_v3 = vcombine.high %v1119_v61, %v1123_v62  ;;  %v6520_v53 = vcombine.low %v1118_v46, %v1122_v60  ;;  %v1094_v16 = vld [vmem:[#allocation8 + $0x2d0] sm:$0xff]  ;;  %v1095_v20 = vld [vmem:[#allocation8 + $0x2d8] sm:$0xff] }
 0x391   : > { %1883 = vmatpush1.bf16.msra.mxu0 %v6448_v5  ;;  %1936 = vmatpush1.bf16.msra.mxu1 %v6450_v45  ;;  %v1114_v5 = vld [vmem:[#allocation8 + $0x370] sm:$0xff]  ;;  %v6522_v45 = vcombine.low %v1119_v61, %v1123_v62  ;;  %v1099_v21 = vld [vmem:[#allocation8 + $0x2f8] sm:$0xff] }
 0x392   : > { %1910 = vmatprep.mubr.bf16.mxu0 %v8389_v37  ;;  %1963 = vmatprep.mubr.bf16.mxu1 %v8389_v37  ;;  %v6513_v57 = vcombine.high %v1110_v4, %v1114_v5  ;;  %v1098_v17 = vld [vmem:[#allocation8 + $0x2f0] sm:$0xff]  ;;  %v1087_v19 = vld [vmem:[#allocation8 + $0x298] sm:$0xff] }
 0x393   : > { %1884 = vmatprep.subr.bf16.mxu0 %v6441_v7  ;;  %1937 = vmatprep.subr.bf16.mxu1 %v6443_v8  ;;  %v6515_v7 = vcombine.high %v1111_v6, %v1115_v43  ;;  %v1102_v8 = vld [vmem:[#allocation8 + $0x310] sm:$0xff]  ;;  %v1091_v28 = vld [vmem:[#allocation8 + $0x2b8] sm:$0xff] }
 0x394   : > { %v1086_v18 = vld [vmem:[#allocation8 + $0x290] sm:$0xff]  ;;  %v1079_v47 = vld [vmem:[#allocation8 + $0x258] sm:$0xff] }
 0x395   : > { %1885 = vmatpush1.bf16.msra.mxu0 %v6440_v12  ;;  %1938 = vmatpush1.bf16.msra.mxu1 %v6442_v13  ;;  %v6512_v12 = vcombine.low %v1110_v4, %v1114_v5  ;;  %v6514_v13 = vcombine.low %v1111_v6, %v1115_v43  ;;  %v1090_v35 = vld [vmem:[#allocation8 + $0x2b0] sm:$0xff]  ;;  %v1083_v34 = vld [vmem:[#allocation8 + $0x278] sm:$0xff]  ;;  %v7222_v4 = vld [vmem:[#allocation10 + $0x60] ss:$8 sps:$4 sm:$0xff]  }
 0x396   : > { %1886 = vmatprep.subr.bf16.mxu0 %v6433_v14  ;;  %1939 = vmatprep.subr.bf16.mxu1 %v6435_v15  ;;  %v6505_v14 = vcombine.high %v1102_v8, %v1106_v9  ;;  %v6507_v15 = vcombine.high %v1103_v10, %v1107_v11  ;;  %v1078_v32 = vld [vmem:[#allocation8 + $0x250] sm:$0xff]  ;;  %v1071_v27 = vld [vmem:[#allocation8 + $0x218] sm:$0xff]  ;;  %v7225_v5 = vld [vmem:[#allocation10 + $0x160] ss:$8 sps:$4 sm:$0xff]  }
 0x397   : > { %v1082_v33 = vld [vmem:[#allocation8 + $0x270] sm:$0xff]  ;;  %v1075_v54 = vld [vmem:[#allocation8 + $0x238] sm:$0xff] }
 0x398   : > { %v1070_v48 = vld [vmem:[#allocation8 + $0x210] sm:$0xff]  ;;  %v6474_v60 = vcombine.low %v1071_v27, %v1075_v54 }
 0x399   : > { %1887 = vmatpush1.bf16.msra.mxu0 %v6432_v22  ;;  %1940 = vmatpush1.bf16.msra.mxu1 %v6434_v23  ;;  %v6504_v22 = vcombine.low %v1102_v8, %v1106_v9  ;;  %v6506_v23 = vcombine.low %v1103_v10, %v1107_v11  ;;  %v1074_v31 = vld [vmem:[#allocation8 + $0x230] sm:$0xff]  ;;  %v7234_v8 = vld [vmem:[#allocation10 + $0x40] ss:$8 sps:$4 sm:$0xff]  }
 0x39a   : > { %1888 = vmatprep.subr.bf16.mxu0 %v6425_v25  ;;  %1941 = vmatprep.subr.bf16.mxu1 %v6427_v26  ;;  %v6497_v25 = vcombine.high %v1094_v16, %v1098_v17  ;;  %v6499_v26 = vcombine.high %v1095_v20, %v1099_v21  ;;  %v6472_v46 = vcombine.low %v1070_v48, %v1074_v31  ;;  %v7218_v61 = vld [vmem:[#allocation10 + $0x74] ss:$8 sps:$4 sm:$0xff]   ;;  %v7237_v9 = vld [vmem:[#allocation10 + $0x140] ss:$8 sps:$4 sm:$0xff]  }
 0x39b   : > { %v7221_v62 = vld [vmem:[#allocation10 + $0x174] ss:$8 sps:$4 sm:$0xff]  }
 0x39c   : > { %v7230_v6 = vld [vmem:[#allocation10 + $0x54] ss:$8 sps:$4 sm:$0xff]  }
 0x39d   : > { %1889 = vmatpush1.bf16.msra.mxu0 %v6424_v29  ;;  %1942 = vmatpush1.bf16.msra.mxu1 %v6426_v30  ;;  %v6496_v29 = vcombine.low %v1094_v16, %v1098_v17  ;;  %v6498_v30 = vcombine.low %v1095_v20, %v1099_v21  ;;  %v7233_v43 = vld [vmem:[#allocation10 + $0x154] ss:$8 sps:$4 sm:$0xff]   ;;  %v7246_v16 = vld [vmem:[#allocation10 + $0x20] ss:$8 sps:$4 sm:$0xff]  }
 0x39e   : > { %1890 = vmatprep.subr.bf16.mxu0 %v6417_v40  ;;  %1943 = vmatprep.subr.bf16.mxu1 %v6419_v42  ;;  %v6489_v40 = vcombine.high %v1086_v18, %v1090_v35  ;;  %v6491_v42 = vcombine.high %v1087_v19, %v1091_v28  ;;  %v7242_v10 = vld [vmem:[#allocation10 + $0x34] ss:$8 sps:$4 sm:$0xff]   ;;  %v7249_v17 = vld [vmem:[#allocation10 + $0x120] ss:$8 sps:$4 sm:$0xff]  }
 0x39f   : > { %v7245_v11 = vld [vmem:[#allocation10 + $0x134] ss:$8 sps:$4 sm:$0xff]  }
 0x3a0   : > { %v7254_v20 = vld [vmem:[#allocation10 + $0x14] ss:$8 sps:$4 sm:$0xff]  }
 0x3a1   : > { %1891 = vmatpush1.bf16.msra.mxu0 %v6416_v38  ;;  %1944 = vmatpush1.bf16.msra.mxu1 %v6418_v39  ;;  %v6488_v38 = vcombine.low %v1086_v18, %v1090_v35  ;;  %v6490_v39 = vcombine.low %v1087_v19, %v1091_v28  ;;  %v7257_v21 = vld [vmem:[#allocation10 + $0x114] ss:$8 sps:$4 sm:$0xff]   ;;  %v7258_v18 = vld [vmem:[#allocation10] ss:$8 sps:$4 sm:$0xff]  }
 0x3a2   : > { %1892 = vmatprep.subr.bf16.mxu0 %v6409_v41  ;;  %1945 = vmatprep.subr.bf16.mxu1 %v6411_v44  ;;  %v6481_v41 = vcombine.high %v1078_v32, %v1082_v33  ;;  %v6483_v44 = vcombine.high %v1079_v47, %v1083_v34  ;;  %v7261_v35 = vld [vmem:[#allocation10 + $0x100] ss:$8 sps:$4 sm:$0xff]   ;;  %v7266_v19 = vld [vmem:[#allocation10 + $0xf4] ss:$8 sps:$4 sm:$0xff]  }
 0x3a3   : > { %v7269_v28 = vld [vmem:[#allocation10 + $0x1f4] ss:$8 sps:$4 sm:$0xff]  }
 0x3a5   : > { %1893 = vmatpush1.bf16.msra.mxu0 %v6408_v56  ;;  %1946 = vmatpush1.bf16.msra.mxu1 %v6410_v58  ;;  %v6480_v56 = vcombine.low %v1078_v32, %v1082_v33  ;;  %v6482_v58 = vcombine.low %v1079_v47, %v1083_v34  ;;  %v7270_v32 = vld [vmem:[#allocation10 + $0xe0] ss:$8 sps:$4 sm:$0xff]   ;;  %v7278_v47 = vld [vmem:[#allocation10 + $0xd4] ss:$8 sps:$4 sm:$0xff]  }
 0x3a6   : > { %1894 = vmatprep.subr.bf16.mxu0 %v6529_v59  ;;  %1947 = vmatprep.subr.bf16.mxu1 %v6531_v36  ;;  %v6473_v59 = vcombine.high %v1070_v48, %v1074_v31  ;;  %v6475_v36 = vcombine.high %v1071_v27, %v1075_v54  ;;  %v7273_v33 = vld [vmem:[#allocation10 + $0x1e0] ss:$8 sps:$4 sm:$0xff]   ;;  %v7281_v34 = vld [vmem:[#allocation10 + $0x1d4] ss:$8 sps:$4 sm:$0xff]  }
 0x3a7   : > { %v7282_v48 = vld [vmem:[#allocation10 + $0xc0] ss:$8 sps:$4 sm:$0xff]   ;;  %v7290_v27 = vld [vmem:[#allocation10 + $0xb4] ss:$8 sps:$4 sm:$0xff]  }
 0x3a8   : > { %v7285_v31 = vld [vmem:[#allocation10 + $0x1c0] ss:$8 sps:$4 sm:$0xff]   ;;  %v7293_v54 = vld [vmem:[#allocation10 + $0x1b4] ss:$8 sps:$4 sm:$0xff]  }
 0x3a9   : > { %1895 = vmatpush2.bf16.msra.mxu0 %v6528_v63  ;;  %1948 = vmatpush2.bf16.msra.mxu1 %v6530_v1  ;;  %v7216_v63 = vld [vmem:[#allocation10 + $0x70] ss:$8 sps:$4 sm:$0xff]  }
 0x3aa   : > { %1896 = vmatprep.subr.bf16.mxu0 %v6521_v2  ;;  %1949 = vmatprep.subr.bf16.mxu1 %v6523_v3  ;;  %v7219_v1 = vld [vmem:[#allocation10 + $0x170] ss:$8 sps:$4 sm:$0xff]   ;;  %v7224_v2 = vld [vmem:[#allocation10 + $0x64] ss:$8 sps:$4 sm:$0xff]  }
 0x3ab   : > { %v7227_v3 = vld [vmem:[#allocation10 + $0x164] ss:$8 sps:$4 sm:$0xff]  }
 0x3ad   : > { %1897 = vmatpush2.bf16.msra.mxu0 %v6520_v53  ;;  %1950 = vmatpush2.bf16.msra.mxu1 %v6522_v45  ;;  %v7228_v53 = vld [vmem:[#allocation10 + $0x50] ss:$8 sps:$4 sm:$0xff]  }
 0x3ae   : > { %1898 = vmatprep.subr.bf16.mxu0 %v6513_v57  ;;  %1951 = vmatprep.subr.bf16.mxu1 %v6515_v7  ;;  %v7231_v45 = vld [vmem:[#allocation10 + $0x150] ss:$8 sps:$4 sm:$0xff]   ;;  %v7236_v57 = vld [vmem:[#allocation10 + $0x44] ss:$8 sps:$4 sm:$0xff]  }
 0x3af   : > { %v7239_v7 = vld [vmem:[#allocation10 + $0x144] ss:$8 sps:$4 sm:$0xff]  }
 0x3b1   : > { %1899 = vmatpush2.bf16.msra.mxu0 %v6512_v12  ;;  %1952 = vmatpush2.bf16.msra.mxu1 %v6514_v13  ;;  %v7240_v12 = vld [vmem:[#allocation10 + $0x30] ss:$8 sps:$4 sm:$0xff]  }
 0x3b2   : > { %1900 = vmatprep.subr.bf16.mxu0 %v6505_v14  ;;  %1953 = vmatprep.subr.bf16.mxu1 %v6507_v15  ;;  %v7243_v13 = vld [vmem:[#allocation10 + $0x130] ss:$8 sps:$4 sm:$0xff]   ;;  %v7248_v14 = vld [vmem:[#allocation10 + $0x24] ss:$8 sps:$4 sm:$0xff]  }
 0x3b3   : > { %v7251_v15 = vld [vmem:[#allocation10 + $0x124] ss:$8 sps:$4 sm:$0xff]  }
 0x3b5   : > { %1901 = vmatpush2.bf16.msra.mxu0 %v6504_v22  ;;  %1954 = vmatpush2.bf16.msra.mxu1 %v6506_v23  ;;  %v7252_v22 = vld [vmem:[#allocation10 + $0x10] ss:$8 sps:$4 sm:$0xff]  }
 0x3b6   : > { %1902 = vmatprep.subr.bf16.mxu0 %v6497_v25  ;;  %1955 = vmatprep.subr.bf16.mxu1 %v6499_v26  ;;  %v7255_v23 = vld [vmem:[#allocation10 + $0x110] ss:$8 sps:$4 sm:$0xff]   ;;  %v7260_v25 = vld [vmem:[#allocation10 + $0x4] ss:$8 sps:$4 sm:$0xff]  }
 0x3b7   : > { %v7263_v26 = vld [vmem:[#allocation10 + $0x104] ss:$8 sps:$4 sm:$0xff]  }
 0x3b9   : > { %1903 = vmatpush2.bf16.msra.mxu0 %v6496_v29  ;;  %1956 = vmatpush2.bf16.msra.mxu1 %v6498_v30  ;;  %v7264_v29 = vld [vmem:[#allocation10 + $0xf0] ss:$8 sps:$4 sm:$0xff]  }
 0x3ba   : > { %1904 = vmatprep.subr.bf16.mxu0 %v6489_v40  ;;  %1957 = vmatprep.subr.bf16.mxu1 %v6491_v42  ;;  %v7267_v30 = vld [vmem:[#allocation10 + $0x1f0] ss:$8 sps:$4 sm:$0xff]   ;;  %v7272_v40 = vld [vmem:[#allocation10 + $0xe4] ss:$8 sps:$4 sm:$0xff]  }
 0x3bb   : > { %v7275_v42 = vld [vmem:[#allocation10 + $0x1e4] ss:$8 sps:$4 sm:$0xff]  }
 0x3bd   : > { %1905 = vmatpush2.bf16.msra.mxu0 %v6488_v38  ;;  %1958 = vmatpush2.bf16.msra.mxu1 %v6490_v39  ;;  %v7276_v38 = vld [vmem:[#allocation10 + $0xd0] ss:$8 sps:$4 sm:$0xff]  }
 0x3be   : > { %1906 = vmatprep.subr.bf16.mxu0 %v6481_v41  ;;  %1959 = vmatprep.subr.bf16.mxu1 %v6483_v44  ;;  %v7279_v39 = vld [vmem:[#allocation10 + $0x1d0] ss:$8 sps:$4 sm:$0xff]   ;;  %v7284_v41 = vld [vmem:[#allocation10 + $0xc4] ss:$8 sps:$4 sm:$0xff]  }
 0x3bf   : > { %v7287_v44 = vld [vmem:[#allocation10 + $0x1c4] ss:$8 sps:$4 sm:$0xff]  }
 0x3c1   : > { %1907 = vmatpush2.bf16.msra.mxu0 %v6480_v56  ;;  %1960 = vmatpush2.bf16.msra.mxu1 %v6482_v58  ;;  %v7288_v56 = vld [vmem:[#allocation10 + $0xb0] ss:$8 sps:$4 sm:$0xff]  }
 0x3c2   : > { %1908 = vmatprep.subr.bf16.mxu0 %v6473_v59  ;;  %1961 = vmatprep.subr.bf16.mxu1 %v6475_v36  ;;  %v7291_v58 = vld [vmem:[#allocation10 + $0x1b0] ss:$8 sps:$4 sm:$0xff]   ;;  %v7296_v59 = vld [vmem:[#allocation10 + $0xa4] ss:$8 sps:$4 sm:$0xff]  }
 0x3c3   : > { %v7299_v36 = vld [vmem:[#allocation10 + $0x1a4] ss:$8 sps:$4 sm:$0xff]  }
 0x3c5   : > { %1909 = vmatpush2.bf16.msra.mxu0 %v6472_v46  ;;  %1962 = vmatpush2.bf16.msra.mxu1 %v6474_v60  ;;  %v7294_v46 = vld [vmem:[#allocation10 + $0xa0] ss:$8 sps:$4 sm:$0xff]  }
 0x3c6   : > { %2918 = vmatprep.subr.bf16.mxu0 %v7218_v61  ;;  %2971 = vmatprep.subr.bf16.mxu1 %v7221_v62  ;;  %v7297_v60 = vld [vmem:[#allocation10 + $0x1a0] ss:$8 sps:$4 sm:$0xff]   ;;  %v7302_v61 = vld [vmem:[#allocation10 + $0x94] ss:$8 sps:$4 sm:$0xff]  }
 0x3c7   : > { %v7305_v62 = vld [vmem:[#allocation10 + $0x194] ss:$8 sps:$4 sm:$0xff]  }
 0x3c8   : > { %1911 = vmatmul.mubr.bf16.vlgmr.msra.gmra.mxu0 %v8391_v24  ;;  %1964 = vmatmul.mubr.bf16.vlgmr.msra.gmra.mxu1 %v8391_v24 }
 0x3c9   : > { %1920 = vmatprep.mubr.bf16.mxu0 %v8405_v55  ;;  %1973 = vmatprep.mubr.bf16.mxu1 %v8405_v55 }
 0x3ca   : > { %2919 = vmatpush1.bf16.msra.mxu0 %v7216_v63  ;;  %2972 = vmatpush1.bf16.msra.mxu1 %v7219_v1  ;;  %v7300_v63 = vld [vmem:[#allocation10 + $0x90] ss:$8 sps:$4 sm:$0xff]  }
 0x3cb   : > { %2920 = vmatprep.subr.bf16.mxu0 %v7224_v2  ;;  %2973 = vmatprep.subr.bf16.mxu1 %v7227_v3  ;;  %v7303_v1 = vld [vmem:[#allocation10 + $0x190] ss:$8 sps:$4 sm:$0xff]   ;;  %v7308_v2 = vld [vmem:[#allocation10 + $0x84] ss:$8 sps:$4 sm:$0xff]  }
 0x3cc   : > { %v7311_v3 = vld [vmem:[#allocation10 + $0x184] ss:$8 sps:$4 sm:$0xff]  }
 0x3ce   : > { %2921 = vmatpush1.bf16.msra.mxu0 %v7222_v4  ;;  %2974 = vmatpush1.bf16.msra.mxu1 %v7225_v5  ;;  %v7306_v4 = vld [vmem:[#allocation10 + $0x80] ss:$8 sps:$4 sm:$0xff]  }
 0x3cf   : > { %2922 = vmatprep.subr.bf16.mxu0 %v7230_v6  ;;  %2975 = vmatprep.subr.bf16.mxu1 %v7233_v43  ;;  %v7309_v5 = vld [vmem:[#allocation10 + $0x180] ss:$8 sps:$4 sm:$0xff]   ;;  %v7314_v6 = vld [vmem:[#allocation10 + $0x274] ss:$8 sps:$4 sm:$0xff]  }
 0x3d0   : > { %1921 = vmatmul.mubr.bf16.gmra.mxu0 %v8407_v49  ;;  %1974 = vmatmul.mubr.bf16.gmra.mxu1 %v8407_v49  ;;  %v7317_v43 = vld [vmem:[#allocation10 + $0x374] ss:$8 sps:$4 sm:$0xff]  }
 0x3d2   : > { %2923 = vmatpush1.bf16.msra.mxu0 %v7228_v53  ;;  %2976 = vmatpush1.bf16.msra.mxu1 %v7231_v45  ;;  %v7990_v53 = vmov 1966171168  }
 0x3d3   : > { %2924 = vmatprep.subr.bf16.mxu0 %v7236_v57  ;;  %2977 = vmatprep.subr.bf16.mxu1 %v7239_v7  ;;  %v2004_v45 = vunpack.c.l.s4 %v7990_v53  ;;  %v7321_v53 = vld [vmem:[#allocation10 + $0x360] ss:$8 sps:$4 sm:$0xff]  }
 0x3d5   : > { %v2005_v57 = vunpack.c.0.s8 %v2004_v45  ;;  %v7326_v45 = vld [vmem:[#allocation10 + $0x254] ss:$8 sps:$4 sm:$0xff]  }
 0x3d6   : > { %2925 = vmatpush1.bf16.msra.mxu0 %v7234_v8  ;;  %2978 = vmatpush1.bf16.msra.mxu1 %v7237_v9  ;;  %v8427_v8 = vld [vmem:[%s8871_s6] sm:$0xff] }
 0x3d7   : > { %2926 = vmatprep.subr.bf16.mxu0 %v7242_v10  ;;  %2979 = vmatprep.subr.bf16.mxu1 %v7245_v11  ;;  %v8422_v7 = vsub.s32 %v2005_v57, %v8259_v50 }
 0x3d9   : > { %v2009_v9 = vrot.slane %v8427_v8, %v8422_v7 }
 0x3da   : > { %2927 = vmatpush1.bf16.msra.mxu0 %v7240_v12  ;;  %2980 = vmatpush1.bf16.msra.mxu1 %v7243_v13 }
 0x3db   : > { %2928 = vmatprep.subr.bf16.mxu0 %v7248_v14  ;;  %2981 = vmatprep.subr.bf16.mxu1 %v7251_v15  ;;  %v2017_v10 = vcombine.high %v2009_v9, %v2009_v9  ;;  %v2025_v11 = vrot.slane %v2009_v9, %v8422_v7 }
 0x3dd   : > { %v2039_v12 = vrot.slane %v2017_v10, %v8422_v7  ;;  %v2047_v13 = vcombine.high %v2025_v11, %v2025_v11 }
 0x3de   : > { %2929 = vmatpush1.bf16.msra.mxu0 %v7246_v16  ;;  %2982 = vmatpush1.bf16.msra.mxu1 %v7249_v17  ;;  %v2052_v17 = vpack.i.b16 %v2025_v11, %v2025_v11  ;;  %v7329_v11 = vld [vmem:[#allocation10 + $0x354] ss:$8 sps:$4 sm:$0xff]  }
 0x3df   : > { %2930 = vmatprep.subr.bf16.mxu0 %v7254_v20  ;;  %2983 = vmatprep.subr.bf16.mxu1 %v7257_v21  ;;  %v2049_v14 = vcombine.high %v2039_v12, %v2039_v12  ;;  %v2066_v50 = vpack.i.b16 %v2047_v13, %v2047_v13  ;;  %v2059_v20 = vpack.i.b16 %v2039_v12, %v2039_v12 }
 0x3e1   : > { %v2073_v21 = vpack.i.b16 %v2049_v14, %v2049_v14  ;;  %v7324_v14 = vld [vmem:[#allocation10 + $0x250] ss:$8 sps:$4 sm:$0xff]  }
 0x3e2   : > { %2931 = vmatpush1.bf16.msra.mxu0 %v7252_v22  ;;  %2984 = vmatpush1.bf16.msra.mxu1 %v7255_v23 }
 0x3e3   : > { %2932 = vmatprep.subr.bf16.mxu0 %v7260_v25  ;;  %2985 = vmatprep.subr.bf16.mxu1 %v7263_v26  ;;  %v2057_v26 = vrot.slane %v2052_v17, %v8265_v52  ;;  %v7332_v17 = vld [vmem:[#allocation10 + $0x244] ss:$8 sps:$4 sm:$0xff]  }
 0x3e6   : > { %2933 = vmatpush1.bf16.msra.mxu0 %v7258_v18  ;;  %2986 = vmatpush1.bf16.msra.mxu1 %v7261_v35  ;;  %v2071_v35 = vrot.slane %v2066_v50, %v8265_v52 }
 0x3e7   : > { %2934 = vmatprep.subr.bf16.mxu0 %v7266_v19  ;;  %2987 = vmatprep.subr.bf16.mxu1 %v7269_v28 }
 0x3ea   : > { %2935 = vmatpush2.bf16.msra.mxu0 %v7264_v29  ;;  %2988 = vmatpush2.bf16.msra.mxu1 %v7267_v30  ;;  %v2064_v29 = vrot.slane %v2059_v20, %v8265_v52  ;;  %v2078_v30 = vrot.slane %v2073_v21, %v8265_v52  ;;  %v7335_v20 = vld [vmem:[#allocation10 + $0x344] ss:$8 sps:$4 sm:$0xff]   ;;  %v7330_v21 = vld [vmem:[#allocation10 + $0x240] ss:$8 sps:$4 sm:$0xff]  }
 0x3eb   : > { %2936 = vmatprep.subr.bf16.mxu0 %v7272_v40  ;;  %2989 = vmatprep.subr.bf16.mxu1 %v7275_v42 }
 0x3ee   : > { %2937 = vmatpush2.bf16.msra.mxu0 %v7270_v32  ;;  %2990 = vmatpush2.bf16.msra.mxu1 %v7273_v33 }
 0x3ef   : > { %2938 = vmatprep.subr.bf16.mxu0 %v7278_v47  ;;  %2991 = vmatprep.subr.bf16.mxu1 %v7281_v34 }
 0x3f2   : > { %2939 = vmatpush2.bf16.msra.mxu0 %v7276_v38  ;;  %2992 = vmatpush2.bf16.msra.mxu1 %v7279_v39 }
 0x3f3   : > { %2940 = vmatprep.subr.bf16.mxu0 %v7284_v41  ;;  %2993 = vmatprep.subr.bf16.mxu1 %v7287_v44 }
 0x3f6   : > { %2941 = vmatpush2.bf16.msra.mxu0 %v7282_v48  ;;  %2994 = vmatpush2.bf16.msra.mxu1 %v7285_v31 }
 0x3f7   : > { %2942 = vmatprep.subr.bf16.mxu0 %v7290_v27  ;;  %2995 = vmatprep.subr.bf16.mxu1 %v7293_v54 }
 0x3fa   : > { %2943 = vmatpush2.bf16.msra.mxu0 %v7288_v56  ;;  %2996 = vmatpush2.bf16.msra.mxu1 %v7291_v58  ;;  %v7312_v56 = vld [vmem:[#allocation10 + $0x270] ss:$8 sps:$4 sm:$0xff]  }
 0x3fb   : > { %2944 = vmatprep.subr.bf16.mxu0 %v7296_v59  ;;  %2997 = vmatprep.subr.bf16.mxu1 %v7299_v36 }
 0x3fe   : > { %2945 = vmatpush2.bf16.msra.mxu0 %v7294_v46  ;;  %2998 = vmatpush2.bf16.msra.mxu1 %v7297_v60  ;;  %v7315_v60 = vld [vmem:[#allocation10 + $0x370] ss:$8 sps:$4 sm:$0xff]  }
 0x3ff   : > { %2946 = vmatprep.subr.bf16.mxu0 %v7302_v61  ;;  %2999 = vmatprep.subr.bf16.mxu1 %v7305_v62  ;;  %v7320_v61 = vld [vmem:[#allocation10 + $0x264] ss:$8 sps:$4 sm:$0xff]  }
 0x402   : > { %2947 = vmatpush2.bf16.msra.mxu0 %v7300_v63  ;;  %3000 = vmatpush2.bf16.msra.mxu1 %v7303_v1  ;;  %v7323_v1 = vld [vmem:[#allocation10 + $0x364] ss:$8 sps:$4 sm:$0xff]  }
 0x403   : > { %2948 = vmatprep.subr.bf16.mxu0 %v7308_v2  ;;  %3001 = vmatprep.subr.bf16.mxu1 %v7311_v3 }
 0x406   : > { %2949 = vmatpush2.bf16.msra.mxu0 %v7306_v4  ;;  %3002 = vmatpush2.bf16.msra.mxu1 %v7309_v5 }
 0x407   : > { %3024 = vmatprep.subr.bf16.mxu0 %v7314_v6  ;;  %3077 = vmatprep.subr.bf16.mxu1 %v7317_v43  ;;  %v7318_v6 = vld [vmem:[#allocation10 + $0x260] ss:$8 sps:$4 sm:$0xff]  }
 0x448   : > { %v1806_v15 = vpop.f32.mrf.mxu0  ;;  %v1859_v16 = vpop.f32.mrf.mxu1 }
 0x44a   : > { %v1808_v22 = vpop.f32.mrf.mxu0  ;;  %v1861_v23 = vpop.f32.mrf.mxu1 }
 0x44c   : > { %v1810_v25 = vpop.f32.mrf.mxu0  ;;  %v1863_v18 = vpop.f32.mrf.mxu1 }
 0x44d   : > { %v1984_v19 = vpack.c.bf16 %v1810_v25, %v1806_v15  ;;  %v1986_v28 = vpack.c.bf16 %v1863_v18, %v1859_v16  ;;  %v7327_v15 = vld [vmem:[#allocation10 + $0x350] ss:$8 sps:$4 sm:$0xff]   ;;  %v7341_v25 = vld [vmem:[#allocation10 + $0x334] ss:$8 sps:$4 sm:$0xff]  }
 0x44e   : > { %v1812_v40 = vpop.f32.mrf.mxu0  ;;  %v1865_v42 = vpop.f32.mrf.mxu1  ;;  %v7339_v18 = vld [vmem:[#allocation10 + $0x330] ss:$8 sps:$4 sm:$0xff]  }
 0x44f   : > { %v1985_v32 = vpack.c.bf16 %v1812_v40, %v1808_v22  ;;  %v1987_v33 = vpack.c.bf16 %v1865_v42, %v1861_v23  ;;  %v2107_v47 = vadd.bf16 %v2057_v26, %v1984_v19  ;;  %v2109_v34 = vadd.bf16 %v2071_v35, %v1986_v28  ;;  %v7333_v22 = vld [vmem:[#allocation10 + $0x340] ss:$8 sps:$4 sm:$0xff]   ;;  %v7338_v23 = vld [vmem:[#allocation10 + $0x234] ss:$8 sps:$4 sm:$0xff]   ;;  %v7347_v19 = vld [vmem:[#allocation10 + $0x324] ss:$8 sps:$4 sm:$0xff]  }
 0x450   : > { %v1816_v38 = vpop.f32.mrf.mxu0  ;;  %v1869_v39 = vpop.f32.mrf.mxu1  ;;  %v7342_v28 = vld [vmem:[#allocation10 + $0x220] ss:$8 sps:$4 sm:$0xff]   ;;  %v7353_v40 = vld [vmem:[#allocation10 + $0x314] ss:$8 sps:$4 sm:$0xff]   ;;  %v7348_v42 = vld [vmem:[#allocation10 + $0x210] ss:$8 sps:$4 sm:$0xff]  }
 0x451   : > { %v2108_v41 = vadd.bf16 %v2064_v29, %v1985_v32  ;;  %v2110_v44 = vadd.bf16 %v2078_v30, %v1987_v33  ;;  %v2123_v58 = vmax.bf16 %v7989_v0, %v2107_v47  ;;  %v2125_v59 = vmax.bf16 %v7989_v0, %v2109_v34  ;;  %v7351_v32 = vld [vmem:[#allocation10 + $0x310] ss:$8 sps:$4 sm:$0xff]   ;;  %v7356_v33 = vld [vmem:[#allocation10 + $0x204] ss:$8 sps:$4 sm:$0xff]   ;;  %v7354_v34 = vld [vmem:[#allocation10 + $0x200] ss:$8 sps:$4 sm:$0xff]  }
 0x452   : > { %v1818_v48 = vpop.f32.mrf.mxu0  ;;  %v1871_v31 = vpop.f32.mrf.mxu1  ;;  %v7359_v47 = vld [vmem:[#allocation10 + $0x304] ss:$8 sps:$4 sm:$0xff]  }
 0x453   : > { %v2124_v27 = vmax.bf16 %v7989_v0, %v2108_v41  ;;  %v2126_v54 = vmax.bf16 %v7989_v0, %v2110_v44  ;;  %v7365_v41 = vld [vmem:[#allocation10 + $0x3f4] ss:$8 sps:$4 sm:$0xff]   ;;  %v7360_v44 = vld [vmem:[#allocation10 + $0x2f0] ss:$8 sps:$4 sm:$0xff]  }
 0x454   : > { %v1820_v36 = vpop.f32.mrf.mxu0  ;;  %v1873_v46 = vpop.f32.mrf.mxu1 }
 0x455   : > { %v1992_v62 = vpack.c.bf16 %v1820_v36, %v1816_v38  ;;  %v1994_v63 = vpack.c.bf16 %v1873_v46, %v1869_v39  ;;  %2950 = vmatprep.mubr.bf16.mxu0 %v2124_v27  ;;  %3003 = vmatprep.mubr.bf16.mxu1 %v2126_v54  ;;  %v7357_v38 = vld [vmem:[#allocation10 + $0x300] ss:$8 sps:$4 sm:$0xff]   ;;  %v7362_v39 = vld [vmem:[#allocation10 + $0x2f4] ss:$8 sps:$4 sm:$0xff]   ;;  %v7371_v27 = vld [vmem:[#allocation10 + $0x3e4] ss:$8 sps:$4 sm:$0xff]   ;;  %v2002_v54 = vcombine.high %v8427_v8, %v8427_v8 }
 0x456   : > { %v1822_v2 = vpop.f32.mrf.mxu0  ;;  %v1875_v3 = vpop.f32.mrf.mxu1  ;;  %2951 = vmatmul.mubr.bf16.vlgmr.msra.gmra.mxu0 %v2123_v58  ;;  %3004 = vmatmul.mubr.bf16.vlgmr.msra.gmra.mxu1 %v2125_v59  ;;  %v7369_v58 = vld [vmem:[#allocation10 + $0x3e0] ss:$8 sps:$4 sm:$0xff]   ;;  %v7374_v59 = vld [vmem:[#allocation10 + $0x2d4] ss:$8 sps:$4 sm:$0xff]  }
 0x457   : > { %v1993_v4 = vpack.c.bf16 %v1822_v2, %v1818_v48  ;;  %v1995_v5 = vpack.c.bf16 %v1875_v3, %v1871_v31  ;;  %3025 = vmatpush1.bf16.msra.mxu0 %v7312_v56  ;;  %v2115_v43 = vadd.bf16 %v2057_v26, %v1992_v62  ;;  %3078 = vmatpush1.bf16.msra.mxu1 %v7315_v60  ;;  %v7336_v26 = vld [vmem:[#allocation10 + $0x230] ss:$8 sps:$4 sm:$0xff]   ;;  %v7368_v31 = vld [vmem:[#allocation10 + $0x2e4] ss:$8 sps:$4 sm:$0xff]   ;;  %v7366_v56 = vld [vmem:[#allocation10 + $0x2e0] ss:$8 sps:$4 sm:$0xff]  }
 0x458   : > { %3026 = vmatprep.subr.bf16.mxu0 %v7320_v61  ;;  %v2117_v57 = vadd.bf16 %v2071_v35, %v1994_v63  ;;  %3079 = vmatprep.subr.bf16.mxu1 %v7323_v1  ;;  %v7344_v35 = vld [vmem:[#allocation10 + $0x224] ss:$8 sps:$4 sm:$0xff]   ;;  %v7363_v48 = vld [vmem:[#allocation10 + $0x3f0] ss:$8 sps:$4 sm:$0xff]   ;;  %v7377_v36 = vld [vmem:[#allocation10 + $0x3d4] ss:$8 sps:$4 sm:$0xff]   ;;  %v2016_v46 = vrot.slane %v2002_v54, %v8422_v7 }
 0x459   : > { %v2116_v9 = vadd.bf16 %v2064_v29, %v1993_v4  ;;  %v2118_v10 = vadd.bf16 %v2078_v30, %v1995_v5  ;;  %v2131_v16 = vmax.bf16 %v7989_v0, %v2115_v43  ;;  %v7345_v29 = vld [vmem:[#allocation10 + $0x320] ss:$8 sps:$4 sm:$0xff]   ;;  %v7350_v30 = vld [vmem:[#allocation10 + $0x214] ss:$8 sps:$4 sm:$0xff]   ;;  %v7372_v60 = vld [vmem:[#allocation10 + $0x2d0] ss:$8 sps:$4 sm:$0xff]  }
 0x45a   : > { %v2133_v50 = vmax.bf16 %v7989_v0, %v2117_v57  ;;  %v7375_v61 = vld [vmem:[#allocation10 + $0x3d0] ss:$8 sps:$4 sm:$0xff]   ;;  %v7380_v62 = vld [vmem:[#allocation10 + $0x2c4] ss:$8 sps:$4 sm:$0xff]   ;;  %v2018_v1 = vcombine.high %v2016_v46, %v2016_v46  ;;  %v7378_v8 = vld [vmem:[#allocation10 + $0x2c0] ss:$8 sps:$4 sm:$0xff]   ;;  %v2032_v4 = vrot.slane %v2016_v46, %v8422_v7 }
 0x45b   : > { %3027 = vmatpush1.bf16.msra.mxu0 %v7318_v6  ;;  %v2132_v12 = vmax.bf16 %v7989_v0, %v2116_v9  ;;  %v2134_v13 = vmax.bf16 %v7989_v0, %v2118_v10  ;;  %3080 = vmatpush1.bf16.msra.mxu1 %v7321_v53  ;;  %v7383_v63 = vld [vmem:[#allocation10 + $0x3c4] ss:$8 sps:$4 sm:$0xff]   ;;  %v7381_v2 = vld [vmem:[#allocation10 + $0x3c0] ss:$8 sps:$4 sm:$0xff]   ;;  %v7386_v3 = vld [vmem:[#allocation10 + $0x2b4] ss:$8 sps:$4 sm:$0xff]  }
 0x45c   : > { %3028 = vmatprep.subr.bf16.mxu0 %v7326_v45  ;;  %3081 = vmatprep.subr.bf16.mxu1 %v7329_v11  ;;  %v7389_v5 = vld [vmem:[#allocation10 + $0x3b4] ss:$8 sps:$4 sm:$0xff]   ;;  %v2046_v6 = vrot.slane %v2018_v1, %v8422_v7  ;;  %v7384_v43 = vld [vmem:[#allocation10 + $0x2b0] ss:$8 sps:$4 sm:$0xff]   ;;  %v7392_v45 = vld [vmem:[#allocation10 + $0x2a4] ss:$8 sps:$4 sm:$0xff]   ;;  %v2048_v57 = vcombine.high %v2032_v4, %v2032_v4 }
 0x45d   : > { %2960 = vmatprep.mubr.bf16.mxu0 %v2132_v12  ;;  %3013 = vmatprep.mubr.bf16.mxu1 %v2134_v13  ;;  %v7387_v53 = vld [vmem:[#allocation10 + $0x3b0] ss:$8 sps:$4 sm:$0xff]   ;;  %v7395_v9 = vld [vmem:[#allocation10 + $0x3a4] ss:$8 sps:$4 sm:$0xff]   ;;  %v7390_v11 = vld [vmem:[#allocation10 + $0x2a0] ss:$8 sps:$4 sm:$0xff]  }
 0x45e   : > { %2961 = vmatmul.mubr.bf16.gmra.mxu0 %v2131_v16  ;;  %3014 = vmatmul.mubr.bf16.gmra.mxu1 %v2133_v50  ;;  %v2050_v10 = vcombine.high %v2046_v6, %v2046_v6  ;;  %v2094_v16 = vpack.i.b16 %v2048_v57, %v2048_v57  ;;  %v2087_v50 = vpack.i.b16 %v2046_v6, %v2046_v6 }
 0x45f   : > { %3029 = vmatpush1.bf16.msra.mxu0 %v7324_v14  ;;  %3082 = vmatpush1.bf16.msra.mxu1 %v7327_v15  ;;  %v7393_v14 = vld [vmem:[#allocation10 + $0x3a0] ss:$8 sps:$4 sm:$0xff]   ;;  %v2080_v15 = vpack.i.b16 %v2032_v4, %v2032_v4 }
 0x460   : > { %3030 = vmatprep.subr.bf16.mxu0 %v7332_v17  ;;  %3083 = vmatprep.subr.bf16.mxu1 %v7335_v20  ;;  %v7399_v17 = vld [vmem:[#allocation10 + $0x294] ss:$8 sps:$4 sm:$0xff]   ;;  %v2101_v20 = vpack.i.b16 %v2050_v10, %v2050_v10 }
 0x463   : > { %3031 = vmatpush1.bf16.msra.mxu0 %v7330_v21  ;;  %3084 = vmatpush1.bf16.msra.mxu1 %v7333_v22  ;;  %v7402_v21 = vld [vmem:[#allocation10 + $0x394] ss:$8 sps:$4 sm:$0xff]  }
 0x464   : > { %3032 = vmatprep.subr.bf16.mxu0 %v7338_v23  ;;  %3085 = vmatprep.subr.bf16.mxu1 %v7341_v25  ;;  %v7397_v25 = vld [vmem:[#allocation10 + $0x290] ss:$8 sps:$4 sm:$0xff]  }
 0x467   : > { %3033 = vmatpush1.bf16.msra.mxu0 %v7336_v26  ;;  %3086 = vmatpush1.bf16.msra.mxu1 %v7339_v18  ;;  %v2085_v18 = vrot.slane %v2080_v15, %v8265_v52 }
 0x468   : > { %3034 = vmatprep.subr.bf16.mxu0 %v7344_v35  ;;  %3087 = vmatprep.subr.bf16.mxu1 %v7347_v19  ;;  %v2099_v19 = vrot.slane %v2094_v16, %v8265_v52 }
 0x46b   : > { %3035 = vmatpush1.bf16.msra.mxu0 %v7342_v28  ;;  %3088 = vmatpush1.bf16.msra.mxu1 %v7345_v29  ;;  %v7400_v28 = vld [vmem:[#allocation10 + $0x390] ss:$8 sps:$4 sm:$0xff]   ;;  %v7405_v29 = vld [vmem:[#allocation10 + $0x284] ss:$8 sps:$4 sm:$0xff]  }
 0x46c   : > { %3036 = vmatprep.subr.bf16.mxu0 %v7350_v30  ;;  %3089 = vmatprep.subr.bf16.mxu1 %v7353_v40 }
 0x46f   : > { %3037 = vmatpush1.bf16.msra.mxu0 %v7348_v42  ;;  %3090 = vmatpush1.bf16.msra.mxu1 %v7351_v32  ;;  %v2092_v42 = vrot.slane %v2087_v50, %v8265_v52  ;;  %v2106_v32 = vrot.slane %v2101_v20, %v8265_v52 }
 0x470   : > { %3038 = vmatprep.subr.bf16.mxu0 %v7356_v33  ;;  %3091 = vmatprep.subr.bf16.mxu1 %v7359_v47  ;;  %v7408_v33 = vld [vmem:[#allocation10 + $0x384] ss:$8 sps:$4 sm:$0xff]  }
 0x473   : > { %3039 = vmatpush1.bf16.msra.mxu0 %v7354_v34  ;;  %3092 = vmatpush1.bf16.msra.mxu1 %v7357_v38 }
 0x474   : > { %3040 = vmatprep.subr.bf16.mxu0 %v7362_v39  ;;  %3093 = vmatprep.subr.bf16.mxu1 %v7365_v41  ;;  %v7403_v41 = vld [vmem:[#allocation10 + $0x280] ss:$8 sps:$4 sm:$0xff]  }
 0x477   : > { %3041 = vmatpush2.bf16.msra.mxu0 %v7360_v44  ;;  %3094 = vmatpush2.bf16.msra.mxu1 %v7363_v48 }
 0x478   : > { %3042 = vmatprep.subr.bf16.mxu0 %v7368_v31  ;;  %3095 = vmatprep.subr.bf16.mxu1 %v7371_v27  ;;  %v7406_v27 = vld [vmem:[#allocation10 + $0x380] ss:$8 sps:$4 sm:$0xff]  }
 0x47b   : > { %3043 = vmatpush2.bf16.msra.mxu0 %v7366_v56  ;;  %3096 = vmatpush2.bf16.msra.mxu1 %v7369_v58 }
 0x47c   : > { %3044 = vmatprep.subr.bf16.mxu0 %v7374_v59  ;;  %3097 = vmatprep.subr.bf16.mxu1 %v7377_v36 }
 0x47f   : > { %3045 = vmatpush2.bf16.msra.mxu0 %v7372_v60  ;;  %3098 = vmatpush2.bf16.msra.mxu1 %v7375_v61 }
 0x480   : > { %3046 = vmatprep.subr.bf16.mxu0 %v7380_v62  ;;  %3099 = vmatprep.subr.bf16.mxu1 %v7383_v63 }
 0x483   : > { %3047 = vmatpush2.bf16.msra.mxu0 %v7378_v8  ;;  %3100 = vmatpush2.bf16.msra.mxu1 %v7381_v2 }
 0x484   : > { %3048 = vmatprep.subr.bf16.mxu0 %v7386_v3  ;;  %3101 = vmatprep.subr.bf16.mxu1 %v7389_v5 }
 0x487   : > { %3049 = vmatpush2.bf16.msra.mxu0 %v7384_v43  ;;  %3102 = vmatpush2.bf16.msra.mxu1 %v7387_v53 }
 0x488   : > { %v1912_v12 = vpop.f32.mrf.mxu0  ;;  %v1965_v13 = vpop.f32.mrf.mxu1  ;;  %3050 = vmatprep.subr.bf16.mxu0 %v7392_v45  ;;  %3103 = vmatprep.subr.bf16.mxu1 %v7395_v9 }
 0x48a   : > { %v1914_v22 = vpop.f32.mrf.mxu0  ;;  %v1967_v23 = vpop.f32.mrf.mxu1 }
 0x48b   : > { %3051 = vmatpush2.bf16.msra.mxu0 %v7390_v11  ;;  %3104 = vmatpush2.bf16.msra.mxu1 %v7393_v14 }
 0x48c   : > { %v1916_v26 = vpop.f32.mrf.mxu0  ;;  %v1969_v35 = vpop.f32.mrf.mxu1  ;;  %3052 = vmatprep.subr.bf16.mxu0 %v7399_v17  ;;  %3105 = vmatprep.subr.bf16.mxu1 %v7402_v21 }
 0x48d   : > { %v1988_v30 = vpack.c.bf16 %v1916_v26, %v1912_v12  ;;  %v1990_v40 = vpack.c.bf16 %v1969_v35, %v1965_v13 }
 0x48e   : > { %v1918_v47 = vpop.f32.mrf.mxu0  ;;  %v1971_v34 = vpop.f32.mrf.mxu1 }
 0x48f   : > { %v1989_v38 = vpack.c.bf16 %v1918_v47, %v1914_v22  ;;  %v1991_v39 = vpack.c.bf16 %v1971_v34, %v1967_v23  ;;  %3053 = vmatpush2.bf16.msra.mxu0 %v7397_v25  ;;  %v2111_v44 = vadd.bf16 %v2085_v18, %v1988_v30  ;;  %3106 = vmatpush2.bf16.msra.mxu1 %v7400_v28  ;;  %v6369_v25 = vld [vmem:[%s8872_s7 + $0x7] ss:$8 sm:$0x3] }
 0x490   : > { %v1922_v48 = vpop.f32.mrf.mxu0  ;;  %v1975_v31 = vpop.f32.mrf.mxu1  ;;  %3054 = vmatprep.subr.bf16.mxu0 %v7405_v29  ;;  %v2113_v54 = vadd.bf16 %v2099_v19, %v1990_v40  ;;  %3107 = vmatprep.subr.bf16.mxu1 %v7408_v33  ;;  %v2271_v35 = vrot.slane %v6369_v25, %v8265_v52  ;;  %v2275_v28 = vrot.slane %v6369_v25, %v8262_v51 }
 0x491   : > { %v2112_v56 = vadd.bf16 %v2092_v42, %v1989_v38  ;;  %v2114_v58 = vadd.bf16 %v2106_v32, %v1991_v39  ;;  %v2127_v61 = vmax.bf16 %v7989_v0, %v2111_v44 }
 0x492   : > { %v1924_v59 = vpop.f32.mrf.mxu0  ;;  %v1977_v36 = vpop.f32.mrf.mxu1  ;;  %v2129_v1 = vmax.bf16 %v7989_v0, %v2113_v54 }
 0x493   : > { %3055 = vmatpush2.bf16.msra.mxu0 %v7403_v41  ;;  %v2128_v46 = vmax.bf16 %v7989_v0, %v2112_v56  ;;  %v2130_v60 = vmax.bf16 %v7989_v0, %v2114_v58  ;;  %3108 = vmatpush2.bf16.msra.mxu1 %v7406_v27 }
 0x494   : > { %v1926_v62 = vpop.f32.mrf.mxu0  ;;  %v1979_v63 = vpop.f32.mrf.mxu1 }
 0x495   : > { %v1996_v8 = vpack.c.bf16 %v1926_v62, %v1922_v48  ;;  %v1998_v2 = vpack.c.bf16 %v1979_v63, %v1975_v31  ;;  %3056 = vmatprep.mubr.bf16.mxu0 %v2128_v46  ;;  %3109 = vmatprep.mubr.bf16.mxu1 %v2130_v60 }
 0x496   : > { %v1928_v3 = vpop.f32.mrf.mxu0  ;;  %v1981_v4 = vpop.f32.mrf.mxu1  ;;  %3057 = vmatmul.mubr.bf16.vlgmr.msra.gmra.mxu0 %v2127_v61  ;;  %3110 = vmatmul.mubr.bf16.vlgmr.msra.gmra.mxu1 %v2129_v1 }
 0x497   : > { %v1997_v5 = vpack.c.bf16 %v1928_v3, %v1924_v59  ;;  %v1999_v6 = vpack.c.bf16 %v1981_v4, %v1977_v36  ;;  %v2119_v43 = vadd.bf16 %v2085_v18, %v1996_v8  ;;  %v2121_v53 = vadd.bf16 %v2099_v19, %v1998_v2 }
 0x499   : > { %v2120_v45 = vadd.bf16 %v2092_v42, %v1997_v5  ;;  %v2122_v57 = vadd.bf16 %v2106_v32, %v1999_v6  ;;  %v2135_v11 = vmax.bf16 %v7989_v0, %v2119_v43  ;;  %v2137_v12 = vmax.bf16 %v7989_v0, %v2121_v53 }
 0x49b   : > { %v2136_v9 = vmax.bf16 %v7989_v0, %v2120_v45  ;;  %v2138_v10 = vmax.bf16 %v7989_v0, %v2122_v57 }
 0x49d   : > { %3066 = vmatprep.mubr.bf16.mxu0 %v2136_v9  ;;  %3119 = vmatprep.mubr.bf16.mxu1 %v2138_v10 }
 0x49e   : > { %3067 = vmatmul.mubr.bf16.gmra.mxu0 %v2135_v11  ;;  %3120 = vmatmul.mubr.bf16.gmra.mxu1 %v2137_v12 }
 0x516   : > { %v2952_v13 = vpop.f32.mrf.mxu0  ;;  %v3005_v14 = vpop.f32.mrf.mxu1 }
 0x517   : > { %v2953_v30 = vadd.f32 %v2952_v13, %v2271_v35 }
 0x518   : > { %v2954_v15 = vpop.f32.mrf.mxu0  ;;  %v3007_v16 = vpop.f32.mrf.mxu1 }
 0x519   : > { %v2955_v42 = vadd.f32 %v2954_v15, %v2275_v28  ;;  %v3006_v34 = vadd.f32 %v3005_v14, %v2953_v30 }
 0x51a   : > { %v2956_v17 = vpop.f32.mrf.mxu0  ;;  %v3009_v50 = vpop.f32.mrf.mxu1 }
 0x51b   : > { %v2957_v32 = vadd.f32 %v2956_v17, %v2271_v35  ;;  %v3008_v44 = vadd.f32 %v3007_v16, %v2955_v42 }
 0x51c   : > { %v2958_v20 = vpop.f32.mrf.mxu0  ;;  %v3011_v21 = vpop.f32.mrf.mxu1 }
 0x51d   : > { %v2959_v38 = vadd.f32 %v2958_v20, %v2275_v28  ;;  %v3010_v48 = vadd.f32 %v3009_v50, %v2957_v32 }
 0x51e   : > { %v2962_v22 = vpop.f32.mrf.mxu0  ;;  %v3015_v23 = vpop.f32.mrf.mxu1 }
 0x51f   : > { %v2963_v54 = vadd.f32 %v2962_v22, %v2271_v35  ;;  %v3012_v58 = vadd.f32 %v3011_v21, %v2959_v38 }
 0x520   : > { %v2964_v26 = vpop.f32.mrf.mxu0  ;;  %v3017_v18 = vpop.f32.mrf.mxu1 }
 0x521   : > { %v2965_v60 = vadd.f32 %v2964_v26, %v2275_v28  ;;  %v3016_v3 = vadd.f32 %v3015_v23, %v2963_v54  ;;  %v7417_v54 = vld [vmem:[#allocation7 + $0x154] ss:$8 sps:$4 sm:$0xff]  }
 0x522   : > { %v2966_v19 = vpop.f32.mrf.mxu0  ;;  %v3019_v29 = vpop.f32.mrf.mxu1 }
 0x523   : > { %v2967_v62 = vadd.f32 %v2966_v19, %v2271_v35  ;;  %v3018_v57 = vadd.f32 %v3017_v18, %v2965_v60  ;;  %v7426_v60 = vld [vmem:[#allocation7 + $0x124] ss:$8 sps:$4 sm:$0xff]  }
 0x524   : > { %v2968_v40 = vpop.f32.mrf.mxu0  ;;  %v3021_v33 = vpop.f32.mrf.mxu1 }
 0x525   : > { %v2969_v5 = vadd.f32 %v2968_v40, %v2275_v28  ;;  %v3020_v11 = vadd.f32 %v3019_v29, %v2967_v62  ;;  %v7429_v62 = vld [vmem:[#allocation7 + $0x114] ss:$8 sps:$4 sm:$0xff]  }
 0x527   : > { %v3022_v17 = vadd.f32 %v3021_v33, %v2969_v5  ;;  %v7436_v5 = vld [vmem:[#allocation7 + $0x1e0] ss:$8 sps:$4 sm:$0xff]  }
 0x556   : > { %v3058_v47 = vpop.f32.mrf.mxu0  ;;  %v3111_v39 = vpop.f32.mrf.mxu1 }
 0x557   : > { %v3059_v31 = vadd.f32 %v3058_v47, %v3006_v34 }
 0x558   : > { %v3060_v41 = vpop.f32.mrf.mxu0  ;;  %v3113_v27 = vpop.f32.mrf.mxu1 }
 0x559   : > { %v3061_v59 = vadd.f32 %v3060_v41, %v3008_v44  ;;  %v3112_v63 = vadd.f32 %v3111_v39, %v3059_v31  ;;  %v7414_v31 = vld [vmem:[#allocation7 + $0x164] ss:$8 sps:$4 sm:$0xff]  }
 0x55a   : > { %v3062_v56 = vpop.f32.mrf.mxu0  ;;  %v3115_v46 = vpop.f32.mrf.mxu1 }
 0x55b   : > { %v3063_v36 = vadd.f32 %v3062_v56, %v3010_v48  ;;  %v3114_v6 = vadd.f32 %v3113_v27, %v3061_v59  ;;  %v7411_v48 = vld [vmem:[#allocation7 + $0x174] ss:$8 sps:$4 sm:$0xff]   ;;  %v7412_v27 = vld [vmem:[#allocation7 + $0x160] ss:$8 sps:$4 sm:$0xff]   ;;  %v7415_v56 = vld [vmem:[#allocation7 + $0x150] ss:$8 sps:$4 sm:$0xff]  }
 0x55c   : > { %v3064_v61 = vpop.f32.mrf.mxu0  ;;  %v3117_v2 = vpop.f32.mrf.mxu1  ;;  %3468 = vmatprep.subr.bf16.mxu0 %v7411_v48  ;;  %v7418_v59 = vld [vmem:[#allocation7 + $0x140] ss:$8 sps:$4 sm:$0xff]  }
 0x55d   : > { %v3116_v1 = vadd.f32 %v3115_v46, %v3063_v36  ;;  %v3065_v8 = vadd.f32 %v3064_v61, %v3012_v58  ;;  %v7420_v58 = vld [vmem:[#allocation7 + $0x144] ss:$8 sps:$4 sm:$0xff]   ;;  %v7423_v36 = vld [vmem:[#allocation7 + $0x134] ss:$8 sps:$4 sm:$0xff]   ;;  %v7421_v46 = vld [vmem:[#allocation7 + $0x130] ss:$8 sps:$4 sm:$0xff]  }
 0x55e   : > { %v3068_v4 = vpop.f32.mrf.mxu0  ;;  %v3121_v45 = vpop.f32.mrf.mxu1  ;;  %v7424_v61 = vld [vmem:[#allocation7 + $0x120] ss:$8 sps:$4 sm:$0xff]  }
 0x55f   : > { %v3130_v43 = vpack.c.bf16 %v3116_v1, %v3112_v63  ;;  %v3118_v53 = vadd.f32 %v3117_v2, %v3065_v8  ;;  %v3069_v9 = vadd.f32 %v3068_v4, %v3016_v3  ;;  %v7427_v63 = vld [vmem:[#allocation7 + $0x110] ss:$8 sps:$4 sm:$0xff]   ;;  %v7432_v1 = vld [vmem:[#allocation7 + $0x104] ss:$8 sps:$4 sm:$0xff]   ;;  %v7430_v8 = vld [vmem:[#allocation7 + $0x100] ss:$8 sps:$4 sm:$0xff]  }
 0x560   : > { %v3070_v10 = vpop.f32.mrf.mxu0  ;;  %v3123_v14 = vpop.f32.mrf.mxu1  ;;  %v7435_v2 = vld [vmem:[#allocation7 + $0x1f4] ss:$8 sps:$4 sm:$0xff]   ;;  %v7433_v3 = vld [vmem:[#allocation7 + $0x1f0] ss:$8 sps:$4 sm:$0xff]   ;;  %v7438_v4 = vld [vmem:[#allocation7 + $0x1e4] ss:$8 sps:$4 sm:$0xff]  }
 0x561   : > { %v8468_v12 = vadd.bf16 %v3130_v43, %v8391_v24  ;;  %v3131_v13 = vpack.c.bf16 %v3118_v53, %v3114_v6  ;;  %v3071_v15 = vadd.f32 %v3070_v10, %v3018_v57  ;;  %v3122_v22 = vadd.f32 %v3121_v45, %v3069_v9 }
 0x562   : > { %v3072_v16 = vpop.f32.mrf.mxu0  ;;  %v3125_v21 = vpop.f32.mrf.mxu1 }
 0x563   : > { %v8471_v50 = vadd.bf16 %v3131_v13, %v8389_v37  ;;  %v3073_v20 = vadd.f32 %v3072_v16, %v3020_v11  ;;  %v3140_v25 = vunpack.c.h.bf16 %v8468_v12  ;;  %v3138_v26 = vunpack.c.l.bf16 %v8468_v12 }
 0x564   : > { %v3074_v23 = vpop.f32.mrf.mxu0  ;;  %v3124_v28 = vadd.f32 %v3123_v14, %v3071_v15  ;;  %v3127_v29 = vpop.f32.mrf.mxu1 }
 0x565   : > { %v3126_v18 = vadd.f32 %v3125_v21, %v3073_v20  ;;  %v3075_v35 = vadd.f32 %v3074_v23, %v3022_v17  ;;  %v3141_v24 = vunpack.c.h.bf16 %v8471_v50  ;;  %v3139_v19 = vunpack.c.l.bf16 %v8471_v50 }
 0x567   : > { %v3132_v30 = vpack.c.bf16 %v3126_v18, %v3122_v22  ;;  %v3128_v40 = vadd.f32 %v3127_v29, %v3075_v35  ;;  %v3149_v37 = vadd.f32 %v3141_v24, %v3140_v25  ;;  %v3146_v42 = vadd.f32 %v3139_v19, %v3138_v26 }
 0x569   : > { %v8486_v32 = vadd.bf16 %v3132_v30, %v8407_v49  ;;  %v3133_v33 = vpack.c.bf16 %v3128_v40, %v3124_v28  ;;  %3150 = vadd.xlane.f32.xlu1 %v3149_v37  ;;  %3147 = vadd.xlane.f32.xlu0 %v3146_v42  ;;  %v7441_v40 = vld [vmem:[#allocation7 + $0x1d4] ss:$8 sps:$4 sm:$0xff]   ;;  %v7439_v37 = vld [vmem:[#allocation7 + $0x1d0] ss:$8 sps:$4 sm:$0xff]   ;;  %v7444_v42 = vld [vmem:[#allocation7 + $0x1c4] ss:$8 sps:$4 sm:$0xff]  }
 0x56b   : > { %v8489_v47 = vadd.bf16 %v3133_v33, %v8405_v55  ;;  %v3144_v34 = vunpack.c.h.bf16 %v8486_v32  ;;  %v3142_v39 = vunpack.c.l.bf16 %v8486_v32  ;;  %v7409_v55 = vld [vmem:[#allocation7 + $0x170] ss:$8 sps:$4 sm:$0xff]   ;;  %v7442_v32 = vld [vmem:[#allocation7 + $0x1c0] ss:$8 sps:$4 sm:$0xff]   ;;  %v7447_v33 = vld [vmem:[#allocation7 + $0x1b4] ss:$8 sps:$4 sm:$0xff]  }
 0x56c   : > { %3469 = vmatpush1.bf16.msra.mxu0 %v7409_v55 }
 0x56d   : > { %v3145_v38 = vunpack.c.h.bf16 %v8489_v47  ;;  %v3143_v41 = vunpack.c.l.bf16 %v8489_v47  ;;  %3470 = vmatprep.subr.bf16.mxu0 %v7414_v31  ;;  %v7445_v47 = vld [vmem:[#allocation7 + $0x1b0] ss:$8 sps:$4 sm:$0xff]  }
 0x56f   : > { %v3155_v49 = vadd.f32 %v3145_v38, %v3144_v34  ;;  %v3152_v44 = vadd.f32 %v3143_v41, %v3142_v39 }
 0x570   : > { %3471 = vmatpush1.bf16.msra.mxu0 %v7412_v27 }
 0x571   : > { %3156 = vadd.xlane.f32.xlu1 %v3155_v49  ;;  %3153 = vadd.xlane.f32.xlu0 %v3152_v44  ;;  %v7456_v49 = vld [vmem:[#allocation7 + $0x184] ss:$8 sps:$4 sm:$0xff]   ;;  %v7454_v44 = vld [vmem:[#allocation7 + $0x180] ss:$8 sps:$4 sm:$0xff]  }
 0x572   : > { %3472 = vmatprep.subr.bf16.mxu0 %v7417_v54 }
 0x574   : > { %3473 = vmatpush1.bf16.msra.mxu0 %v7415_v56 }
 0x575   : > { %3474 = vmatprep.subr.bf16.mxu0 %v7420_v58 }
 0x578   : > { %3475 = vmatpush1.bf16.msra.mxu0 %v7418_v59 }
 0x579   : > { %3476 = vmatprep.subr.bf16.mxu0 %v7423_v36 }
 0x57c   : > { %3477 = vmatpush1.bf16.msra.mxu0 %v7421_v46 }
 0x57d   : > { %3478 = vmatprep.subr.bf16.mxu0 %v7426_v60 }
 0x580   : > { %3479 = vmatpush1.bf16.msra.mxu0 %v7424_v61 }
 0x581   : > { %3480 = vmatprep.subr.bf16.mxu0 %v7429_v62  ;;  %v6370_v62 = vld [vmem:[%s8872_s7 + $0x11] ss:$8 sm:$0x3] }
 0x584   : > { %3481 = vmatpush1.bf16.msra.mxu0 %v7427_v63  ;;  %v6371_v63 = vld [vmem:[%s8872_s7 + $0x13] ss:$8 sm:$0x3] }
 0x585   : > { %3482 = vmatprep.subr.bf16.mxu0 %v7432_v1  ;;  %v3214_v1 = vrot.slane %v6370_v62, %v8265_v52 }
 0x588   : > { %3483 = vmatpush1.bf16.msra.mxu0 %v7430_v8  ;;  %v3218_v8 = vrot.slane %v6370_v62, %v8262_v51 }
 0x589   : > { %3484 = vmatprep.subr.bf16.mxu0 %v7435_v2 }
 0x58c   : > { %3485 = vmatpush2.bf16.msra.mxu0 %v7433_v3 }
 0x58d   : > { %3486 = vmatprep.subr.bf16.mxu0 %v7438_v4 }
 0x590   : > { %3487 = vmatpush2.bf16.msra.mxu0 %v7436_v5 }
 0x591   : > { %3488 = vmatprep.subr.bf16.mxu0 %v7441_v40 }
 0x594   : > { %3489 = vmatpush2.bf16.msra.mxu0 %v7439_v37 }
 0x595   : > { %3490 = vmatprep.subr.bf16.mxu0 %v7444_v42 }
 0x598   : > { %3491 = vmatpush2.bf16.msra.mxu0 %v7442_v32 }
 0x599   : > { %3492 = vmatprep.subr.bf16.mxu0 %v7447_v33 }
 0x59c   : > { %3493 = vmatpush2.bf16.msra.mxu0 %v7445_v47 }
 0x5f2   : > { %v3151_v6 = vpop.xlane.xlu1 %3150  ;;  %v3148_v43 = vpop.xlane.xlu0 %3147 }
 0x5f3   : > { %v3159_v53 = vmul.f32 0.00390625, %v3151_v6  ;;  %v3158_v45 = vmul.f32 0.00390625, %v3148_v43  ;;  %v3233_v6 = vrot.slane %v6371_v63, %v8265_v52  ;;  %v3237_v43 = vrot.slane %v6371_v63, %v8262_v51 }
 0x5f5   : > { %v8505_v57 = vsub.f32 %v3140_v25, %v3159_v53  ;;  %v8509_v9 = vsub.f32 %v3141_v24, %v3159_v53  ;;  %v8513_v10 = vsub.f32 %v3138_v26, %v3158_v45  ;;  %v8517_v11 = vsub.f32 %v3139_v19, %v3158_v45 }
 0x5f7   : > { %v3172_v13 = vmul.f32 %v8505_v57, %v8505_v57  ;;  %v3173_v14 = vmul.f32 %v8509_v9, %v8509_v9  ;;  %v3170_v15 = vmul.f32 %v8513_v10, %v8513_v10  ;;  %v3171_v16 = vmul.f32 %v8517_v11, %v8517_v11 }
 0x5f9   : > { %v3181_v17 = vadd.f32 %v3173_v14, %v3172_v13  ;;  %v3178_v12 = vadd.f32 %v3171_v16, %v3170_v15 }
 0x5fa   : > { %v3157_v20 = vpop.xlane.xlu1 %3156  ;;  %v3154_v21 = vpop.xlane.xlu0 %3153 }
 0x5fb   : > { %v3161_v22 = vmul.f32 0.00390625, %v3157_v20  ;;  %v3160_v50 = vmul.f32 0.00390625, %v3154_v21  ;;  %3182 = vadd.xlane.f32.xlu1 %v3181_v17  ;;  %3179 = vadd.xlane.f32.xlu0 %v3178_v12 }
 0x5fd   : > { %v8529_v23 = vsub.f32 %v3144_v34, %v3161_v22  ;;  %v8533_v25 = vsub.f32 %v3145_v38, %v3161_v22  ;;  %v8537_v26 = vsub.f32 %v3142_v39, %v3160_v50  ;;  %v8541_v18 = vsub.f32 %v3143_v41, %v3160_v50  ;;  %v7450_v34 = vld [vmem:[#allocation7 + $0x1a4] ss:$8 sps:$4 sm:$0xff]   ;;  %v7448_v38 = vld [vmem:[#allocation7 + $0x1a0] ss:$8 sps:$4 sm:$0xff]   ;;  %v7453_v39 = vld [vmem:[#allocation7 + $0x194] ss:$8 sps:$4 sm:$0xff]  }
 0x5fe   : > { %3494 = vmatprep.subr.bf16.mxu0 %v7450_v34  ;;  %v7451_v41 = vld [vmem:[#allocation7 + $0x190] ss:$8 sps:$4 sm:$0xff]  }
 0x5ff   : > { %v3176_v35 = vmul.f32 %v8529_v23, %v8529_v23  ;;  %v3177_v24 = vmul.f32 %v8533_v25, %v8533_v25  ;;  %v3174_v19 = vmul.f32 %v8537_v26, %v8537_v26  ;;  %v3175_v28 = vmul.f32 %v8541_v18, %v8541_v18  ;;  %3495 = vmatpush2.bf16.msra.mxu0 %v7448_v38 }
 0x600   : > { %3496 = vmatprep.subr.bf16.mxu0 %v7453_v39 }
 0x601   : > { %v3187_v29 = vadd.f32 %v3177_v24, %v3176_v35  ;;  %v3184_v30 = vadd.f32 %v3175_v28, %v3174_v19 }
 0x603   : > { %3188 = vadd.xlane.f32.xlu1 %v3187_v29  ;;  %3185 = vadd.xlane.f32.xlu0 %v3184_v30 }
 0x604   : > { %3497 = vmatpush2.bf16.msra.mxu0 %v7451_v41 }
 0x605   : > { %3498 = vmatprep.subr.bf16.mxu0 %v7456_v49 }
 0x608   : > { %3499 = vmatpush2.bf16.msra.mxu0 %v7454_v44 }
 0x684   : > { %v3183_v55 = vpop.xlane.xlu1 %3182  ;;  %v3180_v48 = vpop.xlane.xlu0 %3179 }
 0x685   : > { %v3191_v31 = vmul.f32 0.00390625, %v3183_v55  ;;  %v3190_v27 = vmul.f32 0.00390625, %v3180_v48 }
 0x687   : > { %v3195_v54 = vadd.f32 1e-05, %v3191_v31  ;;  %v3194_v56 = vadd.f32 1e-05, %v3190_v27 }
 0x689   : > { %7674 = vrsqrt.f32 %v3195_v54 }
 0x68a   : > { %7676 = vrsqrt.f32 %v3194_v56 }
 0x68c   : > { %v3189_v58 = vpop.xlane.xlu1 %3188  ;;  %v3186_v59 = vpop.xlane.xlu0 %3185 }
 0x68d   : > { %v3193_v36 = vmul.f32 0.00390625, %v3189_v58  ;;  %v3192_v46 = vmul.f32 0.00390625, %v3186_v59 }
 0x68f   : > { %v3197_v60 = vadd.f32 1e-05, %v3193_v36  ;;  %v3196_v61 = vadd.f32 1e-05, %v3192_v46 }
 0x691   : > { %7678 = vrsqrt.f32 %v3197_v60 }
 0x692   : > { %7680 = vrsqrt.f32 %v3196_v61 }
 0x696   : > { %v7675_v2 = vpop.eup %7674 }
 0x697   : > { %v7677_v3 = vpop.eup %7676  ;;  %v3204_v4 = vmul.f32 %v7675_v2, %v8505_v57  ;;  %v3205_v5 = vmul.f32 %v7675_v2, %v8509_v9 }
 0x698   : > { %v3202_v53 = vmul.f32 %v7677_v3, %v8513_v10  ;;  %v3203_v45 = vmul.f32 %v7677_v3, %v8517_v11 }
 0x699   : > { %v3224_v13 = vmul.f32 %v3218_v8, %v3205_v5  ;;  %v3223_v14 = vmul.f32 %v3214_v1, %v3204_v4 }
 0x69a   : > { %v3222_v15 = vmul.f32 %v3218_v8, %v3203_v45  ;;  %v3221_v16 = vmul.f32 %v3214_v1, %v3202_v53 }
 0x69b   : > { %v3243_v17 = vadd.f32 %v3237_v43, %v3224_v13  ;;  %v3242_v12 = vadd.f32 %v3233_v6, %v3223_v14 }
 0x69c   : > { %v3241_v20 = vadd.f32 %v3237_v43, %v3222_v15  ;;  %v3240_v21 = vadd.f32 %v3233_v6, %v3221_v16 }
 0x69e   : > { %v7679_v22 = vpop.eup %7678  ;;  %v3249_v57 = vpack.c.bf16 %v3243_v17, %v3241_v20  ;;  %v3248_v50 = vpack.c.bf16 %v3242_v12, %v3240_v21  ;;  %v3700_v12 = vld [vmem:[#allocation8 + $0x5c0] sm:$0xff]  ;;  %v3701_v21 = vld [vmem:[#allocation8 + $0x5c8] sm:$0xff] }
 0x69f   : > { %v7681_v9 = vpop.eup %7680  ;;  %v3209_v35 = vmul.f32 %v7679_v22, %v8533_v25  ;;  %v3208_v24 = vmul.f32 %v7679_v22, %v8529_v23  ;;  %v6660_v23 = vld [vmem:[%s8872_s7 + $0x2] ss:$8 sm:$0x3]  ;;  %v3704_v20 = vld [vmem:[#allocation8 + $0x5e0] sm:$0xff] }
 0x6a0   : > { %3500 = vmatprep.mubr.bf16.mxu0 %v3249_v57  ;;  %v3207_v10 = vmul.f32 %v7681_v9, %v8541_v18  ;;  %v3206_v11 = vmul.f32 %v7681_v9, %v8537_v26  ;;  %v3301_v26 = vrot.slane %v6660_v23, %v8265_v52  ;;  %v3305_v34 = vrot.slane %v6660_v23, %v8262_v51  ;;  %v3692_v9 = vld [vmem:[#allocation8 + $0x580] sm:$0xff] }
 0x6a1   : > { %3501 = vmatmul.mubr.bf16.vlgmr.msra.gmra.mxu0 %v3248_v50  ;;  %v3228_v19 = vmul.f32 %v3218_v8, %v3209_v35  ;;  %v3227_v28 = vmul.f32 %v3214_v1, %v3208_v24  ;;  %v6754_v22 = vcombine.low %v3700_v12, %v3704_v20  ;;  %v3696_v35 = vld [vmem:[#allocation8 + $0x5a0] sm:$0xff] }
 0x6a2   : > { %v3226_v29 = vmul.f32 %v3218_v8, %v3207_v10  ;;  %v3225_v30 = vmul.f32 %v3214_v1, %v3206_v11  ;;  %v6747_v11 = vcombine.high %v3692_v9, %v3696_v35 }
 0x6a3   : > { %v3247_v40 = vadd.f32 %v3237_v43, %v3228_v19  ;;  %v3246_v37 = vadd.f32 %v3233_v6, %v3227_v28  ;;  %v3693_v19 = vld [vmem:[#allocation8 + $0x588] sm:$0xff] }
 0x6a4   : > { %v3245_v42 = vadd.f32 %v3237_v43, %v3226_v29  ;;  %v3244_v32 = vadd.f32 %v3233_v6, %v3225_v30  ;;  %v3697_v28 = vld [vmem:[#allocation8 + $0x5a8] sm:$0xff]  ;;  %v3684_v29 = vld [vmem:[#allocation8 + $0x540] sm:$0xff] }
 0x6a5   : > { %v6749_v30 = vcombine.high %v3693_v19, %v3697_v28 }
 0x6a6   : > { %v3251_v33 = vpack.c.bf16 %v3247_v40, %v3245_v42  ;;  %v3250_v47 = vpack.c.bf16 %v3246_v37, %v3244_v32  ;;  %v3688_v40 = vld [vmem:[#allocation8 + $0x560] sm:$0xff]  ;;  %v3685_v37 = vld [vmem:[#allocation8 + $0x548] sm:$0xff]  ;;  %v6746_v32 = vcombine.low %v3692_v9, %v3696_v35 }
 0x6a7   : > { %v3689_v42 = vld [vmem:[#allocation8 + $0x568] sm:$0xff]  ;;  %v3644_v9 = vld [vmem:[#allocation8 + $0x400] sm:$0xff] }
 0x6a8   : > { %3510 = vmatprep.mubr.bf16.mxu0 %v3251_v33  ;;  %v6741_v23 = vcombine.high %v3685_v37, %v3689_v42  ;;  %v3648_v35 = vld [vmem:[#allocation8 + $0x420] sm:$0xff] }
 0x6a9   : > { %3511 = vmatmul.mubr.bf16.gmra.mxu0 %v3250_v47 }
 0x761   : > { %v3502_v25 = vpop.f32.mrf.mxu0 }
 0x762   : > { %v3503_v39 = vadd.f32 %v3502_v25, %v3301_v26  ;;  %v3676_v25 = vld [vmem:[#allocation8 + $0x500] sm:$0xff] }
 0x763   : > { %v3504_v18 = vpop.f32.mrf.mxu0 }
 0x764   : > { %v3505_v44 = vadd.f32 %v3504_v18, %v3305_v34  ;;  %v3677_v18 = vld [vmem:[#allocation8 + $0x508] sm:$0xff] }
 0x765   : > { %v3506_v38 = vpop.f32.mrf.mxu0 }
 0x766   : > { %v3507_v41 = vadd.f32 %v3506_v38, %v3301_v26  ;;  %v6738_v38 = vcombine.low %v3684_v29, %v3688_v40 }
 0x767   : > { %v3508_v49 = vpop.f32.mrf.mxu0 }
 0x768   : > { %v3521_v55 = vpack.c.bf16 %v3507_v41, %v3503_v39  ;;  %v3509_v48 = vadd.f32 %v3508_v49, %v3305_v34  ;;  %v6740_v39 = vcombine.low %v3685_v37, %v3689_v42  ;;  %v3765_v37 = vld [vmem:[#allocation8 + $0x7c8] sm:$0xff] }
 0x769   : > { %v3512_v31 = vpop.f32.mrf.mxu0  ;;  %v3769_v42 = vld [vmem:[#allocation8 + $0x7e8] sm:$0xff] }
 0x76a   : > { %v8574_v27 = vadd.bf16 %v3521_v55, %v3248_v50  ;;  %v3522_v54 = vpack.c.bf16 %v3509_v48, %v3505_v44  ;;  %v3513_v59 = vadd.f32 %v3512_v31, %v3301_v26  ;;  %v3705_v50 = vld [vmem:[#allocation8 + $0x5e8] sm:$0xff]  ;;  %v3668_v44 = vld [vmem:[#allocation8 + $0x4c0] sm:$0xff] }
 0x76b   : > { %v3514_v56 = vpop.f32.mrf.mxu0  ;;  %v6756_v24 = vcombine.low %v3701_v21, %v3705_v50  ;;  %v6757_v10 = vcombine.high %v3701_v21, %v3705_v50  ;;  %v3672_v55 = vld [vmem:[#allocation8 + $0x4e0] sm:$0xff]  ;;  %v3669_v48 = vld [vmem:[#allocation8 + $0x4c8] sm:$0xff] }
 0x76c   : > { %v8576_v58 = vadd.bf16 %v3522_v54, %v3249_v57  ;;  %v3531_v46 = vunpack.c.h.bf16 %v8574_v27  ;;  %v3529_v62 = vunpack.c.l.bf16 %v8574_v27  ;;  %v3515_v1 = vadd.f32 %v3514_v56, %v3305_v34  ;;  %v3673_v31 = vld [vmem:[#allocation8 + $0x4e8] sm:$0xff] }
 0x76d   : > { %v3516_v36 = vpop.f32.mrf.mxu0  ;;  %v6755_v57 = vcombine.high %v3700_v12, %v3704_v20  ;;  %4465 = vmatprep.subr.bf16.mxu0 %v6757_v10  ;;  %v3653_v12 = vld [vmem:[#allocation8 + $0x448] sm:$0xff] }
 0x76e   : > { %v3517_v60 = vadd.f32 %v3516_v36, %v3301_v26  ;;  %v3532_v61 = vunpack.c.h.bf16 %v8576_v58  ;;  %v3530_v63 = vunpack.c.l.bf16 %v8576_v58  ;;  %4466 = vmatpush1.bf16.msra.mxu0 %v6756_v24  ;;  %v3680_v26 = vld [vmem:[#allocation8 + $0x520] sm:$0xff]  ;;  %v6725_v36 = vcombine.high %v3669_v48, %v3673_v31  ;;  %v3657_v20 = vld [vmem:[#allocation8 + $0x468] sm:$0xff] }
 0x76f   : > { %v3518_v8 = vpop.f32.mrf.mxu0  ;;  %4412 = vmatprep.subr.bf16.mxu1 %v6755_v57  ;;  %4467 = vmatprep.subr.bf16.mxu0 %v6749_v30  ;;  %v6731_v41 = vcombine.high %v3676_v25, %v3680_v26  ;;  %v6730_v54 = vcombine.low %v3676_v25, %v3680_v26  ;;  %v6709_v50 = vcombine.high %v3653_v12, %v3657_v20  ;;  %v3645_v24 = vld [vmem:[#allocation8 + $0x408] sm:$0xff]  ;;  %v3764_v30 = vld [vmem:[#allocation8 + $0x7c0] sm:$0xff] }
 0x770   : > { %v3523_v2 = vpack.c.bf16 %v3517_v60, %v3513_v59  ;;  %v3519_v3 = vadd.f32 %v3518_v8, %v3305_v34  ;;  %v3540_v4 = vadd.f32 %v3532_v61, %v3531_v46  ;;  %v3537_v5 = vadd.f32 %v3530_v63, %v3529_v62  ;;  %4413 = vmatpush1.bf16.msra.mxu1 %v6754_v22  ;;  %v3681_v34 = vld [vmem:[#allocation8 + $0x528] sm:$0xff]  ;;  %v3660_v60 = vld [vmem:[#allocation8 + $0x480] sm:$0xff] }
 0x771   : > { %4414 = vmatprep.subr.bf16.mxu1 %v6747_v11  ;;  %v6733_v49 = vcombine.high %v3677_v18, %v3681_v34  ;;  %v6732_v56 = vcombine.low %v3677_v18, %v3681_v34  ;;  %v6723_v59 = vcombine.high %v3668_v44, %v3672_v55  ;;  %v3661_v8 = vld [vmem:[#allocation8 + $0x488] sm:$0xff]  ;;  %v3756_v25 = vld [vmem:[#allocation8 + $0x780] sm:$0xff] }
 0x772   : > { %v8590_v6 = vadd.bf16 %v3523_v2, %v3250_v47  ;;  %v3524_v43 = vpack.c.bf16 %v3519_v3, %v3515_v1  ;;  %3541 = vadd.xlane.f32.xlu1 %v3540_v4  ;;  %3538 = vadd.xlane.f32.xlu0 %v3537_v5  ;;  %v6739_v47 = vcombine.high %v3684_v29, %v3688_v40  ;;  %v3664_v1 = vld [vmem:[#allocation8 + $0x4a0] sm:$0xff]  ;;  %v3665_v2 = vld [vmem:[#allocation8 + $0x4a8] sm:$0xff] }
 0x773   : > { %v6722_v3 = vcombine.low %v3668_v44, %v3672_v55  ;;  %v6724_v4 = vcombine.low %v3669_v48, %v3673_v31  ;;  %v6715_v5 = vcombine.high %v3660_v60, %v3664_v1  ;;  %v6714_v21 = vcombine.low %v3660_v60, %v3664_v1  ;;  %v3649_v10 = vld [vmem:[#allocation8 + $0x428] sm:$0xff]  ;;  %v3768_v40 = vld [vmem:[#allocation8 + $0x7e0] sm:$0xff] }
 0x774   : > { %v8592_v53 = vadd.bf16 %v3524_v43, %v3251_v33  ;;  %v3535_v45 = vunpack.c.h.bf16 %v8590_v6  ;;  %v3533_v14 = vunpack.c.l.bf16 %v8590_v6  ;;  %v6748_v33 = vcombine.low %v3693_v19, %v3697_v28  ;;  %4415 = vmatpush1.bf16.msra.mxu1 %v6746_v32  ;;  %v3760_v26 = vld [vmem:[#allocation8 + $0x7a0] sm:$0xff]  ;;  %v3757_v18 = vld [vmem:[#allocation8 + $0x788] sm:$0xff] }
 0x775   : > { %4416 = vmatprep.subr.bf16.mxu1 %v6739_v47  ;;  %v6717_v43 = vcombine.high %v3661_v8, %v3665_v2  ;;  %v6716_v22 = vcombine.low %v3661_v8, %v3665_v2  ;;  %v6708_v19 = vcombine.low %v3653_v12, %v3657_v20  ;;  %v6699_v28 = vcombine.high %v3644_v9, %v3648_v35  ;;  %v3761_v34 = vld [vmem:[#allocation8 + $0x7a8] sm:$0xff] }
 0x776   : > { %v3536_v13 = vunpack.c.h.bf16 %v8592_v53  ;;  %v3534_v15 = vunpack.c.l.bf16 %v8592_v53  ;;  %4468 = vmatpush1.bf16.msra.mxu0 %v6748_v33  ;;  %v6701_v29 = vcombine.high %v3645_v24, %v3649_v10  ;;  %v6698_v32 = vcombine.low %v3644_v9, %v3648_v35  ;;  %v3752_v53 = vld [vmem:[#allocation8 + $0x760] sm:$0xff] }
 0x777   : > { %4469 = vmatprep.subr.bf16.mxu0 %v6741_v23  ;;  %v6700_v33 = vcombine.low %v3645_v24, %v3649_v10  ;;  %v6819_v47 = vcombine.high %v3764_v30, %v3768_v40  ;;  %v6821_v23 = vcombine.high %v3765_v37, %v3769_v42  ;;  %v6810_v44 = vcombine.low %v3756_v25, %v3760_v26  ;;  %v3740_v24 = vld [vmem:[#allocation8 + $0x700] sm:$0xff] }
 0x778   : > { %v3546_v16 = vadd.f32 %v3536_v13, %v3535_v45  ;;  %v3543_v17 = vadd.f32 %v3534_v15, %v3533_v14  ;;  %4417 = vmatpush1.bf16.msra.mxu1 %v6738_v38  ;;  %v6818_v38 = vcombine.low %v3764_v30, %v3768_v40  ;;  %v6812_v55 = vcombine.low %v3757_v18, %v3761_v34  ;;  %v3744_v10 = vld [vmem:[#allocation8 + $0x720] sm:$0xff] }
 0x779   : > { %4418 = vmatprep.subr.bf16.mxu1 %v6731_v41  ;;  %v6811_v41 = vcombine.high %v3756_v25, %v3760_v26 }
 0x77a   : > { %3547 = vadd.xlane.f32.xlu1 %v3546_v16  ;;  %3544 = vadd.xlane.f32.xlu0 %v3543_v17  ;;  %v3652_v16 = vld [vmem:[#allocation8 + $0x440] sm:$0xff] }
 0x77b   : > { %4470 = vmatpush1.bf16.msra.mxu0 %v6740_v39  ;;  %v3656_v17 = vld [vmem:[#allocation8 + $0x460] sm:$0xff]  ;;  %v6820_v39 = vcombine.low %v3765_v37, %v3769_v42 }
 0x77c   : > { %4471 = vmatprep.subr.bf16.mxu0 %v6733_v49  ;;  %4419 = vmatpush1.bf16.msra.mxu1 %v6730_v54  ;;  %v6707_v57 = vcombine.high %v3652_v16, %v3656_v17  ;;  %v6706_v11 = vcombine.low %v3652_v16, %v3656_v17  ;;  %v6813_v49 = vcombine.high %v3757_v18, %v3761_v34  ;;  %v3732_v37 = vld [vmem:[#allocation8 + $0x6c0] sm:$0xff] }
 0x77d   : > { %4420 = vmatprep.subr.bf16.mxu1 %v6723_v59  ;;  %v3736_v42 = vld [vmem:[#allocation8 + $0x6e0] sm:$0xff] }
 0x77e   : > { %v3724_v18 = vld [vmem:[#allocation8 + $0x680] sm:$0xff] }
 0x77f   : > { %4472 = vmatpush1.bf16.msra.mxu0 %v6732_v56  ;;  %v3728_v34 = vld [vmem:[#allocation8 + $0x6a0] sm:$0xff] }
 0x780   : > { %4473 = vmatprep.subr.bf16.mxu0 %v6725_v36  ;;  %4421 = vmatpush1.bf16.msra.mxu1 %v6722_v3 }
 0x781   : > { %4422 = vmatprep.subr.bf16.mxu1 %v6715_v5 }
 0x783   : > { %4474 = vmatpush1.bf16.msra.mxu0 %v6724_v4 }
 0x784   : > { %4475 = vmatprep.subr.bf16.mxu0 %v6717_v43  ;;  %4423 = vmatpush1.bf16.msra.mxu1 %v6714_v21 }
 0x785   : > { %4424 = vmatprep.subr.bf16.mxu1 %v6707_v57  ;;  %v3753_v57 = vld [vmem:[#allocation8 + $0x768] sm:$0xff] }
 0x787   : > { %4476 = vmatpush1.bf16.msra.mxu0 %v6716_v22 }
 0x788   : > { %4477 = vmatprep.subr.bf16.mxu0 %v6709_v50  ;;  %4425 = vmatpush1.bf16.msra.mxu1 %v6706_v11  ;;  %v3741_v11 = vld [vmem:[#allocation8 + $0x708] sm:$0xff] }
 0x789   : > { %4426 = vmatprep.subr.bf16.mxu1 %v6699_v28  ;;  %v3745_v28 = vld [vmem:[#allocation8 + $0x728] sm:$0xff] }
 0x78a   : > { %v6796_v30 = vcombine.low %v3741_v11, %v3745_v28  ;;  %v6797_v40 = vcombine.high %v3741_v11, %v3745_v28 }
 0x78b   : > { %4478 = vmatpush1.bf16.msra.mxu0 %v6708_v19  ;;  %v6795_v19 = vcombine.high %v3740_v24, %v3744_v10 }
 0x78c   : > { %4479 = vmatprep.subr.bf16.mxu0 %v6701_v29  ;;  %4427 = vmatpush1.bf16.msra.mxu1 %v6698_v32  ;;  %v6794_v29 = vcombine.low %v3740_v24, %v3744_v10  ;;  %v3733_v32 = vld [vmem:[#allocation8 + $0x6c8] sm:$0xff] }
 0x78d   : > { %4428 = vmatprep.subr.bf16.mxu1 %v6819_v47  ;;  %v3737_v47 = vld [vmem:[#allocation8 + $0x6e8] sm:$0xff] }
 0x78e   : > { %v6788_v25 = vcombine.low %v3733_v32, %v3737_v47  ;;  %v6789_v26 = vcombine.high %v3733_v32, %v3737_v47 }
 0x78f   : > { %4480 = vmatpush1.bf16.msra.mxu0 %v6700_v33  ;;  %v6787_v33 = vcombine.high %v3732_v37, %v3736_v42 }
 0x790   : > { %4481 = vmatprep.subr.bf16.mxu0 %v6821_v23  ;;  %4429 = vmatpush2.bf16.msra.mxu1 %v6818_v38  ;;  %v6786_v23 = vcombine.low %v3732_v37, %v3736_v42  ;;  %v3725_v38 = vld [vmem:[#allocation8 + $0x688] sm:$0xff]  ;;  %v6661_v37 = vld [vmem:[%s8872_s7 + $0x4] ss:$8 sm:$0x3] }
 0x791   : > { %4430 = vmatprep.subr.bf16.mxu1 %v6811_v41  ;;  %v3729_v41 = vld [vmem:[#allocation8 + $0x6a8] sm:$0xff]  ;;  %v6662_v42 = vld [vmem:[%s8872_s7 + $0x6] ss:$8 sm:$0x3]  ;;  %v3609_v32 = vrot.slane %v6661_v37, %v8262_v51 }
 0x793   : > { %4482 = vmatpush2.bf16.msra.mxu0 %v6820_v39  ;;  %v6779_v39 = vcombine.high %v3724_v18, %v3728_v34 }
 0x794   : > { %4483 = vmatprep.subr.bf16.mxu0 %v6813_v49  ;;  %4431 = vmatpush2.bf16.msra.mxu1 %v6810_v44  ;;  %v6778_v49 = vcombine.low %v3724_v18, %v3728_v34  ;;  %v6780_v44 = vcombine.low %v3725_v38, %v3729_v41  ;;  %v3628_v18 = vrot.slane %v6662_v42, %v8262_v51 }
 0x795   : > { %v3624_v34 = vrot.slane %v6662_v42, %v8265_v52  ;;  %v3674_v42 = vld [vmem:[#allocation8 + $0x4f0] sm:$0xff] }
 0x797   : > { %4484 = vmatpush2.bf16.msra.mxu0 %v6812_v55  ;;  %v6781_v55 = vcombine.high %v3725_v38, %v3729_v41 }
 0x7fb   : > { %v3542_v48 = vpop.xlane.xlu1 %3541  ;;  %v3539_v31 = vpop.xlane.xlu0 %3538 }
 0x7fc   : > { %v3550_v54 = vmul.f32 0.00390625, %v3542_v48  ;;  %v3549_v56 = vmul.f32 0.00390625, %v3539_v31  ;;  %v3716_v48 = vld [vmem:[#allocation8 + $0x640] sm:$0xff] }
 0x7fd   : > { %v3720_v31 = vld [vmem:[#allocation8 + $0x660] sm:$0xff] }
 0x7fe   : > { %v8608_v59 = vsub.f32 %v3531_v46, %v3550_v54  ;;  %v8612_v36 = vsub.f32 %v3532_v61, %v3550_v54  ;;  %v8616_v60 = vsub.f32 %v3529_v62, %v3549_v56  ;;  %v8620_v1 = vsub.f32 %v3530_v63, %v3549_v56  ;;  %v3717_v54 = vld [vmem:[#allocation8 + $0x648] sm:$0xff] }
 0x7ff   : > { %v6771_v56 = vcombine.high %v3716_v48, %v3720_v31 }
 0x800   : > { %v3563_v8 = vmul.f32 %v8608_v59, %v8608_v59  ;;  %v3564_v2 = vmul.f32 %v8612_v36, %v8612_v36  ;;  %v3561_v46 = vmul.f32 %v8616_v60, %v8616_v60  ;;  %v3562_v61 = vmul.f32 %v8620_v1, %v8620_v1 }
 0x802   : > { %v3572_v3 = vadd.f32 %v3564_v2, %v3563_v8  ;;  %v3569_v27 = vadd.f32 %v3562_v61, %v3561_v46  ;;  %v3721_v8 = vld [vmem:[#allocation8 + $0x668] sm:$0xff]  ;;  %v6770_v2 = vcombine.low %v3716_v48, %v3720_v31 }
 0x803   : > { %v3548_v62 = vpop.xlane.xlu1 %3547  ;;  %v3545_v4 = vpop.xlane.xlu0 %3544  ;;  %v6772_v46 = vcombine.low %v3717_v54, %v3721_v8  ;;  %v6773_v61 = vcombine.high %v3717_v54, %v3721_v8  ;;  %v3694_v54 = vld [vmem:[#allocation8 + $0x590] sm:$0xff] }
 0x804   : > { %v3552_v5 = vmul.f32 0.00390625, %v3548_v62  ;;  %v3551_v58 = vmul.f32 0.00390625, %v3545_v4  ;;  %3573 = vadd.xlane.f32.xlu1 %v3572_v3  ;;  %3570 = vadd.xlane.f32.xlu0 %v3569_v27  ;;  %v3708_v3 = vld [vmem:[#allocation8 + $0x600] sm:$0xff]  ;;  %v3709_v62 = vld [vmem:[#allocation8 + $0x608] sm:$0xff] }
 0x805   : > { %v3712_v27 = vld [vmem:[#allocation8 + $0x620] sm:$0xff] }
 0x806   : > { %v8632_v63 = vsub.f32 %v3535_v45, %v3552_v5  ;;  %v8636_v43 = vsub.f32 %v3536_v13, %v3552_v5  ;;  %v8640_v16 = vsub.f32 %v3533_v14, %v3551_v58  ;;  %v8644_v17 = vsub.f32 %v3534_v15, %v3551_v58  ;;  %v3748_v14 = vld [vmem:[#allocation8 + $0x740] sm:$0xff]  ;;  %v3749_v15 = vld [vmem:[#allocation8 + $0x748] sm:$0xff] }
 0x807   : > { %v6803_v22 = vcombine.high %v3748_v14, %v3752_v53  ;;  %v6802_v50 = vcombine.low %v3748_v14, %v3752_v53  ;;  %v6804_v9 = vcombine.low %v3749_v15, %v3753_v57  ;;  %v6805_v35 = vcombine.high %v3749_v15, %v3753_v57  ;;  %v3713_v5 = vld [vmem:[#allocation8 + $0x628] sm:$0xff]  ;;  %v8662_v14 = vld [vmem:[#allocation8 + $0x5f8] sm:$0xff] }
 0x808   : > { %v3567_v12 = vmul.f32 %v8632_v63, %v8632_v63  ;;  %v3568_v20 = vmul.f32 %v8636_v43, %v8636_v43  ;;  %v3565_v45 = vmul.f32 %v8640_v16, %v8640_v16  ;;  %v3566_v13 = vmul.f32 %v8644_v17, %v8644_v17 }
 0x809   : > { %4432 = vmatprep.subr.bf16.mxu1 %v6803_v22  ;;  %4485 = vmatprep.subr.bf16.mxu0 %v6805_v35  ;;  %v6763_v4 = vcombine.high %v3708_v3, %v3712_v27  ;;  %v6762_v58 = vcombine.low %v3708_v3, %v3712_v27 }
 0x80a   : > { %v3578_v21 = vadd.f32 %v3568_v20, %v3567_v12  ;;  %v3575_v6 = vadd.f32 %v3566_v13, %v3565_v45  ;;  %4433 = vmatpush2.bf16.msra.mxu1 %v6802_v50  ;;  %4486 = vmatpush2.bf16.msra.mxu0 %v6804_v9  ;;  %v6764_v12 = vcombine.low %v3709_v62, %v3713_v5  ;;  %v8654_v45 = vld [vmem:[#allocation8 + $0x5d0] sm:$0xff] }
 0x80b   : > { %4434 = vmatprep.subr.bf16.mxu1 %v6795_v19  ;;  %4487 = vmatprep.subr.bf16.mxu0 %v6797_v40  ;;  %v6765_v20 = vcombine.high %v3709_v62, %v3713_v5  ;;  %v8656_v13 = vld [vmem:[#allocation8 + $0x5f0] sm:$0xff] }
 0x80c   : > { %3579 = vadd.xlane.f32.xlu1 %v3578_v21  ;;  %3576 = vadd.xlane.f32.xlu0 %v3575_v6  ;;  %v8658_v21 = vld [vmem:[#allocation8 + $0x5d8] sm:$0xff]  ;;  %v6759_v6 = vcombine.high %v8654_v45, %v8656_v13  ;;  %v6758_v53 = vcombine.low %v8654_v45, %v8656_v13  ;;  %v3686_v5 = vld [vmem:[#allocation8 + $0x550] sm:$0xff] }
 0x80d   : > { %v6760_v15 = vcombine.low %v8658_v21, %v8662_v14  ;;  %v6761_v22 = vcombine.high %v8658_v21, %v8662_v14  ;;  %v3683_v45 = vld [vmem:[#allocation8 + $0x538] sm:$0xff] }
 0x80e   : > { %4435 = vmatpush2.bf16.msra.mxu1 %v6794_v29  ;;  %4488 = vmatpush2.bf16.msra.mxu0 %v6796_v30 }
 0x80f   : > { %4436 = vmatprep.subr.bf16.mxu1 %v6787_v33  ;;  %4489 = vmatprep.subr.bf16.mxu0 %v6789_v26  ;;  %v3605_v33 = vrot.slane %v6661_v37, %v8265_v52 }
 0x812   : > { %4437 = vmatpush2.bf16.msra.mxu1 %v6786_v23  ;;  %4490 = vmatpush2.bf16.msra.mxu0 %v6788_v25 }
 0x813   : > { %4438 = vmatprep.subr.bf16.mxu1 %v6779_v39  ;;  %4491 = vmatprep.subr.bf16.mxu0 %v6781_v55 }
 0x816   : > { %4439 = vmatpush2.bf16.msra.mxu1 %v6778_v49  ;;  %4492 = vmatpush2.bf16.msra.mxu0 %v6780_v44 }
 0x817   : > { %4440 = vmatprep.subr.bf16.mxu1 %v6771_v56  ;;  %4493 = vmatprep.subr.bf16.mxu0 %v6773_v61 }
 0x81a   : > { %4441 = vmatpush2.bf16.msra.mxu1 %v6770_v2  ;;  %4494 = vmatpush2.bf16.msra.mxu0 %v6772_v46  ;;  %v3695_v2 = vld [vmem:[#allocation8 + $0x598] sm:$0xff] }
 0x81b   : > { %4442 = vmatprep.subr.bf16.mxu1 %v6763_v4  ;;  %4495 = vmatprep.subr.bf16.mxu0 %v6765_v20 }
 0x81e   : > { %4443 = vmatpush2.bf16.msra.mxu1 %v6762_v58  ;;  %4496 = vmatpush2.bf16.msra.mxu0 %v6764_v12  ;;  %v3690_v58 = vld [vmem:[#allocation8 + $0x570] sm:$0xff] }
 0x81f   : > { %4518 = vmatprep.subr.bf16.mxu1 %v6759_v6  ;;  %4571 = vmatprep.subr.bf16.mxu0 %v6761_v22  ;;  %v3687_v22 = vld [vmem:[#allocation8 + $0x558] sm:$0xff] }
 0x88d   : > { %v3574_v57 = vpop.xlane.xlu1 %3573  ;;  %v3571_v50 = vpop.xlane.xlu0 %3570 }
 0x88e   : > { %v3582_v9 = vmul.f32 0.00390625, %v3574_v57  ;;  %v3581_v35 = vmul.f32 0.00390625, %v3571_v50  ;;  %v3691_v57 = vld [vmem:[#allocation8 + $0x578] sm:$0xff] }
 0x88f   : > { %v6744_v21 = vcombine.low %v3687_v22, %v3691_v57 }
 0x890   : > { %v3586_v24 = vadd.f32 1e-05, %v3582_v9  ;;  %v3585_v10 = vadd.f32 1e-05, %v3581_v35 }
 0x892   : > { %7682 = vrsqrt.f32 %v3586_v24  ;;  %v6745_v24 = vcombine.high %v3687_v22, %v3691_v57  ;;  %v3771_v22 = vld [vmem:[#allocation8 + $0x7f8] sm:$0xff] }
 0x893   : > { %7684 = vrsqrt.f32 %v3585_v10 }
 0x895   : > { %v3580_v11 = vpop.xlane.xlu1 %3579  ;;  %v3577_v19 = vpop.xlane.xlu0 %3576 }
 0x896   : > { %v3584_v28 = vmul.f32 0.00390625, %v3580_v11  ;;  %v3583_v29 = vmul.f32 0.00390625, %v3577_v19 }
 0x898   : > { %v3588_v30 = vadd.f32 1e-05, %v3584_v28  ;;  %v3587_v40 = vadd.f32 1e-05, %v3583_v29  ;;  %v3678_v28 = vld [vmem:[#allocation8 + $0x510] sm:$0xff]  ;;  %v6742_v29 = vcombine.low %v3686_v5, %v3690_v58 }
 0x89a   : > { %7686 = vrsqrt.f32 %v3588_v30  ;;  %v3682_v30 = vld [vmem:[#allocation8 + $0x530] sm:$0xff] }
 0x89b   : > { %7688 = vrsqrt.f32 %v3587_v40  ;;  %v3679_v40 = vld [vmem:[#allocation8 + $0x518] sm:$0xff] }
 0x89c   : > { %v6737_v37 = vcombine.high %v3679_v40, %v3683_v45 }
 0x89f   : > { %v7683_v47 = vpop.eup %7682 }
 0x8a0   : > { %v7685_v23 = vpop.eup %7684  ;;  %v3595_v25 = vmul.f32 %v7683_v47, %v8608_v59  ;;  %v3596_v26 = vmul.f32 %v7683_v47, %v8612_v36  ;;  %v3698_v59 = vld [vmem:[#allocation8 + $0x5b0] sm:$0xff]  ;;  %v3699_v36 = vld [vmem:[#allocation8 + $0x5b8] sm:$0xff]  ;;  %v6734_v47 = vcombine.low %v3678_v28, %v3682_v30 }
 0x8a1   : > { %v3593_v38 = vmul.f32 %v7685_v23, %v8616_v60  ;;  %v3594_v39 = vmul.f32 %v7685_v23, %v8620_v1  ;;  %v6751_v62 = vcombine.high %v3694_v54, %v3698_v59  ;;  %v6753_v4 = vcombine.high %v3695_v2, %v3699_v36 }
 0x8a2   : > { %v3615_v41 = vmul.f32 %v3609_v32, %v3596_v26  ;;  %v3614_v49 = vmul.f32 %v3605_v33, %v3595_v25  ;;  %v6750_v6 = vcombine.low %v3694_v54, %v3698_v59  ;;  %v6736_v23 = vcombine.low %v3679_v40, %v3683_v45  ;;  %v3655_v54 = vld [vmem:[#allocation8 + $0x458] sm:$0xff] }
 0x8a3   : > { %v3613_v44 = vmul.f32 %v3609_v32, %v3594_v39  ;;  %v3612_v55 = vmul.f32 %v3605_v33, %v3593_v38  ;;  %v3663_v38 = vld [vmem:[#allocation8 + $0x498] sm:$0xff] }
 0x8a4   : > { %v3634_v48 = vadd.f32 %v3628_v18, %v3615_v41  ;;  %v3633_v31 = vadd.f32 %v3624_v34, %v3614_v49  ;;  %v3667_v39 = vld [vmem:[#allocation8 + $0x4b8] sm:$0xff] }
 0x8a5   : > { %v3632_v56 = vadd.f32 %v3628_v18, %v3613_v44  ;;  %v3631_v8 = vadd.f32 %v3624_v34, %v3612_v55  ;;  %v6721_v55 = vcombine.high %v3663_v38, %v3667_v39  ;;  %v6720_v59 = vcombine.low %v3663_v38, %v3667_v39  ;;  %v3755_v40 = vld [vmem:[#allocation8 + $0x778] sm:$0xff] }
 0x8a6   : > { %v3735_v38 = vld [vmem:[#allocation8 + $0x6d8] sm:$0xff] }
 0x8a7   : > { %v7687_v46 = vpop.eup %7686  ;;  %v8684_v61 = vpack.c.bf16 %v3634_v48, %v3632_v56  ;;  %v8686_v3 = vpack.c.bf16 %v3633_v31, %v3631_v8  ;;  %v3654_v48 = vld [vmem:[#allocation8 + $0x450] sm:$0xff]  ;;  %v3659_v56 = vld [vmem:[#allocation8 + $0x478] sm:$0xff] }
 0x8a8   : > { %v7689_v60 = vpop.eup %7688  ;;  %v3599_v1 = vmul.f32 %v7687_v46, %v8632_v63  ;;  %v3600_v27 = vmul.f32 %v7687_v46, %v8636_v43  ;;  %v6752_v63 = vcombine.low %v3695_v2, %v3699_v36  ;;  %v3658_v31 = vld [vmem:[#allocation8 + $0x470] sm:$0xff]  ;;  %v6713_v36 = vcombine.high %v3655_v54, %v3659_v56  ;;  %v3739_v39 = vld [vmem:[#allocation8 + $0x6f8] sm:$0xff] }
 0x8a9   : > { %v3597_v12 = vmul.f32 %v7689_v60, %v8640_v16  ;;  %v3598_v20 = vmul.f32 %v7689_v60, %v8644_v17  ;;  %4444 = vmatprep.mubr.bf16.mxu1 %v8684_v61  ;;  %4497 = vmatprep.mubr.bf16.mxu0 %v8684_v61  ;;  %v6743_v17 = vcombine.high %v3686_v5, %v3690_v58  ;;  %v3646_v46 = vld [vmem:[#allocation8 + $0x410] sm:$0xff] }
 0x8aa   : > { %4445 = vmatmul.mubr.bf16.vlgmr.msra.gmra.mxu1 %v8686_v3  ;;  %4498 = vmatmul.mubr.bf16.vlgmr.msra.gmra.mxu0 %v8686_v3  ;;  %v3619_v43 = vmul.f32 %v3609_v32, %v3600_v27  ;;  %v3618_v50 = vmul.f32 %v3605_v33, %v3599_v1  ;;  %v6711_v2 = vcombine.high %v3654_v48, %v3658_v31  ;;  %v3650_v60 = vld [vmem:[#allocation8 + $0x430] sm:$0xff]  ;;  %v3647_v1 = vld [vmem:[#allocation8 + $0x418] sm:$0xff] }
 0x8ab   : > { %4519 = vmatpush1.bf16.msra.mxu1 %v6758_v53  ;;  %4572 = vmatpush1.bf16.msra.mxu0 %v6760_v15  ;;  %v3617_v16 = vmul.f32 %v3609_v32, %v3598_v20  ;;  %v3616_v9 = vmul.f32 %v3605_v33, %v3597_v12  ;;  %v3670_v53 = vld [vmem:[#allocation8 + $0x4d0] sm:$0xff]  ;;  %v6735_v15 = vcombine.high %v3678_v28, %v3682_v30  ;;  %v3671_v32 = vld [vmem:[#allocation8 + $0x4d8] sm:$0xff] }
 0x8ac   : > { %4520 = vmatprep.subr.bf16.mxu1 %v6751_v62  ;;  %4573 = vmatprep.subr.bf16.mxu0 %v6753_v4  ;;  %v3638_v35 = vadd.f32 %v3628_v18, %v3619_v43  ;;  %v3637_v10 = vadd.f32 %v3624_v34, %v3618_v50  ;;  %v3675_v33 = vld [vmem:[#allocation8 + $0x4f8] sm:$0xff]  ;;  %v6727_v25 = vcombine.high %v3670_v53, %v3674_v42  ;;  %v3766_v12 = vld [vmem:[#allocation8 + $0x7d0] sm:$0xff] }
 0x8ad   : > { %v3636_v11 = vadd.f32 %v3628_v18, %v3617_v16  ;;  %v3635_v19 = vadd.f32 %v3624_v34, %v3616_v9  ;;  %v6729_v26 = vcombine.high %v3671_v32, %v3675_v33  ;;  %v3662_v18 = vld [vmem:[#allocation8 + $0x490] sm:$0xff]  ;;  %v6726_v41 = vcombine.low %v3670_v53, %v3674_v42  ;;  %v3651_v27 = vld [vmem:[#allocation8 + $0x438] sm:$0xff] }
 0x8ae   : > { %v3666_v34 = vld [vmem:[#allocation8 + $0x4b0] sm:$0xff]  ;;  %v6728_v49 = vcombine.low %v3671_v32, %v3675_v33  ;;  %v6710_v62 = vcombine.low %v3654_v48, %v3658_v31  ;;  %v6712_v4 = vcombine.low %v3655_v54, %v3659_v56  ;;  %v6703_v5 = vcombine.high %v3646_v46, %v3650_v60  ;;  %v3759_v9 = vld [vmem:[#allocation8 + $0x798] sm:$0xff] }
 0x8af   : > { %4521 = vmatpush1.bf16.msra.mxu1 %v6750_v6  ;;  %4574 = vmatpush1.bf16.msra.mxu0 %v6752_v63  ;;  %v8702_v13 = vpack.c.bf16 %v3638_v35, %v3636_v11  ;;  %v8704_v14 = vpack.c.bf16 %v3637_v10, %v3635_v19  ;;  %v6719_v44 = vcombine.high %v3662_v18, %v3666_v34  ;;  %v3770_v20 = vld [vmem:[#allocation8 + $0x7f0] sm:$0xff]  ;;  %v3767_v6 = vld [vmem:[#allocation8 + $0x7d8] sm:$0xff] }
 0x8b0   : > { %4522 = vmatprep.subr.bf16.mxu1 %v6743_v17  ;;  %4575 = vmatprep.subr.bf16.mxu0 %v6745_v24  ;;  %v6718_v8 = vcombine.low %v3662_v18, %v3666_v34  ;;  %v6705_v58 = vcombine.high %v3647_v1, %v3651_v27  ;;  %v6702_v57 = vcombine.low %v3646_v46, %v3650_v60  ;;  %v3758_v16 = vld [vmem:[#allocation8 + $0x790] sm:$0xff]  ;;  %v3763_v35 = vld [vmem:[#allocation8 + $0x7b8] sm:$0xff] }
 0x8b1   : > { %4454 = vmatprep.mubr.bf16.mxu1 %v8702_v13  ;;  %4507 = vmatprep.mubr.bf16.mxu0 %v8702_v13  ;;  %v6704_v63 = vcombine.low %v3647_v1, %v3651_v27  ;;  %v6823_v43 = vcombine.high %v3766_v12, %v3770_v20  ;;  %v6825_v50 = vcombine.high %v3767_v6, %v3771_v22  ;;  %v3762_v17 = vld [vmem:[#allocation8 + $0x7b0] sm:$0xff]  ;;  %v3751_v30 = vld [vmem:[#allocation8 + $0x758] sm:$0xff] }
 0x8b2   : > { %4455 = vmatmul.mubr.bf16.gmra.mxu1 %v8704_v14  ;;  %4508 = vmatmul.mubr.bf16.gmra.mxu0 %v8704_v14  ;;  %v6822_v24 = vcombine.low %v3766_v12, %v3770_v20  ;;  %v6824_v10 = vcombine.low %v3767_v6, %v3771_v22  ;;  %v6815_v11 = vcombine.high %v3758_v16, %v3762_v17  ;;  %v3750_v28 = vld [vmem:[#allocation8 + $0x750] sm:$0xff]  ;;  %v3743_v32 = vld [vmem:[#allocation8 + $0x718] sm:$0xff] }
 0x8b3   : > { %4523 = vmatpush1.bf16.msra.mxu1 %v6742_v29  ;;  %4576 = vmatpush1.bf16.msra.mxu0 %v6744_v21  ;;  %v6817_v19 = vcombine.high %v3759_v9, %v3763_v35  ;;  %v3754_v29 = vld [vmem:[#allocation8 + $0x770] sm:$0xff]  ;;  %v6814_v45 = vcombine.low %v3758_v16, %v3762_v17  ;;  %v6816_v21 = vcombine.low %v3759_v9, %v3763_v35  ;;  %v3747_v33 = vld [vmem:[#allocation8 + $0x738] sm:$0xff] }
 0x8b4   : > { %4550 = vmatprep.mubr.bf16.mxu1 %v8684_v61  ;;  %4603 = vmatprep.mubr.bf16.mxu0 %v8684_v61  ;;  %v6807_v53 = vcombine.high %v3750_v28, %v3754_v29  ;;  %v3746_v42 = vld [vmem:[#allocation8 + $0x730] sm:$0xff]  ;;  %v3727_v54 = vld [vmem:[#allocation8 + $0x698] sm:$0xff] }
 0x8b5   : > { %4524 = vmatprep.subr.bf16.mxu1 %v6735_v15  ;;  %4577 = vmatprep.subr.bf16.mxu0 %v6737_v37  ;;  %v6809_v15 = vcombine.high %v3751_v30, %v3755_v40  ;;  %v3742_v37 = vld [vmem:[#allocation8 + $0x710] sm:$0xff]  ;;  %v3731_v56 = vld [vmem:[#allocation8 + $0x6b8] sm:$0xff] }
 0x8b6   : > { %v3734_v18 = vld [vmem:[#allocation8 + $0x6d0] sm:$0xff]  ;;  %v3719_v1 = vld [vmem:[#allocation8 + $0x658] sm:$0xff] }
 0x8b7   : > { %4525 = vmatpush1.bf16.msra.mxu1 %v6734_v47  ;;  %4578 = vmatpush1.bf16.msra.mxu0 %v6736_v23  ;;  %v6806_v47 = vcombine.low %v3750_v28, %v3754_v29  ;;  %v6808_v23 = vcombine.low %v3751_v30, %v3755_v40  ;;  %v3738_v34 = vld [vmem:[#allocation8 + $0x6f0] sm:$0xff]  ;;  %v3723_v27 = vld [vmem:[#allocation8 + $0x678] sm:$0xff]  ;;  %v7463_v28 = vld [vmem:[#allocation10 + $0x460] ss:$8 sps:$4 sm:$0xff]  }
 0x8b8   : > { %4526 = vmatprep.subr.bf16.mxu1 %v6727_v25  ;;  %4579 = vmatprep.subr.bf16.mxu0 %v6729_v26  ;;  %v6799_v25 = vcombine.high %v3742_v37, %v3746_v42  ;;  %v6801_v26 = vcombine.high %v3743_v32, %v3747_v33  ;;  %v3726_v48 = vld [vmem:[#allocation8 + $0x690] sm:$0xff]  ;;  %v3711_v6 = vld [vmem:[#allocation8 + $0x618] sm:$0xff]  ;;  %v7466_v29 = vld [vmem:[#allocation10 + $0x560] ss:$8 sps:$4 sm:$0xff]  }
 0x8b9   : > { %v3730_v31 = vld [vmem:[#allocation8 + $0x6b0] sm:$0xff]  ;;  %v3715_v22 = vld [vmem:[#allocation8 + $0x638] sm:$0xff] }
 0x8ba   : > { %v3718_v46 = vld [vmem:[#allocation8 + $0x650] sm:$0xff]  ;;  %v6768_v17 = vcombine.low %v3711_v6, %v3715_v22 }
 0x8bb   : > { %4527 = vmatpush1.bf16.msra.mxu1 %v6726_v41  ;;  %4580 = vmatpush1.bf16.msra.mxu0 %v6728_v49  ;;  %v6798_v41 = vcombine.low %v3742_v37, %v3746_v42  ;;  %v6800_v49 = vcombine.low %v3743_v32, %v3747_v33  ;;  %v3722_v60 = vld [vmem:[#allocation8 + $0x670] sm:$0xff]  ;;  %v7475_v37 = vld [vmem:[#allocation10 + $0x440] ss:$8 sps:$4 sm:$0xff]  }
 0x8bc   : > { %4528 = vmatprep.subr.bf16.mxu1 %v6719_v44  ;;  %4581 = vmatprep.subr.bf16.mxu0 %v6721_v55  ;;  %v6791_v44 = vcombine.high %v3734_v18, %v3738_v34  ;;  %v6793_v55 = vcombine.high %v3735_v38, %v3739_v39  ;;  %v3710_v12 = vld [vmem:[#allocation8 + $0x610] sm:$0xff]  ;;  %v7478_v42 = vld [vmem:[#allocation10 + $0x540] ss:$8 sps:$4 sm:$0xff]  }
 0x8bd   : > { %v3714_v20 = vld [vmem:[#allocation8 + $0x630] sm:$0xff] }
 0x8be   : > { %v6766_v16 = vcombine.low %v3710_v12, %v3714_v20  ;;  %v7459_v9 = vld [vmem:[#allocation10 + $0x474] ss:$8 sps:$4 sm:$0xff]  }
 0x8bf   : > { %4529 = vmatpush1.bf16.msra.mxu1 %v6718_v8  ;;  %4582 = vmatpush1.bf16.msra.mxu0 %v6720_v59  ;;  %v6790_v8 = vcombine.low %v3734_v18, %v3738_v34  ;;  %v6792_v59 = vcombine.low %v3735_v38, %v3739_v39  ;;  %v7462_v35 = vld [vmem:[#allocation10 + $0x574] ss:$8 sps:$4 sm:$0xff]   ;;  %v7487_v18 = vld [vmem:[#allocation10 + $0x420] ss:$8 sps:$4 sm:$0xff]  }
 0x8c0   : > { %4530 = vmatprep.subr.bf16.mxu1 %v6711_v2  ;;  %4583 = vmatprep.subr.bf16.mxu0 %v6713_v36  ;;  %v6783_v2 = vcombine.high %v3726_v48, %v3730_v31  ;;  %v6785_v36 = vcombine.high %v3727_v54, %v3731_v56  ;;  %v7471_v30 = vld [vmem:[#allocation10 + $0x454] ss:$8 sps:$4 sm:$0xff]   ;;  %v7490_v34 = vld [vmem:[#allocation10 + $0x520] ss:$8 sps:$4 sm:$0xff]  }
 0x8c1   : > { %v7474_v40 = vld [vmem:[#allocation10 + $0x554] ss:$8 sps:$4 sm:$0xff]  }
 0x8c2   : > { %v7483_v32 = vld [vmem:[#allocation10 + $0x434] ss:$8 sps:$4 sm:$0xff]  }
 0x8c3   : > { %4531 = vmatpush1.bf16.msra.mxu1 %v6710_v62  ;;  %4584 = vmatpush1.bf16.msra.mxu0 %v6712_v4  ;;  %v6782_v62 = vcombine.low %v3726_v48, %v3730_v31  ;;  %v6784_v4 = vcombine.low %v3727_v54, %v3731_v56  ;;  %v7486_v33 = vld [vmem:[#allocation10 + $0x534] ss:$8 sps:$4 sm:$0xff]   ;;  %v7499_v48 = vld [vmem:[#allocation10 + $0x400] ss:$8 sps:$4 sm:$0xff]  }
 0x8c4   : > { %4532 = vmatprep.subr.bf16.mxu1 %v6703_v5  ;;  %4585 = vmatprep.subr.bf16.mxu0 %v6705_v58  ;;  %v6775_v5 = vcombine.high %v3718_v46, %v3722_v60  ;;  %v6777_v58 = vcombine.high %v3719_v1, %v3723_v27  ;;  %v7495_v38 = vld [vmem:[#allocation10 + $0x414] ss:$8 sps:$4 sm:$0xff]   ;;  %v7502_v31 = vld [vmem:[#allocation10 + $0x500] ss:$8 sps:$4 sm:$0xff]  }
 0x8c5   : > { %v7498_v39 = vld [vmem:[#allocation10 + $0x514] ss:$8 sps:$4 sm:$0xff]  }
 0x8c6   : > { %v7507_v54 = vld [vmem:[#allocation10 + $0x4f4] ss:$8 sps:$4 sm:$0xff]  }
 0x8c7   : > { %4533 = vmatpush1.bf16.msra.mxu1 %v6702_v57  ;;  %4586 = vmatpush1.bf16.msra.mxu0 %v6704_v63  ;;  %v6774_v57 = vcombine.low %v3718_v46, %v3722_v60  ;;  %v6776_v63 = vcombine.low %v3719_v1, %v3723_v27  ;;  %v7510_v56 = vld [vmem:[#allocation10 + $0x5f4] ss:$8 sps:$4 sm:$0xff]   ;;  %v7511_v46 = vld [vmem:[#allocation10 + $0x4e0] ss:$8 sps:$4 sm:$0xff]  }
 0x8c8   : > { %4534 = vmatprep.subr.bf16.mxu1 %v6823_v43  ;;  %4587 = vmatprep.subr.bf16.mxu0 %v6825_v50  ;;  %v6767_v43 = vcombine.high %v3710_v12, %v3714_v20  ;;  %v6769_v50 = vcombine.high %v3711_v6, %v3715_v22  ;;  %v7514_v60 = vld [vmem:[#allocation10 + $0x5e0] ss:$8 sps:$4 sm:$0xff]   ;;  %v7519_v1 = vld [vmem:[#allocation10 + $0x4d4] ss:$8 sps:$4 sm:$0xff]  }
 0x8c9   : > { %v7522_v27 = vld [vmem:[#allocation10 + $0x5d4] ss:$8 sps:$4 sm:$0xff]   ;;  %v7523_v12 = vld [vmem:[#allocation10 + $0x4c0] ss:$8 sps:$4 sm:$0xff]  }
 0x8ca   : > { %v7526_v20 = vld [vmem:[#allocation10 + $0x5c0] ss:$8 sps:$4 sm:$0xff]   ;;  %v7531_v6 = vld [vmem:[#allocation10 + $0x4b4] ss:$8 sps:$4 sm:$0xff]  }
 0x8cb   : > { %4535 = vmatpush2.bf16.msra.mxu1 %v6822_v24  ;;  %4588 = vmatpush2.bf16.msra.mxu0 %v6824_v10  ;;  %v7457_v24 = vld [vmem:[#allocation10 + $0x470] ss:$8 sps:$4 sm:$0xff]   ;;  %v7534_v22 = vld [vmem:[#allocation10 + $0x5b4] ss:$8 sps:$4 sm:$0xff]  }
 0x8cc   : > { %4536 = vmatprep.subr.bf16.mxu1 %v6815_v11  ;;  %4589 = vmatprep.subr.bf16.mxu0 %v6817_v19  ;;  %v7460_v10 = vld [vmem:[#allocation10 + $0x570] ss:$8 sps:$4 sm:$0xff]   ;;  %v7465_v11 = vld [vmem:[#allocation10 + $0x464] ss:$8 sps:$4 sm:$0xff]  }
 0x8cd   : > { %v7468_v19 = vld [vmem:[#allocation10 + $0x564] ss:$8 sps:$4 sm:$0xff]  }
 0x8cf   : > { %4537 = vmatpush2.bf16.msra.mxu1 %v6814_v45  ;;  %4590 = vmatpush2.bf16.msra.mxu0 %v6816_v21  ;;  %v7469_v45 = vld [vmem:[#allocation10 + $0x450] ss:$8 sps:$4 sm:$0xff]  }
 0x8d0   : > { %4538 = vmatprep.subr.bf16.mxu1 %v6807_v53  ;;  %4591 = vmatprep.subr.bf16.mxu0 %v6809_v15  ;;  %v7472_v21 = vld [vmem:[#allocation10 + $0x550] ss:$8 sps:$4 sm:$0xff]   ;;  %v7477_v53 = vld [vmem:[#allocation10 + $0x444] ss:$8 sps:$4 sm:$0xff]  }
 0x8d1   : > { %v7480_v15 = vld [vmem:[#allocation10 + $0x544] ss:$8 sps:$4 sm:$0xff]  }
 0x8d3   : > { %4539 = vmatpush2.bf16.msra.mxu1 %v6806_v47  ;;  %4592 = vmatpush2.bf16.msra.mxu0 %v6808_v23  ;;  %v7481_v47 = vld [vmem:[#allocation10 + $0x430] ss:$8 sps:$4 sm:$0xff]  }
 0x8d4   : > { %4540 = vmatprep.subr.bf16.mxu1 %v6799_v25  ;;  %4593 = vmatprep.subr.bf16.mxu0 %v6801_v26  ;;  %v7484_v23 = vld [vmem:[#allocation10 + $0x530] ss:$8 sps:$4 sm:$0xff]   ;;  %v7489_v25 = vld [vmem:[#allocation10 + $0x424] ss:$8 sps:$4 sm:$0xff]  }
 0x8d5   : > { %v7492_v26 = vld [vmem:[#allocation10 + $0x524] ss:$8 sps:$4 sm:$0xff]  }
 0x8d7   : > { %4541 = vmatpush2.bf16.msra.mxu1 %v6798_v41  ;;  %4594 = vmatpush2.bf16.msra.mxu0 %v6800_v49  ;;  %v7493_v41 = vld [vmem:[#allocation10 + $0x410] ss:$8 sps:$4 sm:$0xff]  }
 0x8d8   : > { %4542 = vmatprep.subr.bf16.mxu1 %v6791_v44  ;;  %4595 = vmatprep.subr.bf16.mxu0 %v6793_v55  ;;  %v7496_v49 = vld [vmem:[#allocation10 + $0x510] ss:$8 sps:$4 sm:$0xff]   ;;  %v7501_v44 = vld [vmem:[#allocation10 + $0x404] ss:$8 sps:$4 sm:$0xff]  }
 0x8d9   : > { %v7504_v55 = vld [vmem:[#allocation10 + $0x504] ss:$8 sps:$4 sm:$0xff]  }
 0x8db   : > { %4543 = vmatpush2.bf16.msra.mxu1 %v6790_v8  ;;  %4596 = vmatpush2.bf16.msra.mxu0 %v6792_v59  ;;  %v7505_v8 = vld [vmem:[#allocation10 + $0x4f0] ss:$8 sps:$4 sm:$0xff]  }
 0x8dc   : > { %4544 = vmatprep.subr.bf16.mxu1 %v6783_v2  ;;  %4597 = vmatprep.subr.bf16.mxu0 %v6785_v36  ;;  %v7508_v59 = vld [vmem:[#allocation10 + $0x5f0] ss:$8 sps:$4 sm:$0xff]   ;;  %v7513_v2 = vld [vmem:[#allocation10 + $0x4e4] ss:$8 sps:$4 sm:$0xff]  }
 0x8dd   : > { %v7516_v36 = vld [vmem:[#allocation10 + $0x5e4] ss:$8 sps:$4 sm:$0xff]  }
 0x8df   : > { %4545 = vmatpush2.bf16.msra.mxu1 %v6782_v62  ;;  %4598 = vmatpush2.bf16.msra.mxu0 %v6784_v4  ;;  %v7517_v62 = vld [vmem:[#allocation10 + $0x4d0] ss:$8 sps:$4 sm:$0xff]  }
 0x8e0   : > { %4546 = vmatprep.subr.bf16.mxu1 %v6775_v5  ;;  %4599 = vmatprep.subr.bf16.mxu0 %v6777_v58  ;;  %v7520_v4 = vld [vmem:[#allocation10 + $0x5d0] ss:$8 sps:$4 sm:$0xff]   ;;  %v7525_v5 = vld [vmem:[#allocation10 + $0x4c4] ss:$8 sps:$4 sm:$0xff]  }
 0x8e1   : > { %v7528_v58 = vld [vmem:[#allocation10 + $0x5c4] ss:$8 sps:$4 sm:$0xff]  }
 0x8e3   : > { %4547 = vmatpush2.bf16.msra.mxu1 %v6774_v57  ;;  %4600 = vmatpush2.bf16.msra.mxu0 %v6776_v63  ;;  %v7529_v57 = vld [vmem:[#allocation10 + $0x4b0] ss:$8 sps:$4 sm:$0xff]  }
 0x8e4   : > { %4548 = vmatprep.subr.bf16.mxu1 %v6767_v43  ;;  %4601 = vmatprep.subr.bf16.mxu0 %v6769_v50  ;;  %v7532_v63 = vld [vmem:[#allocation10 + $0x5b0] ss:$8 sps:$4 sm:$0xff]   ;;  %v7537_v43 = vld [vmem:[#allocation10 + $0x4a4] ss:$8 sps:$4 sm:$0xff]  }
 0x8e5   : > { %v7540_v50 = vld [vmem:[#allocation10 + $0x5a4] ss:$8 sps:$4 sm:$0xff]  }
 0x8e7   : > { %4549 = vmatpush2.bf16.msra.mxu1 %v6766_v16  ;;  %4602 = vmatpush2.bf16.msra.mxu0 %v6768_v17  ;;  %v7535_v16 = vld [vmem:[#allocation10 + $0x4a0] ss:$8 sps:$4 sm:$0xff]  }
 0x8e8   : > { %5560 = vmatprep.subr.bf16.mxu1 %v7459_v9  ;;  %5613 = vmatprep.subr.bf16.mxu0 %v7462_v35  ;;  %v7538_v17 = vld [vmem:[#allocation10 + $0x5a0] ss:$8 sps:$4 sm:$0xff]   ;;  %v7543_v9 = vld [vmem:[#allocation10 + $0x494] ss:$8 sps:$4 sm:$0xff]  }
 0x8e9   : > { %v7546_v35 = vld [vmem:[#allocation10 + $0x594] ss:$8 sps:$4 sm:$0xff]  }
 0x8ea   : > { %4551 = vmatmul.mubr.bf16.vlgmr.msra.gmra.mxu1 %v8686_v3  ;;  %4604 = vmatmul.mubr.bf16.vlgmr.msra.gmra.mxu0 %v8686_v3 }
 0x8eb   : > { %4560 = vmatprep.mubr.bf16.mxu1 %v8702_v13  ;;  %4613 = vmatprep.mubr.bf16.mxu0 %v8702_v13 }
 0x8ec   : > { %5561 = vmatpush1.bf16.msra.mxu1 %v7457_v24  ;;  %5614 = vmatpush1.bf16.msra.mxu0 %v7460_v10  ;;  %v7541_v24 = vld [vmem:[#allocation10 + $0x490] ss:$8 sps:$4 sm:$0xff]  }
 0x8ed   : > { %5562 = vmatprep.subr.bf16.mxu1 %v7465_v11  ;;  %5615 = vmatprep.subr.bf16.mxu0 %v7468_v19  ;;  %v7544_v10 = vld [vmem:[#allocation10 + $0x590] ss:$8 sps:$4 sm:$0xff]   ;;  %v7549_v11 = vld [vmem:[#allocation10 + $0x484] ss:$8 sps:$4 sm:$0xff]  }
 0x8ee   : > { %v7552_v19 = vld [vmem:[#allocation10 + $0x584] ss:$8 sps:$4 sm:$0xff]  }
 0x8f0   : > { %5563 = vmatpush1.bf16.msra.mxu1 %v7463_v28  ;;  %5616 = vmatpush1.bf16.msra.mxu0 %v7466_v29  ;;  %v7547_v28 = vld [vmem:[#allocation10 + $0x480] ss:$8 sps:$4 sm:$0xff]  }
 0x8f1   : > { %5564 = vmatprep.subr.bf16.mxu1 %v7471_v30  ;;  %5617 = vmatprep.subr.bf16.mxu0 %v7474_v40  ;;  %v7550_v29 = vld [vmem:[#allocation10 + $0x580] ss:$8 sps:$4 sm:$0xff]   ;;  %v7555_v30 = vld [vmem:[#allocation10 + $0x674] ss:$8 sps:$4 sm:$0xff]  }
 0x8f2   : > { %4561 = vmatmul.mubr.bf16.gmra.mxu1 %v8704_v14  ;;  %4614 = vmatmul.mubr.bf16.gmra.mxu0 %v8704_v14  ;;  %v7558_v40 = vld [vmem:[#allocation10 + $0x774] ss:$8 sps:$4 sm:$0xff]  }
 0x8f4   : > { %5565 = vmatpush1.bf16.msra.mxu1 %v7469_v45  ;;  %5618 = vmatpush1.bf16.msra.mxu0 %v7472_v21  ;;  %v8721_v45 = vld [vmem:[%s8871_s6 + $0x8] sm:$0xff] }
 0x8f5   : > { %5566 = vmatprep.subr.bf16.mxu1 %v7477_v53  ;;  %5619 = vmatprep.subr.bf16.mxu0 %v7480_v15  ;;  %v4650_v21 = vrot.slane %v8721_v45, %v8422_v7 }
 0x8f7   : > { %v4658_v53 = vcombine.high %v4650_v21, %v4650_v21  ;;  %v4666_v15 = vrot.slane %v4650_v21, %v8422_v7 }
 0x8f8   : > { %5567 = vmatpush1.bf16.msra.mxu1 %v7475_v37  ;;  %5620 = vmatpush1.bf16.msra.mxu0 %v7478_v42 }
 0x8f9   : > { %5568 = vmatprep.subr.bf16.mxu1 %v7483_v32  ;;  %5621 = vmatprep.subr.bf16.mxu0 %v7486_v33  ;;  %v4680_v37 = vrot.slane %v4658_v53, %v8422_v7  ;;  %v4688_v42 = vcombine.high %v4666_v15, %v4666_v15 }
 0x8fb   : > { %v4690_v32 = vcombine.high %v4680_v37, %v4680_v37 }
 0x8fc   : > { %5569 = vmatpush1.bf16.msra.mxu1 %v7481_v47  ;;  %5622 = vmatpush1.bf16.msra.mxu0 %v7484_v23  ;;  %v4693_v23 = vpack.i.b16 %v4666_v15, %v4666_v15  ;;  %v7570_v15 = vld [vmem:[#allocation10 + $0x754] ss:$8 sps:$4 sm:$0xff]  }
 0x8fd   : > { %5570 = vmatprep.subr.bf16.mxu1 %v7489_v25  ;;  %5623 = vmatprep.subr.bf16.mxu0 %v7492_v26  ;;  %v4707_v25 = vpack.i.b16 %v4688_v42, %v4688_v42  ;;  %v4700_v26 = vpack.i.b16 %v4680_v37, %v4680_v37 }
 0x900   : > { %5571 = vmatpush1.bf16.msra.mxu1 %v7487_v18  ;;  %5624 = vmatpush1.bf16.msra.mxu0 %v7490_v34  ;;  %v4714_v18 = vpack.i.b16 %v4690_v32, %v4690_v32  ;;  %v7565_v32 = vld [vmem:[#allocation10 + $0x650] ss:$8 sps:$4 sm:$0xff]  }
 0x901   : > { %5572 = vmatprep.subr.bf16.mxu1 %v7495_v38  ;;  %5625 = vmatprep.subr.bf16.mxu0 %v7498_v39 }
 0x904   : > { %5573 = vmatpush1.bf16.msra.mxu1 %v7493_v41  ;;  %5626 = vmatpush1.bf16.msra.mxu0 %v7496_v49  ;;  %v4698_v41 = vrot.slane %v4693_v23, %v8265_v52  ;;  %v7573_v23 = vld [vmem:[#allocation10 + $0x644] ss:$8 sps:$4 sm:$0xff]  }
 0x905   : > { %5574 = vmatprep.subr.bf16.mxu1 %v7501_v44  ;;  %5627 = vmatprep.subr.bf16.mxu0 %v7504_v55  ;;  %v4712_v44 = vrot.slane %v4707_v25, %v8265_v52 }
 0x908   : > { %5575 = vmatpush1.bf16.msra.mxu1 %v7499_v48  ;;  %5628 = vmatpush1.bf16.msra.mxu0 %v7502_v31  ;;  %v4705_v31 = vrot.slane %v4700_v26, %v8265_v52  ;;  %v7576_v26 = vld [vmem:[#allocation10 + $0x744] ss:$8 sps:$4 sm:$0xff]  }
 0x909   : > { %5576 = vmatprep.subr.bf16.mxu1 %v7507_v54  ;;  %5629 = vmatprep.subr.bf16.mxu0 %v7510_v56  ;;  %v4719_v54 = vrot.slane %v4714_v18, %v8265_v52  ;;  %v7571_v18 = vld [vmem:[#allocation10 + $0x640] ss:$8 sps:$4 sm:$0xff]  }
 0x90c   : > { %5577 = vmatpush2.bf16.msra.mxu1 %v7505_v8  ;;  %5630 = vmatpush2.bf16.msra.mxu0 %v7508_v59 }
 0x90d   : > { %5578 = vmatprep.subr.bf16.mxu1 %v7513_v2  ;;  %5631 = vmatprep.subr.bf16.mxu0 %v7516_v36 }
 0x910   : > { %5579 = vmatpush2.bf16.msra.mxu1 %v7511_v46  ;;  %5632 = vmatpush2.bf16.msra.mxu0 %v7514_v60 }
 0x911   : > { %5580 = vmatprep.subr.bf16.mxu1 %v7519_v1  ;;  %5633 = vmatprep.subr.bf16.mxu0 %v7522_v27 }
 0x914   : > { %5581 = vmatpush2.bf16.msra.mxu1 %v7517_v62  ;;  %5634 = vmatpush2.bf16.msra.mxu0 %v7520_v4 }
 0x915   : > { %5582 = vmatprep.subr.bf16.mxu1 %v7525_v5  ;;  %5635 = vmatprep.subr.bf16.mxu0 %v7528_v58 }
 0x918   : > { %5583 = vmatpush2.bf16.msra.mxu1 %v7523_v12  ;;  %5636 = vmatpush2.bf16.msra.mxu0 %v7526_v20  ;;  %v7553_v20 = vld [vmem:[#allocation10 + $0x670] ss:$8 sps:$4 sm:$0xff]  }
 0x919   : > { %5584 = vmatprep.subr.bf16.mxu1 %v7531_v6  ;;  %5637 = vmatprep.subr.bf16.mxu0 %v7534_v22 }
 0x91c   : > { %5585 = vmatpush2.bf16.msra.mxu1 %v7529_v57  ;;  %5638 = vmatpush2.bf16.msra.mxu0 %v7532_v63 }
 0x91d   : > { %5586 = vmatprep.subr.bf16.mxu1 %v7537_v43  ;;  %5639 = vmatprep.subr.bf16.mxu0 %v7540_v50  ;;  %v7556_v43 = vld [vmem:[#allocation10 + $0x770] ss:$8 sps:$4 sm:$0xff]   ;;  %v7561_v50 = vld [vmem:[#allocation10 + $0x664] ss:$8 sps:$4 sm:$0xff]  }
 0x920   : > { %5587 = vmatpush2.bf16.msra.mxu1 %v7535_v16  ;;  %5640 = vmatpush2.bf16.msra.mxu0 %v7538_v17 }
 0x921   : > { %5588 = vmatprep.subr.bf16.mxu1 %v7543_v9  ;;  %5641 = vmatprep.subr.bf16.mxu0 %v7546_v35  ;;  %v7564_v9 = vld [vmem:[#allocation10 + $0x764] ss:$8 sps:$4 sm:$0xff]  }
 0x924   : > { %5589 = vmatpush2.bf16.msra.mxu1 %v7541_v24  ;;  %5642 = vmatpush2.bf16.msra.mxu0 %v7544_v10 }
 0x925   : > { %5590 = vmatprep.subr.bf16.mxu1 %v7549_v11  ;;  %5643 = vmatprep.subr.bf16.mxu0 %v7552_v19  ;;  %v7559_v19 = vld [vmem:[#allocation10 + $0x660] ss:$8 sps:$4 sm:$0xff]  }
 0x928   : > { %5591 = vmatpush2.bf16.msra.mxu1 %v7547_v28  ;;  %5644 = vmatpush2.bf16.msra.mxu0 %v7550_v29  ;;  %v7562_v29 = vld [vmem:[#allocation10 + $0x760] ss:$8 sps:$4 sm:$0xff]  }
 0x929   : > { %5666 = vmatprep.subr.bf16.mxu1 %v7555_v30  ;;  %5719 = vmatprep.subr.bf16.mxu0 %v7558_v40  ;;  %v7567_v30 = vld [vmem:[#allocation10 + $0x654] ss:$8 sps:$4 sm:$0xff]  }
 0x96a   : > { %v4446_v33 = vpop.f32.mrf.mxu1  ;;  %v4499_v47 = vpop.f32.mrf.mxu0 }
 0x96c   : > { %v4448_v34 = vpop.f32.mrf.mxu1  ;;  %v4501_v38 = vpop.f32.mrf.mxu0 }
 0x96e   : > { %v4450_v39 = vpop.f32.mrf.mxu1  ;;  %v4503_v49 = vpop.f32.mrf.mxu0 }
 0x96f   : > { %v4624_v55 = vpack.c.bf16 %v4450_v39, %v4446_v33  ;;  %v4626_v48 = vpack.c.bf16 %v4503_v49, %v4499_v47  ;;  %v7568_v33 = vld [vmem:[#allocation10 + $0x750] ss:$8 sps:$4 sm:$0xff]   ;;  %v7582_v39 = vld [vmem:[#allocation10 + $0x734] ss:$8 sps:$4 sm:$0xff]  }
 0x970   : > { %v4452_v56 = vpop.f32.mrf.mxu1  ;;  %v4505_v8 = vpop.f32.mrf.mxu0  ;;  %v7580_v49 = vld [vmem:[#allocation10 + $0x730] ss:$8 sps:$4 sm:$0xff]  }
 0x971   : > { %v4625_v59 = vpack.c.bf16 %v4452_v56, %v4448_v34  ;;  %v4627_v2 = vpack.c.bf16 %v4505_v8, %v4501_v38  ;;  %v4748_v36 = vadd.bf16 %v4698_v41, %v4624_v55  ;;  %v4750_v46 = vadd.bf16 %v4712_v44, %v4626_v48  ;;  %v7574_v34 = vld [vmem:[#allocation10 + $0x740] ss:$8 sps:$4 sm:$0xff]   ;;  %v7579_v38 = vld [vmem:[#allocation10 + $0x634] ss:$8 sps:$4 sm:$0xff]   ;;  %v7588_v55 = vld [vmem:[#allocation10 + $0x724] ss:$8 sps:$4 sm:$0xff]  }
 0x972   : > { %v4456_v60 = vpop.f32.mrf.mxu1  ;;  %v4509_v1 = vpop.f32.mrf.mxu0  ;;  %v7583_v48 = vld [vmem:[#allocation10 + $0x620] ss:$8 sps:$4 sm:$0xff]   ;;  %v7594_v56 = vld [vmem:[#allocation10 + $0x714] ss:$8 sps:$4 sm:$0xff]   ;;  %v7589_v8 = vld [vmem:[#allocation10 + $0x610] ss:$8 sps:$4 sm:$0xff]  }
 0x973   : > { %v4749_v27 = vadd.bf16 %v4705_v31, %v4625_v59  ;;  %v4751_v62 = vadd.bf16 %v4719_v54, %v4627_v2  ;;  %v4764_v6 = vmax.bf16 %v7989_v0, %v4748_v36  ;;  %v4766_v22 = vmax.bf16 %v7989_v0, %v4750_v46  ;;  %v7592_v59 = vld [vmem:[#allocation10 + $0x710] ss:$8 sps:$4 sm:$0xff]   ;;  %v7597_v2 = vld [vmem:[#allocation10 + $0x604] ss:$8 sps:$4 sm:$0xff]   ;;  %v7595_v46 = vld [vmem:[#allocation10 + $0x600] ss:$8 sps:$4 sm:$0xff]  }
 0x974   : > { %v4458_v4 = vpop.f32.mrf.mxu1  ;;  %v4511_v5 = vpop.f32.mrf.mxu0  ;;  %v7600_v36 = vld [vmem:[#allocation10 + $0x704] ss:$8 sps:$4 sm:$0xff]  }
 0x975   : > { %v4765_v58 = vmax.bf16 %v7989_v0, %v4749_v27  ;;  %v4767_v12 = vmax.bf16 %v7989_v0, %v4751_v62  ;;  %v7606_v27 = vld [vmem:[#allocation10 + $0x7f4] ss:$8 sps:$4 sm:$0xff]   ;;  %v7601_v62 = vld [vmem:[#allocation10 + $0x6f0] ss:$8 sps:$4 sm:$0xff]  }
 0x976   : > { %v4460_v57 = vpop.f32.mrf.mxu1  ;;  %v4513_v63 = vpop.f32.mrf.mxu0 }
 0x977   : > { %v4632_v16 = vpack.c.bf16 %v4460_v57, %v4456_v60  ;;  %v4634_v17 = vpack.c.bf16 %v4513_v63, %v4509_v1  ;;  %5592 = vmatprep.mubr.bf16.mxu1 %v4765_v58  ;;  %5645 = vmatprep.mubr.bf16.mxu0 %v4767_v12  ;;  %v7598_v60 = vld [vmem:[#allocation10 + $0x700] ss:$8 sps:$4 sm:$0xff]   ;;  %v7603_v1 = vld [vmem:[#allocation10 + $0x6f4] ss:$8 sps:$4 sm:$0xff]   ;;  %v7612_v58 = vld [vmem:[#allocation10 + $0x7e4] ss:$8 sps:$4 sm:$0xff]   ;;  %v4643_v12 = vcombine.high %v8721_v45, %v8721_v45 }
 0x978   : > { %v4462_v35 = vpop.f32.mrf.mxu1  ;;  %v4515_v24 = vpop.f32.mrf.mxu0  ;;  %5593 = vmatmul.mubr.bf16.vlgmr.msra.gmra.mxu1 %v4764_v6  ;;  %5646 = vmatmul.mubr.bf16.vlgmr.msra.gmra.mxu0 %v4766_v22  ;;  %v7610_v6 = vld [vmem:[#allocation10 + $0x7e0] ss:$8 sps:$4 sm:$0xff]   ;;  %v7615_v22 = vld [vmem:[#allocation10 + $0x6d4] ss:$8 sps:$4 sm:$0xff]  }
 0x979   : > { %v4633_v10 = vpack.c.bf16 %v4462_v35, %v4458_v4  ;;  %v4635_v11 = vpack.c.bf16 %v4515_v24, %v4511_v5  ;;  %5667 = vmatpush1.bf16.msra.mxu1 %v7553_v20  ;;  %v4756_v28 = vadd.bf16 %v4698_v41, %v4632_v16  ;;  %5720 = vmatpush1.bf16.msra.mxu0 %v7556_v43  ;;  %v7577_v41 = vld [vmem:[#allocation10 + $0x630] ss:$8 sps:$4 sm:$0xff]   ;;  %v7609_v5 = vld [vmem:[#allocation10 + $0x6e4] ss:$8 sps:$4 sm:$0xff]   ;;  %v7607_v20 = vld [vmem:[#allocation10 + $0x6e0] ss:$8 sps:$4 sm:$0xff]  }
 0x97a   : > { %5668 = vmatprep.subr.bf16.mxu1 %v7561_v50  ;;  %v4758_v40 = vadd.bf16 %v4712_v44, %v4634_v17  ;;  %5721 = vmatprep.subr.bf16.mxu0 %v7564_v9  ;;  %v7585_v44 = vld [vmem:[#allocation10 + $0x624] ss:$8 sps:$4 sm:$0xff]   ;;  %v7604_v4 = vld [vmem:[#allocation10 + $0x7f0] ss:$8 sps:$4 sm:$0xff]   ;;  %v7618_v57 = vld [vmem:[#allocation10 + $0x7d4] ss:$8 sps:$4 sm:$0xff]   ;;  %v4657_v63 = vrot.slane %v4643_v12, %v8422_v7 }
 0x97b   : > { %v4757_v21 = vadd.bf16 %v4705_v31, %v4633_v10  ;;  %v4759_v53 = vadd.bf16 %v4719_v54, %v4635_v11  ;;  %v4772_v47 = vmax.bf16 %v7989_v0, %v4756_v28  ;;  %v7586_v31 = vld [vmem:[#allocation10 + $0x720] ss:$8 sps:$4 sm:$0xff]   ;;  %v7591_v54 = vld [vmem:[#allocation10 + $0x614] ss:$8 sps:$4 sm:$0xff]   ;;  %v7613_v43 = vld [vmem:[#allocation10 + $0x6d0] ss:$8 sps:$4 sm:$0xff]  }
 0x97c   : > { %v4774_v25 = vmax.bf16 %v7989_v0, %v4758_v40  ;;  %v7616_v50 = vld [vmem:[#allocation10 + $0x7d0] ss:$8 sps:$4 sm:$0xff]   ;;  %v7621_v16 = vld [vmem:[#allocation10 + $0x6c4] ss:$8 sps:$4 sm:$0xff]   ;;  %v4659_v9 = vcombine.high %v4657_v63, %v4657_v63  ;;  %v7619_v45 = vld [vmem:[#allocation10 + $0x6c0] ss:$8 sps:$4 sm:$0xff]   ;;  %v4673_v10 = vrot.slane %v4657_v63, %v8422_v7 }
 0x97d   : > { %5669 = vmatpush1.bf16.msra.mxu1 %v7559_v19  ;;  %v4773_v37 = vmax.bf16 %v7989_v0, %v4757_v21  ;;  %v4775_v42 = vmax.bf16 %v7989_v0, %v4759_v53  ;;  %5722 = vmatpush1.bf16.msra.mxu0 %v7562_v29  ;;  %v7624_v17 = vld [vmem:[#allocation10 + $0x7c4] ss:$8 sps:$4 sm:$0xff]   ;;  %v7622_v35 = vld [vmem:[#allocation10 + $0x7c0] ss:$8 sps:$4 sm:$0xff]   ;;  %v7627_v24 = vld [vmem:[#allocation10 + $0x6b4] ss:$8 sps:$4 sm:$0xff]  }
 0x97e   : > { %5670 = vmatprep.subr.bf16.mxu1 %v7567_v30  ;;  %5723 = vmatprep.subr.bf16.mxu0 %v7570_v15  ;;  %v7630_v11 = vld [vmem:[#allocation10 + $0x7b4] ss:$8 sps:$4 sm:$0xff]   ;;  %v4687_v19 = vrot.slane %v4659_v9, %v8422_v7  ;;  %v7625_v28 = vld [vmem:[#allocation10 + $0x6b0] ss:$8 sps:$4 sm:$0xff]   ;;  %v7633_v30 = vld [vmem:[#allocation10 + $0x6a4] ss:$8 sps:$4 sm:$0xff]   ;;  %v4689_v40 = vcombine.high %v4673_v10, %v4673_v10 }
 0x97f   : > { %5602 = vmatprep.mubr.bf16.mxu1 %v4773_v37  ;;  %5655 = vmatprep.mubr.bf16.mxu0 %v4775_v42  ;;  %v7628_v29 = vld [vmem:[#allocation10 + $0x7b0] ss:$8 sps:$4 sm:$0xff]   ;;  %v7636_v21 = vld [vmem:[#allocation10 + $0x7a4] ss:$8 sps:$4 sm:$0xff]   ;;  %v7631_v15 = vld [vmem:[#allocation10 + $0x6a0] ss:$8 sps:$4 sm:$0xff]  }
 0x980   : > { %5603 = vmatmul.mubr.bf16.gmra.mxu1 %v4772_v47  ;;  %5656 = vmatmul.mubr.bf16.gmra.mxu0 %v4774_v25  ;;  %v4691_v53 = vcombine.high %v4687_v19, %v4687_v19  ;;  %v4735_v47 = vpack.i.b16 %v4689_v40, %v4689_v40  ;;  %v7640_v7 = vld [vmem:[#allocation10 + $0x694] ss:$8 sps:$4 sm:$0xff]  }
 0x981   : > { %5671 = vmatpush1.bf16.msra.mxu1 %v7565_v32  ;;  %5724 = vmatpush1.bf16.msra.mxu0 %v7568_v33  ;;  %v7634_v32 = vld [vmem:[#allocation10 + $0x7a0] ss:$8 sps:$4 sm:$0xff]   ;;  %v4721_v33 = vpack.i.b16 %v4673_v10, %v4673_v10 }
 0x982   : > { %5672 = vmatprep.subr.bf16.mxu1 %v7573_v23  ;;  %5725 = vmatprep.subr.bf16.mxu0 %v7576_v26  ;;  %v4728_v23 = vpack.i.b16 %v4687_v19, %v4687_v19  ;;  %v4742_v25 = vpack.i.b16 %v4691_v53, %v4691_v53  ;;  %v7643_v26 = vld [vmem:[#allocation10 + $0x794] ss:$8 sps:$4 sm:$0xff]  }
 0x985   : > { %5673 = vmatpush1.bf16.msra.mxu1 %v7571_v18  ;;  %5726 = vmatpush1.bf16.msra.mxu0 %v7574_v34 }
 0x986   : > { %5674 = vmatprep.subr.bf16.mxu1 %v7579_v38  ;;  %5727 = vmatprep.subr.bf16.mxu0 %v7582_v39  ;;  %v7638_v38 = vld [vmem:[#allocation10 + $0x690] ss:$8 sps:$4 sm:$0xff]  }
 0x989   : > { %5675 = vmatpush1.bf16.msra.mxu1 %v7577_v41  ;;  %5728 = vmatpush1.bf16.msra.mxu0 %v7580_v49  ;;  %v4726_v41 = vrot.slane %v4721_v33, %v8265_v52 }
 0x98a   : > { %5676 = vmatprep.subr.bf16.mxu1 %v7585_v44  ;;  %5729 = vmatprep.subr.bf16.mxu0 %v7588_v55  ;;  %v4740_v44 = vrot.slane %v4735_v47, %v8265_v52  ;;  %v7641_v55 = vld [vmem:[#allocation10 + $0x790] ss:$8 sps:$4 sm:$0xff]  }
 0x98d   : > { %5677 = vmatpush1.bf16.msra.mxu1 %v7583_v48  ;;  %5730 = vmatpush1.bf16.msra.mxu0 %v7586_v31  ;;  %v7646_v48 = vld [vmem:[#allocation10 + $0x684] ss:$8 sps:$4 sm:$0xff]  }
 0x98e   : > { %5678 = vmatprep.subr.bf16.mxu1 %v7591_v54  ;;  %5731 = vmatprep.subr.bf16.mxu0 %v7594_v56  ;;  %v4733_v56 = vrot.slane %v4728_v23, %v8265_v52 }
 0x991   : > { %5679 = vmatpush1.bf16.msra.mxu1 %v7589_v8  ;;  %5732 = vmatpush1.bf16.msra.mxu0 %v7592_v59  ;;  %v4747_v8 = vrot.slane %v4742_v25, %v8265_v52  ;;  %v7649_v59 = vld [vmem:[#allocation10 + $0x784] ss:$8 sps:$4 sm:$0xff]  }
 0x992   : > { %5680 = vmatprep.subr.bf16.mxu1 %v7597_v2  ;;  %5733 = vmatprep.subr.bf16.mxu0 %v7600_v36 }
 0x995   : > { %5681 = vmatpush1.bf16.msra.mxu1 %v7595_v46  ;;  %5734 = vmatpush1.bf16.msra.mxu0 %v7598_v60 }
 0x996   : > { %5682 = vmatprep.subr.bf16.mxu1 %v7603_v1  ;;  %5735 = vmatprep.subr.bf16.mxu0 %v7606_v27  ;;  %v7644_v1 = vld [vmem:[#allocation10 + $0x680] ss:$8 sps:$4 sm:$0xff]  }
 0x999   : > { %5683 = vmatpush2.bf16.msra.mxu1 %v7601_v62  ;;  %5736 = vmatpush2.bf16.msra.mxu0 %v7604_v4 }
 0x99a   : > { %5684 = vmatprep.subr.bf16.mxu1 %v7609_v5  ;;  %5737 = vmatprep.subr.bf16.mxu0 %v7612_v58  ;;  %v7647_v5 = vld [vmem:[#allocation10 + $0x780] ss:$8 sps:$4 sm:$0xff]  }
 0x99d   : > { %5685 = vmatpush2.bf16.msra.mxu1 %v7607_v20  ;;  %5738 = vmatpush2.bf16.msra.mxu0 %v7610_v6 }
 0x99e   : > { %5686 = vmatprep.subr.bf16.mxu1 %v7615_v22  ;;  %5739 = vmatprep.subr.bf16.mxu0 %v7618_v57 }
 0x9a1   : > { %5687 = vmatpush2.bf16.msra.mxu1 %v7613_v43  ;;  %5740 = vmatpush2.bf16.msra.mxu0 %v7616_v50 }
 0x9a2   : > { %5688 = vmatprep.subr.bf16.mxu1 %v7621_v16  ;;  %5741 = vmatprep.subr.bf16.mxu0 %v7624_v17 }
 0x9a5   : > { %5689 = vmatpush2.bf16.msra.mxu1 %v7619_v45  ;;  %5742 = vmatpush2.bf16.msra.mxu0 %v7622_v35 }
 0x9a6   : > { %5690 = vmatprep.subr.bf16.mxu1 %v7627_v24  ;;  %5743 = vmatprep.subr.bf16.mxu0 %v7630_v11 }
 0x9a9   : > { %5691 = vmatpush2.bf16.msra.mxu1 %v7625_v28  ;;  %5744 = vmatpush2.bf16.msra.mxu0 %v7628_v29 }
 0x9aa   : > { %v4552_v37 = vpop.f32.mrf.mxu1  ;;  %v4605_v42 = vpop.f32.mrf.mxu0  ;;  %5692 = vmatprep.subr.bf16.mxu1 %v7633_v30  ;;  %5745 = vmatprep.subr.bf16.mxu0 %v7636_v21 }
 0x9ac   : > { %v4554_v18 = vpop.f32.mrf.mxu1  ;;  %v4607_v34 = vpop.f32.mrf.mxu0 }
 0x9ad   : > { %5693 = vmatpush2.bf16.msra.mxu1 %v7631_v15  ;;  %5746 = vmatpush2.bf16.msra.mxu0 %v7634_v32 }
 0x9ae   : > { %v4556_v39 = vpop.f32.mrf.mxu1  ;;  %v4609_v49 = vpop.f32.mrf.mxu0  ;;  %5694 = vmatprep.subr.bf16.mxu1 %v7640_v7  ;;  %5747 = vmatprep.subr.bf16.mxu0 %v7643_v26 }
 0x9af   : > { %v4628_v31 = vpack.c.bf16 %v4556_v39, %v4552_v37  ;;  %v4630_v54 = vpack.c.bf16 %v4609_v49, %v4605_v42 }
 0x9b0   : > { %v4558_v2 = vpop.f32.mrf.mxu1  ;;  %v4611_v36 = vpop.f32.mrf.mxu0 }
 0x9b1   : > { %v4629_v46 = vpack.c.bf16 %v4558_v2, %v4554_v18  ;;  %v4631_v60 = vpack.c.bf16 %v4611_v36, %v4607_v34  ;;  %5695 = vmatpush2.bf16.msra.mxu1 %v7638_v38  ;;  %v4752_v27 = vadd.bf16 %v4726_v41, %v4628_v31  ;;  %5748 = vmatpush2.bf16.msra.mxu0 %v7641_v55  ;;  %v6663_v34 = vld [vmem:[%s8872_s7 + $0x10] ss:$8 sm:$0x3] }
 0x9b2   : > { %v4562_v62 = vpop.f32.mrf.mxu1  ;;  %v4615_v4 = vpop.f32.mrf.mxu0  ;;  %5696 = vmatprep.subr.bf16.mxu1 %v7646_v48  ;;  %v4754_v58 = vadd.bf16 %v4740_v44, %v4630_v54  ;;  %5749 = vmatprep.subr.bf16.mxu0 %v7649_v59  ;;  %v4917_v49 = vrot.slane %v6663_v34, %v8262_v51 }
 0x9b3   : > { %v4753_v12 = vadd.bf16 %v4733_v56, %v4629_v46  ;;  %v4755_v20 = vadd.bf16 %v4747_v8, %v4631_v60  ;;  %v4768_v43 = vmax.bf16 %v7989_v0, %v4752_v27 }
 0x9b4   : > { %v4564_v6 = vpop.f32.mrf.mxu1  ;;  %v4617_v22 = vpop.f32.mrf.mxu0  ;;  %v4770_v17 = vmax.bf16 %v7989_v0, %v4754_v58 }
 0x9b5   : > { %5697 = vmatpush2.bf16.msra.mxu1 %v7644_v1  ;;  %v4769_v57 = vmax.bf16 %v7989_v0, %v4753_v12  ;;  %v4771_v63 = vmax.bf16 %v7989_v0, %v4755_v20  ;;  %5750 = vmatpush2.bf16.msra.mxu0 %v7647_v5 }
 0x9b6   : > { %v4566_v50 = vpop.f32.mrf.mxu1  ;;  %v4619_v16 = vpop.f32.mrf.mxu0 }
 0x9b7   : > { %v4636_v9 = vpack.c.bf16 %v4566_v50, %v4562_v62  ;;  %v4638_v45 = vpack.c.bf16 %v4619_v16, %v4615_v4  ;;  %5698 = vmatprep.mubr.bf16.mxu1 %v4769_v57  ;;  %5751 = vmatprep.mubr.bf16.mxu0 %v4771_v63 }
 0x9b8   : > { %v4568_v35 = vpop.f32.mrf.mxu1  ;;  %v4621_v24 = vpop.f32.mrf.mxu0  ;;  %5699 = vmatmul.mubr.bf16.vlgmr.msra.gmra.mxu1 %v4768_v43  ;;  %5752 = vmatmul.mubr.bf16.vlgmr.msra.gmra.mxu0 %v4770_v17 }
 0x9b9   : > { %v4637_v10 = vpack.c.bf16 %v4568_v35, %v4564_v6  ;;  %v4639_v11 = vpack.c.bf16 %v4621_v24, %v4617_v22  ;;  %v4760_v19 = vadd.bf16 %v4726_v41, %v4636_v9  ;;  %v4762_v28 = vadd.bf16 %v4740_v44, %v4638_v45 }
 0x9bb   : > { %v4761_v29 = vadd.bf16 %v4733_v56, %v4637_v10  ;;  %v4763_v30 = vadd.bf16 %v4747_v8, %v4639_v11  ;;  %v4776_v53 = vmax.bf16 %v7989_v0, %v4760_v19  ;;  %v4778_v15 = vmax.bf16 %v7989_v0, %v4762_v28 }
 0x9bd   : > { %v4777_v40 = vmax.bf16 %v7989_v0, %v4761_v29  ;;  %v4779_v21 = vmax.bf16 %v7989_v0, %v4763_v30  ;;  %v4913_v0 = vrot.slane %v6663_v34, %v8265_v52 }
 0x9bf   : > { %5708 = vmatprep.mubr.bf16.mxu1 %v4777_v40  ;;  %5761 = vmatprep.mubr.bf16.mxu0 %v4779_v21 }
 0x9c0   : > { %5709 = vmatmul.mubr.bf16.gmra.mxu1 %v4776_v53  ;;  %5762 = vmatmul.mubr.bf16.gmra.mxu0 %v4778_v15 }
 0xa38   : > { %v5594_v37 = vpop.f32.mrf.mxu1  ;;  %v5647_v42 = vpop.f32.mrf.mxu0 }
 0xa39   : > { %v5595_v55 = vadd.f32 %v5594_v37, %v4913_v0 }
 0xa3a   : > { %v5596_v32 = vpop.f32.mrf.mxu1  ;;  %v5649_v33 = vpop.f32.mrf.mxu0 }
 0xa3b   : > { %v5597_v31 = vadd.f32 %v5596_v32, %v4917_v49  ;;  %v5648_v59 = vadd.f32 %v5647_v42, %v5595_v55 }
 0xa3c   : > { %v5598_v47 = vpop.f32.mrf.mxu1  ;;  %v5651_v7 = vpop.f32.mrf.mxu0 }
 0xa3d   : > { %v5599_v54 = vadd.f32 %v5598_v47, %v4913_v0  ;;  %v5650_v60 = vadd.f32 %v5649_v33, %v5597_v31 }
 0xa3e   : > { %v5600_v23 = vpop.f32.mrf.mxu1  ;;  %v5653_v25 = vpop.f32.mrf.mxu0 }
 0xa3f   : > { %v5601_v2 = vadd.f32 %v5600_v23, %v4917_v49  ;;  %v5652_v1 = vadd.f32 %v5651_v7, %v5599_v54 }
 0xa40   : > { %v5604_v26 = vpop.f32.mrf.mxu1  ;;  %v5657_v18 = vpop.f32.mrf.mxu0 }
 0xa41   : > { %v5605_v4 = vadd.f32 %v5604_v26, %v4913_v0  ;;  %v5654_v58 = vadd.f32 %v5653_v25, %v5601_v2 }
 0xa42   : > { %v5606_v38 = vpop.f32.mrf.mxu1  ;;  %v5659_v39 = vpop.f32.mrf.mxu0 }
 0xa43   : > { %v5607_v22 = vadd.f32 %v5606_v38, %v4917_v49  ;;  %v5658_v9 = vadd.f32 %v5657_v18, %v5605_v4 }
 0xa44   : > { %v5608_v41 = vpop.f32.mrf.mxu1  ;;  %v5661_v44 = vpop.f32.mrf.mxu0 }
 0xa45   : > { %v5609_v63 = vadd.f32 %v5608_v41, %v4913_v0  ;;  %v5660_v28 = vadd.f32 %v5659_v39, %v5607_v22 }
 0xa46   : > { %v5610_v48 = vpop.f32.mrf.mxu1  ;;  %v5663_v56 = vpop.f32.mrf.mxu0 }
 0xa47   : > { %v5611_v35 = vadd.f32 %v5610_v48, %v4917_v49  ;;  %v5662_v40 = vadd.f32 %v5661_v44, %v5609_v63 }
 0xa49   : > { %v5664_v32 = vadd.f32 %v5663_v56, %v5611_v35 }
 0xa78   : > { %v5700_v8 = vpop.f32.mrf.mxu1  ;;  %v5753_v36 = vpop.f32.mrf.mxu0 }
 0xa79   : > { %v5701_v27 = vadd.f32 %v5700_v8, %v5648_v59 }
 0xa7a   : > { %v5702_v46 = vpop.f32.mrf.mxu1  ;;  %v5755_v62 = vpop.f32.mrf.mxu0 }
 0xa7b   : > { %v5703_v12 = vadd.f32 %v5702_v46, %v5650_v60  ;;  %v5754_v43 = vadd.f32 %v5753_v36, %v5701_v27  ;;  %v7650_v60 = vld [vmem:[#allocation11 + $0x78] sm:$0xff]   ;;  %v7652_v27 = vld [vmem:[#allocation11 + $0x70] sm:$0xff]  }
 0xa7c   : > { %v5704_v5 = vpop.f32.mrf.mxu1  ;;  %v5757_v6 = vpop.f32.mrf.mxu0  ;;  %7000 = vmatprep.subr.bf16.mxu1 %v7650_v60 }
 0xa7d   : > { %v5705_v20 = vadd.f32 %v5704_v5, %v5652_v1  ;;  %v5756_v24 = vadd.f32 %v5755_v62, %v5703_v12  ;;  %v7651_v1 = vld [vmem:[#allocation11 + $0x38] sm:$0xff]  }
 0xa7e   : > { %v5706_v57 = vpop.f32.mrf.mxu1  ;;  %v5759_v17 = vpop.f32.mrf.mxu0  ;;  %7001 = vmatpush3.bf16.msra.mxu1 %v7651_v1 }
 0xa7f   : > { %v5758_v50 = vadd.f32 %v5757_v6, %v5705_v20  ;;  %v5707_v16 = vadd.f32 %v5706_v57, %v5654_v58  ;;  %7002 = vmatprep.subr.bf16.mxu1 %v7652_v27 }
 0xa80   : > { %v5710_v45 = vpop.f32.mrf.mxu1  ;;  %v5763_v19 = vpop.f32.mrf.mxu0 }
 0xa81   : > { %v5772_v10 = vpack.c.bf16 %v5758_v50, %v5754_v43  ;;  %v5760_v11 = vadd.f32 %v5759_v17, %v5707_v16  ;;  %v5711_v29 = vadd.f32 %v5710_v45, %v5658_v9 }
 0xa82   : > { %v5712_v30 = vpop.f32.mrf.mxu1  ;;  %v5765_v15 = vpop.f32.mrf.mxu0 }
 0xa83   : > { %v5776_v21 = vadd.bf16 %v5772_v10, %v8686_v3  ;;  %v5773_v53 = vpack.c.bf16 %v5760_v11, %v5756_v24  ;;  %v5713_v37 = vadd.f32 %v5712_v30, %v5660_v28  ;;  %v5764_v23 = vadd.f32 %v5763_v19, %v5711_v29 }
 0xa84   : > { %v5714_v42 = vpop.f32.mrf.mxu1  ;;  %v5767_v7 = vpop.f32.mrf.mxu0 }
 0xa85   : > { %v5777_v33 = vadd.bf16 %v5773_v53, %v8684_v61  ;;  %v5715_v47 = vadd.f32 %v5714_v42, %v5662_v40  ;;  %v5782_v26 = vunpack.c.h.bf16 %v5776_v21  ;;  %v5780_v18 = vunpack.c.l.bf16 %v5776_v21  ;;  %v7653_v53 = vld [vmem:[#allocation11 + $0x30] sm:$0xff]   ;;  %v7656_v42 = vld [vmem:[#allocation11 + $0x60] sm:$0xff]  }
 0xa86   : > { %v5716_v25 = vpop.f32.mrf.mxu1  ;;  %v5766_v41 = vadd.f32 %v5765_v15, %v5713_v37  ;;  %v5769_v49 = vpop.f32.mrf.mxu0  ;;  %7003 = vmatpush3.bf16.msra.mxu1 %v7653_v53  ;;  %v7654_v15 = vld [vmem:[#allocation11 + $0x68] sm:$0xff]  }
 0xa87   : > { %v5768_v34 = vadd.f32 %v5767_v7, %v5715_v47  ;;  %v5717_v38 = vadd.f32 %v5716_v25, %v5664_v32  ;;  %v5783_v39 = vunpack.c.h.bf16 %v5777_v33  ;;  %v5781_v0 = vunpack.c.l.bf16 %v5777_v33  ;;  %v7655_v37 = vld [vmem:[#allocation11 + $0x28] sm:$0xff]   ;;  %7004 = vmatprep.subr.bf16.mxu1 %v7654_v15  ;;  %v7657_v32 = vld [vmem:[#allocation11 + $0x20] sm:$0xff]   ;;  %v7658_v33 = vld [vmem:[#allocation11 + $0x58] sm:$0xff]  }
 0xa88   : > { %v7659_v47 = vld [vmem:[#allocation11 + $0x18] sm:$0xff]   ;;  %v7660_v7 = vld [vmem:[#allocation11 + $0x50] sm:$0xff]   ;;  %v7662_v25 = vld [vmem:[#allocation11 + $0x48] sm:$0xff]  }
 0xa89   : > { %v5774_v3 = vpack.c.bf16 %v5768_v34, %v5764_v23  ;;  %v5770_v44 = vadd.f32 %v5769_v49, %v5717_v38  ;;  %v5791_v55 = vadd.f32 %v5783_v39, %v5782_v26  ;;  %v5788_v48 = vadd.f32 %v5781_v0, %v5780_v18  ;;  %v7661_v23 = vld [vmem:[#allocation11 + $0x10] sm:$0xff]   ;;  %v7665_v34 = vld [vmem:[#allocation11] sm:$0xff]  }
 0xa8a   : > { %7005 = vmatpush3.bf16.msra.mxu1 %v7655_v37 }
 0xa8b   : > { %v5778_v31 = vadd.bf16 %v5774_v3, %v8704_v14  ;;  %v5775_v54 = vpack.c.bf16 %v5770_v44, %v5766_v41  ;;  %5792 = vadd.xlane.f32.xlu1 %v5791_v55  ;;  %5789 = vadd.xlane.f32.xlu0 %v5788_v48 }
 0xa8c   : > { %7006 = vmatprep.subr.bf16.mxu1 %v7656_v42  ;;  %v6955_v42 = vld [vmem:[#allocation13] ss:$0 sm:$0xff] }
 0xa8d   : > { %v5779_v61 = vadd.bf16 %v5775_v54, %v8702_v13  ;;  %v5786_v56 = vunpack.c.h.bf16 %v5778_v31  ;;  %v5784_v59 = vunpack.c.l.bf16 %v5778_v31 }
 0xa8e   : > { %7007 = vmatpush3.bf16.msra.mxu1 %v7657_v32 }
 0xa8f   : > { %v5787_v8 = vunpack.c.h.bf16 %v5779_v61  ;;  %v5785_v2 = vunpack.c.l.bf16 %v5779_v61  ;;  %7008 = vmatprep.subr.bf16.mxu1 %v7658_v33 }
 0xa91   : > { %v5797_v36 = vadd.f32 %v5787_v8, %v5786_v56  ;;  %v5794_v46 = vadd.f32 %v5785_v2, %v5784_v59 }
 0xa92   : > { %7009 = vmatpush3.bf16.msra.mxu1 %v7659_v47 }
 0xa93   : > { %5798 = vadd.xlane.f32.xlu1 %v5797_v36  ;;  %5795 = vadd.xlane.f32.xlu0 %v5794_v46 }
 0xa94   : > { %7010 = vmatprep.subr.bf16.mxu1 %v7660_v7 }
 0xa96   : > { %7011 = vmatpush3.bf16.msra.mxu1 %v7661_v23 }
 0xa97   : > { %7012 = vmatprep.subr.bf16.mxu1 %v7662_v25 }
 0xb14   : > { %v5793_v14 = vpop.xlane.xlu1 %5792  ;;  %v5790_v62 = vpop.xlane.xlu0 %5789 }
 0xb15   : > { %v5801_v4 = vmul.f32 0.00390625, %v5793_v14  ;;  %v5800_v5 = vmul.f32 0.00390625, %v5790_v62 }
 0xb17   : > { %v8765_v58 = vsub.f32 %v5782_v26, %v5801_v4  ;;  %v8767_v13 = vsub.f32 %v5783_v39, %v5801_v4  ;;  %v8769_v12 = vsub.f32 %v5780_v18, %v5800_v5  ;;  %v8771_v20 = vsub.f32 %v5781_v0, %v5800_v5  ;;  %v7663_v26 = vld [vmem:[#allocation11 + $0x8] sm:$0xff]   ;;  %v7664_v18 = vld [vmem:[#allocation11 + $0x40] sm:$0xff]  }
 0xb18   : > { %7013 = vmatpush3.bf16.msra.mxu1 %v7663_v26 }
 0xb19   : > { %v5814_v6 = vmul.f32 %v8765_v58, %v8765_v58  ;;  %v5815_v22 = vmul.f32 %v8767_v13, %v8767_v13  ;;  %v5812_v57 = vmul.f32 %v8769_v12, %v8769_v12  ;;  %v5813_v63 = vmul.f32 %v8771_v20, %v8771_v20  ;;  %7014 = vmatprep.subr.bf16.mxu1 %v7664_v18 }
 0xb1b   : > { %v5823_v43 = vadd.f32 %v5815_v22, %v5814_v6  ;;  %v5820_v50 = vadd.f32 %v5813_v63, %v5812_v57 }
 0xb1c   : > { %v5799_v16 = vpop.xlane.xlu1 %5798  ;;  %v5796_v17 = vpop.xlane.xlu0 %5795  ;;  %7015 = vmatpush3.bf16.msra.mxu1 %v7665_v34 }
 0xb1d   : > { %v5803_v9 = vmul.f32 0.00390625, %v5799_v16  ;;  %v5802_v45 = vmul.f32 0.00390625, %v5796_v17  ;;  %5824 = vadd.xlane.f32.xlu1 %v5823_v43  ;;  %5821 = vadd.xlane.f32.xlu0 %v5820_v50 }
 0xb1f   : > { %v8781_v35 = vsub.f32 %v5786_v56, %v5803_v9  ;;  %v8783_v24 = vsub.f32 %v5787_v8, %v5803_v9  ;;  %v8785_v10 = vsub.f32 %v5784_v59, %v5802_v45  ;;  %v8787_v11 = vsub.f32 %v5785_v2, %v5802_v45  ;;  %v6664_v56 = vld [vmem:[%s8872_s7 + $0x12] ss:$8 sm:$0x3]  ;;  %v6665_v8 = vld [vmem:[%s8872_s7 + $0x14] ss:$8 sm:$0x3] }
 0xb20   : > { %v5856_v59 = vrot.slane %v6664_v56, %v8265_v52  ;;  %v5860_v2 = vrot.slane %v6664_v56, %v8262_v51  ;;  %v5875_v27 = vrot.slane %v6665_v8, %v8265_v52  ;;  %v5879_v14 = vrot.slane %v6665_v8, %v8262_v51 }
 0xb21   : > { %v5818_v19 = vmul.f32 %v8781_v35, %v8781_v35  ;;  %v5819_v28 = vmul.f32 %v8783_v24, %v8783_v24  ;;  %v5816_v29 = vmul.f32 %v8785_v10, %v8785_v10  ;;  %v5817_v30 = vmul.f32 %v8787_v11, %v8787_v11 }
 0xb23   : > { %v5829_v40 = vadd.f32 %v5819_v28, %v5818_v19  ;;  %v5826_v21 = vadd.f32 %v5817_v30, %v5816_v29 }
 0xb25   : > { %5830 = vadd.xlane.f32.xlu1 %v5829_v40  ;;  %5827 = vadd.xlane.f32.xlu0 %v5826_v21 }
 0xba6   : > { %v5825_v38 = vpop.xlane.xlu1 %5824  ;;  %v5822_v39 = vpop.xlane.xlu0 %5821 }
 0xba7   : > { %v5833_v0 = vmul.f32 0.00390625, %v5825_v38  ;;  %v5832_v41 = vmul.f32 0.00390625, %v5822_v39 }
 0xba9   : > { %v5837_v49 = vadd.f32 1e-05, %v5833_v0  ;;  %v5836_v3 = vadd.f32 1e-05, %v5832_v41 }
 0xbab   : > { %7690 = vrsqrt.f32 %v5837_v49 }
 0xbac   : > { %7692 = vrsqrt.f32 %v5836_v3 }
 0xbae   : > { %v5831_v44 = vpop.xlane.xlu1 %5830  ;;  %v5828_v55 = vpop.xlane.xlu0 %5827 }
 0xbaf   : > { %v5835_v48 = vmul.f32 0.00390625, %v5831_v44  ;;  %v5834_v31 = vmul.f32 0.00390625, %v5828_v55 }
 0xbb1   : > { %v5839_v54 = vadd.f32 1e-05, %v5835_v48  ;;  %v5838_v61 = vadd.f32 1e-05, %v5834_v31 }
 0xbb3   : > { %7694 = vrsqrt.f32 %v5839_v54 }
 0xbb4   : > { %7696 = vrsqrt.f32 %v5838_v61 }
 0xbb8   : > { %v7691_v36 = vpop.eup %7690 }
 0xbb9   : > { %v7693_v46 = vpop.eup %7692  ;;  %v5846_v60 = vmul.f32 %v7691_v36, %v8765_v58  ;;  %v5847_v1 = vmul.f32 %v7691_v36, %v8767_v13 }
 0xbba   : > { %v5844_v62 = vmul.f32 %v7693_v46, %v8769_v12  ;;  %v5845_v4 = vmul.f32 %v7693_v46, %v8771_v20 }
 0xbbb   : > { %v5866_v5 = vmul.f32 %v5860_v2, %v5847_v1  ;;  %v5865_v6 = vmul.f32 %v5856_v59, %v5846_v60 }
 0xbbc   : > { %v5864_v22 = vmul.f32 %v5860_v2, %v5845_v4  ;;  %v5863_v57 = vmul.f32 %v5856_v59, %v5844_v62 }
 0xbbd   : > { %v5885_v63 = vadd.f32 %v5879_v14, %v5866_v5  ;;  %v5884_v43 = vadd.f32 %v5875_v27, %v5865_v6 }
 0xbbe   : > { %v5883_v50 = vadd.f32 %v5879_v14, %v5864_v22  ;;  %v5882_v16 = vadd.f32 %v5875_v27, %v5863_v57 }
 0xbc0   : > { %v7695_v17 = vpop.eup %7694  ;;  %v5891_v58 = vpack.c.bf16 %v5885_v63, %v5883_v50  ;;  %v5890_v9 = vpack.c.bf16 %v5884_v43, %v5882_v16 }
 0xbc1   : > { %v7697_v13 = vpop.eup %7696  ;;  %v5851_v52 = vmul.f32 %v7695_v17, %v8783_v24  ;;  %v5850_v51 = vmul.f32 %v7695_v17, %v8781_v35  ;;  %v6972_v17 = vld [vmem:[#allocation13 + $0x1] ss:$0 sm:$0xff] }
 0xbc2   : > { %6061 = vmatprep.mubr.bf16.mxu1 %v5891_v58  ;;  %v5849_v12 = vmul.f32 %v7697_v13, %v8787_v11  ;;  %v5848_v20 = vmul.f32 %v7697_v13, %v8785_v10 }
 0xbc3   : > { %6062 = vmatmul.mubr.bf16.vlgmr.msra.gmra.mxu1 %v5890_v9  ;;  %v5870_v45 = vmul.f32 %v5860_v2, %v5851_v52  ;;  %v5869_v19 = vmul.f32 %v5856_v59, %v5850_v51  ;;  %v6973_v9 = vld [vmem:[#allocation13 + $0x2] ss:$0 sm:$0xff] }
 0xbc4   : > { %v5868_v28 = vmul.f32 %v5860_v2, %v5849_v12  ;;  %v5867_v29 = vmul.f32 %v5856_v59, %v5848_v20 }
 0xbc5   : > { %v5889_v30 = vadd.f32 %v5879_v14, %v5870_v45  ;;  %v5888_v40 = vadd.f32 %v5875_v27, %v5869_v19 }
 0xbc6   : > { %v5887_v21 = vadd.f32 %v5879_v14, %v5868_v28  ;;  %v5886_v53 = vadd.f32 %v5875_v27, %v5867_v29 }
 0xbc8   : > { %v5893_v15 = vpack.c.bf16 %v5889_v30, %v5887_v21  ;;  %v5892_v37 = vpack.c.bf16 %v5888_v40, %v5886_v53 }
 0xbca   : > { %6069 = vmatprep.mubr.bf16.mxu1 %v5893_v15 }
 0xbcb   : > { %6070 = vmatmul.mubr.bf16.gmra.mxu1 %v5892_v37 }
 0xc83   : > { %v7016_v24 = vpop.f32.mrf.mxu1 }
 0xc85   : > { %v7017_v35 = vpop.f32.mrf.mxu1 }
 0xc86   : > { %v7018_v32 = vadd.f32 %v7017_v35, %v7016_v24 }
 0xc87   : > { %v7019_v11 = vpop.f32.mrf.mxu1 }
 0xc88   : > { %v6064_v33 = vadd.f32 %v7018_v32, %v6955_v42 }
 0xc89   : > { %v7020_v10 = vpop.f32.mrf.mxu1 }
 0xc8a   : > { %v7021_v47 = vadd.f32 %v7020_v10, %v7019_v11  ;;  %6078 = vadd.xlane.f32.xlu0 %v6064_v33 }
 0xc8b   : > { %v7022_v7 = vpop.f32.mrf.mxu1 }
 0xc8c   : > { %v6067_v23 = vadd.f32 %v7021_v47, %v6955_v42 }
 0xc8d   : > { %v7023_v25 = vpop.f32.mrf.mxu1 }
 0xc8e   : > { %v7024_v26 = vadd.f32 %v7023_v25, %v7022_v7  ;;  %6080 = vadd.xlane.f32.xlu1 %v6067_v23 }
 0xc8f   : > { %v7025_v18 = vpop.f32.mrf.mxu1 }
 0xc90   : > { %v6072_v34 = vadd.f32 %v7024_v26, %v6955_v42 }
 0xc91   : > { %v7026_v38 = vpop.f32.mrf.mxu1 }
 0xc92   : > { %v7027_v39 = vadd.f32 %v7026_v38, %v7025_v18  ;;  %6082 = vadd.xlane.f32.xlu0 %v6072_v34 }
 0xc94   : > { %v6075_v0 = vadd.f32 %v7027_v39, %v6955_v42 }
 0xc96   : > { %6084 = vadd.xlane.f32.xlu1 %v6075_v0 }
 0xd13   : > { %v6079_v41 = vpop.xlane.xlu0 %6078 }
 0xd14   : > { %v6087_v49 = vmul.f32 0.0078125, %v6079_v41 }
 0xd16   : > { %v6091_v3 = vsub.f32 %v6064_v33, %v6087_v49 }
 0xd17   : > { %v6081_v44 = vpop.xlane.xlu1 %6080 }
 0xd18   : > { %v6088_v55 = vmul.f32 0.0078125, %v6081_v44  ;;  %v6095_v48 = vmul.f32 %v6091_v3, %v6091_v3 }
 0xd1a   : > { %v6092_v31 = vsub.f32 %v6067_v23, %v6088_v55  ;;  %6099 = vadd.xlane.f32.xlu0 %v6095_v48 }
 0xd1b   : > { %v6083_v54 = vpop.xlane.xlu0 %6082 }
 0xd1c   : > { %v6089_v61 = vmul.f32 0.0078125, %v6083_v54  ;;  %v6096_v56 = vmul.f32 %v6092_v31, %v6092_v31 }
 0xd1e   : > { %v6093_v8 = vsub.f32 %v6072_v34, %v6089_v61  ;;  %6101 = vadd.xlane.f32.xlu1 %v6096_v56 }
 0xd1f   : > { %v6085_v59 = vpop.xlane.xlu1 %6084 }
 0xd20   : > { %v6090_v2 = vmul.f32 0.0078125, %v6085_v59  ;;  %v6097_v36 = vmul.f32 %v6093_v8, %v6093_v8 }
 0xd22   : > { %v6094_v46 = vsub.f32 %v6075_v0, %v6090_v2  ;;  %6103 = vadd.xlane.f32.xlu0 %v6097_v36 }
 0xd24   : > { %v6098_v60 = vmul.f32 %v6094_v46, %v6094_v46 }
 0xd26   : > { %6105 = vadd.xlane.f32.xlu1 %v6098_v60 }
 0xda3   : > { %v6100_v1 = vpop.xlane.xlu0 %6099 }
 0xda4   : > { %v6107_v27 = vmul.f32 0.0078125, %v6100_v1 }
 0xda6   : > { %v6111_v14 = vadd.f32 1e-05, %v6107_v27 }
 0xda7   : > { %v6102_v62 = vpop.xlane.xlu1 %6101 }
 0xda8   : > { %7698 = vrsqrt.f32 %v6111_v14  ;;  %v6108_v4 = vmul.f32 0.0078125, %v6102_v62 }
 0xdaa   : > { %v6112_v5 = vadd.f32 1e-05, %v6108_v4 }
 0xdab   : > { %v6104_v6 = vpop.xlane.xlu0 %6103 }
 0xdac   : > { %7700 = vrsqrt.f32 %v6112_v5  ;;  %v6109_v22 = vmul.f32 0.0078125, %v6104_v6 }
 0xdae   : > { %v6113_v57 = vadd.f32 1e-05, %v6109_v22 }
 0xdaf   : > { %v6106_v63 = vpop.xlane.xlu1 %6105 }
 0xdb0   : > { %7702 = vrsqrt.f32 %v6113_v57  ;;  %v6110_v43 = vmul.f32 0.0078125, %v6106_v63 }
 0xdb2   : > { %v6114_v50 = vadd.f32 1e-05, %v6110_v43 }
 0xdb4   : > { %7704 = vrsqrt.f32 %v6114_v50 }
 0xdb5   : > { %v7699_v16 = vpop.eup %7698 }
 0xdb6   : > { %v6119_v58 = vmul.f32 %v7699_v16, %v6091_v3 }
 0xdb8   : > { %v6127_v13 = vmul.f32 %v6972_v17, %v6119_v58 }
 0xdb9   : > { %v7701_v52 = vpop.eup %7700 }
 0xdba   : > { %v6135_v51 = vadd.f32 %v6973_v9, %v6127_v13  ;;  %v6120_v12 = vmul.f32 %v7701_v52, %v6092_v31 }
 0xdbc   : > { %v6139_v20 = vmul.f32 %v6135_v51, %v6135_v51  ;;  %v6128_v45 = vmul.f32 %v6972_v17, %v6120_v12 }
 0xdbd   : > { %v7703_v19 = vpop.eup %7702 }
 0xdbe   : > { %6143 = vadd.xlane.f32.xlu0 %v6139_v20  ;;  %v6136_v28 = vadd.f32 %v6973_v9, %v6128_v45  ;;  %v6121_v29 = vmul.f32 %v7703_v19, %v6093_v8 }
 0xdc0   : > { %v6140_v30 = vmul.f32 %v6136_v28, %v6136_v28  ;;  %v6129_v40 = vmul.f32 %v6972_v17, %v6121_v29 }
 0xdc1   : > { %v7705_v21 = vpop.eup %7704 }
 0xdc2   : > { %6145 = vadd.xlane.f32.xlu1 %v6140_v30  ;;  %v6137_v53 = vadd.f32 %v6973_v9, %v6129_v40  ;;  %v6122_v15 = vmul.f32 %v7705_v21, %v6094_v46 }
 0xdc4   : > { %v6141_v37 = vmul.f32 %v6137_v53, %v6137_v53  ;;  %v6130_v24 = vmul.f32 %v6972_v17, %v6122_v15 }
 0xdc6   : > { %6147 = vadd.xlane.f32.xlu0 %v6141_v37  ;;  %v6138_v35 = vadd.f32 %v6973_v9, %v6130_v24 }
 0xdc8   : > { %v6142_v42 = vmul.f32 %v6138_v35, %v6138_v35 }
 0xdca   : > { %6149 = vadd.xlane.f32.xlu1 %v6142_v42 }
 0xe47   : > { %v6144_v32 = vpop.xlane.xlu0 %6143 }
 0xe48   : > { %v6151_v11 = vmax.f32 %v6144_v32, 1e-24 }
 0xe4a   : > { %7706 = vrsqrt.f32 %v6151_v11 }
 0xe4b   : > { %v6146_v33 = vpop.xlane.xlu1 %6145 }
 0xe4c   : > { %v6152_v10 = vmax.f32 %v6146_v33, 1e-24 }
 0xe4e   : > { %7708 = vrsqrt.f32 %v6152_v10 }
 0xe4f   : > { %v6148_v47 = vpop.xlane.xlu0 %6147 }
 0xe50   : > { %v6153_v7 = vmax.f32 %v6148_v47, 1e-24 }
 0xe52   : > { %7710 = vrsqrt.f32 %v6153_v7 }
 0xe53   : > { %v6150_v23 = vpop.xlane.xlu1 %6149 }
 0xe54   : > { %v6154_v25 = vmax.f32 %v6150_v23, 1e-24 }
 0xe56   : > { %7712 = vrsqrt.f32 %v6154_v25 }
 0xe57   : > { %v7707_v26 = vpop.eup %7706 }
 0xe58   : > { %v6159_v34 = vmul.f32 %v7707_v26, %v6135_v51 }
 0xe5b   : > { %v7709_v18 = vpop.eup %7708 }
 0xe5c   : > { %v6160_v38 = vmul.f32 %v7709_v18, %v6136_v28 }
 0xe5e   : > { %v6992_v39 = vpack.c.bf16 %v6160_v38, %v6159_v34 }
 0xe5f   : > { %v7711_v0 = vpop.eup %7710 }
 0xe60   : > { %6993 = vst [vmem:[%s435_s25] sm:$0xff] %v6992_v39   ;;  %v6161_v49 = vmul.f32 %v7711_v0, %v6137_v53 }
 0xe63   : > { %v7713_v41 = vpop.eup %7712 }
 0xe64   : > { %v6162_v3 = vmul.f32 %v7713_v41, %v6138_v35 }
 0xe66   : > { %v6997_v44 = vpack.c.bf16 %v6162_v3, %v6161_v49 }
 0xe68   : > { %6999 = vst [vmem:[%s435_s25 + $0x8] sm:$0xff] %v6997_v44  }
 0xe69   : > { %7911 = shalt.err (!%p7908_p3)
}
 0xe6a   : > { %s7912_s1 = scalar_lea.hbm %s8821_s2, 256  ;;  %s7916_s27 = scalar_lea.hbm %s8874_s9, 768 }
 0xe6b   : > { %p7913_p5 = scmp.ne.s32.totalorder %s8821_s2, %s7912_s1  ;;  %p7917_p8 = scmp.lt.s32.totalorder %s8821_s2, %s8874_s9 }
 0xe6c   : > { %p7918_p9 = scmp.lt.s32.totalorder %s7916_s27, %s7912_s1 }
 0xe6d   : > { %p7914_p4 = pnand %p7913_p5, %p8905_p13 }
 0xe6e   : > { %p7919_p11 = por %p7918_p9, %p7917_p8 }
 0xe6f   : > { %p7915_p7 = pneg %p7914_p4 }
 0xe71   : > { %p7920_p12 = pnand %p7919_p11, %p7915_p7 }
 0xe73   : > { %7923 = shalt.err (!%p7920_p12)
}
 0xe74   : > { %s7992_s28 = smov 64   ;;  %s7993_s21 = smov 4  }
 0xe75   : > { %7054 = dma.vmem_to_hbm [thread:$0]  (%p8905_p13), %s8823_s18, 256, %s8821_s2, %s6184_s3, %s7992_s28, %s7992_s28, %s7993_s21  }
 0xe76 PF: > { %p7096_p0 = scmp.ge.s32.totalorder %s7974_s12, 2  ;;  %s6212_s20 = sand.u32 1, %s7962_s30  }
 0xe77   : > { %p8906_p2 = scmp.ne.s32.totalorder %s8893_s13, 0  ;;  %s6213_s15 = scalar_lea.sflag [#allocation4], %s6212_s20 }
 0xe79   : > { %p7080_p6 = pnand %p7096_p0, %p8906_p2 }
 0xe7b   : > { %p7081_p10 = pneg %p7080_p6 }
 0xe7d   : > { %7957 = dma.done.wait (%p7081_p10), %s6213_s15, 256  }
 0xe7e   : > { %7959 = vsyncadd (%p7081_p10), %s6213_s15, 4294967040  ;;  %p25_p1 = scmp.ge.s32.totalorder %s8154_s19, 5   ;;  %s8907_s30 = smov %s7966_s10 }
 0xe7f   : > { %s8908_s10 = smov %s7970_s11  ;;  %s8909_s11 = smov %s8165_s17 }
 0xe80   : > { %s8910_s12 = smov %s8154_s19  ;;  %27 = sbr.rel (!%p25_p1) target bundleno = 12 (0xc), region = 141 }
 0xe85   :  { %6218 = vsyncpa [#allocation3], 1 }
 0xe86   :  { %6220 = vsyncpa [#allocation3 + $0x1], 1 }
 0xe87   :  { %6221 = vsyncpa [#allocation6], 1 }
 0xe88   :  { %6222 = vsyncpa [#allocation9], 1 }
 0xe89   :  { %6223 = vsyncpa [#allocation12], 1 }
 0xe8a   :  { %6224 = vsyncpa [#allocation4], 1 }
 0xe8b   :  { %6226 = vsyncpa [#allocation4 + $0x1], 1 }

</bundles_post_ra>
